<compile_context>
chip_gen: v6e
topology: v6e:2x2x1
jax: 0.10.0
libtpu: 0.0.40
codegen_flags: <defaults>
</compile_context>

<pallas_src>
import functools
import math

import jax
import jax.numpy as jnp
from jax.experimental import pallas as pl
from jax.experimental.pallas import tpu as pltpu

# ArcMargin hyper-parameters (compile-time constants).
S_SCALE = 32.0
MARGIN = 0.2
COS_M = math.cos(MARGIN)
SIN_M = math.sin(MARGIN)
TH = math.cos(math.pi - MARGIN)
MM = math.sin(math.pi - MARGIN) * MARGIN

TILE_T_MAX = 512   # stage-1 time tile (>=512 amortizes ~0.35us/step overhead)
TILE_C_MAX = 512   # stage-2 class tile (lane-dense output stores)


def _cdiv(a, b):
    return (a + b - 1) // b


def _round_up(n, m):
    return _cdiv(n, m) * m


def _pad_axis(a, axis, target):
    pad = target - a.shape[axis]
    if pad == 0:
        return a
    widths = [(0, 0)] * a.ndim
    widths[axis] = (0, pad)
    return jnp.pad(a, widths)


def _vmem_limit_bytes():
    # v7x has 64 MiB physical VMEM -> stay <=48 MiB; v5e/v6e have 128 MiB.
    try:
        kind = jax.devices()[0].device_kind.lower()
    except Exception:
        return 48 * 1024 * 1024
    if "v5" in kind or "v6" in kind:
        return 96 * 1024 * 1024
    return 48 * 1024 * 1024


def _pick_tile_c(C):
    # Lane-dense class tiles (multiple of 128), big enough to amortize grid
    # overhead, and >=2 tiles whenever C allows so the "parallel" class axis
    # can shard across both v7x TensorCores.
    if C >= 2 * TILE_C_MAX:
        return TILE_C_MAX
    if C <= 128:
        return 128
    return min(TILE_C_MAX, _round_up(_cdiv(C, 2), 128))


# --------------------------------------------------------------------------
# Stage 1: streamed per-split time statistics (sum, sum of squares).
# Grid: (n_splits, steps_per_split) -> ("parallel", "arbitrary").
# x is streamed as bf16 (half HBM traffic); accumulation stays f32.
# --------------------------------------------------------------------------
def _stats_kernel(x_ref, psum_ref, psq_ref, sum_sc, sq_sc, *,
                  n_frames, tile_t, steps_per_split, mask_tail):
    c = pl.program_id(0)
    t = pl.program_id(1)

    @pl.when(t == 0)
    def _():
        sum_sc[...] = jnp.zeros_like(sum_sc)
        sq_sc[...] = jnp.zeros_like(sq_sc)

    x = x_ref[...].astype(jnp.float32)                 # (B, tile_t, F)
    if mask_tail:
        # Logical (unclamped) first frame of this tile; zero out-of-range frames.
        frame0 = (c * steps_per_split + t) * tile_t
        fidx = frame0 + jax.lax.broadcasted_iota(jnp.int32, (tile_t, x.shape[-1]), 0)
        x = jnp.where(fidx[None, :, :] < n_frames, x, 0.0)

    sum_sc[...] += jnp.sum(x, axis=1)                  # running sum(x)
    sq_sc[...] += jnp.sum(x * x, axis=1)               # running sum(x^2)

    @pl.when(t == pl.num_programs(1) - 1)
    def _():
        psum_ref[...] = sum_sc[...][None]
        psq_ref[...] = sq_sc[...][None]


# --------------------------------------------------------------------------
# Stage 2: combine partial stats -> TSTP finalize + FC + L2-norm + ArcMargin,
# tiled over the class axis ("parallel" -> megacore on v7x). The tiny FC
# (B x F @ F x D) is recomputed per class tile; it is negligible next to the
# w2 tile DMA and keeps the whole epilogue fused in one kernel (emb never
# round-trips HBM).
# --------------------------------------------------------------------------
def _arcmargin_kernel(y_ref, psum_ref, psq_ref, w1a_ref, w1b_ref, b1_ref,
                      w2_ref, out_ref, *, n_frames, tile_c):
    j = pl.program_id(0)
    inv_t = jnp.float32(1.0 / n_frames)

    mean = jnp.sum(psum_ref[...], axis=0) * inv_t                     # (B, F)
    ex2 = jnp.sum(psq_ref[...], axis=0) * inv_t
    # TODO(synk): wespeaker's TSTP uses torch.std (unbiased, T-1); this uses
    # the biased E[x^2]-E[x]^2 estimator (+1e-5), matching the in-file ref.
    std = jnp.sqrt(jnp.maximum(ex2 - mean * mean, 0.0) + 1e-5)        # (B, F)

    # concat([mean, std]) @ W1 == mean @ W1a + std @ W1b (no lane concat).
    emb = (jnp.dot(mean.astype(jnp.bfloat16), w1a_ref[...],
                   preferred_element_type=jnp.float32)
           + jnp.dot(std.astype(jnp.bfloat16), w1b_ref[...],
                     preferred_element_type=jnp.float32)
           + b1_ref[...])                                             # (B, D)
    emb_n = emb * jax.lax.rsqrt(
        jnp.sum(emb * emb, axis=-1, keepdims=True) + 1e-12)

    # w2_ref holds pre-normalized columns (bf16). Cosine with f32 accumulation.
    cosine = jnp.dot(emb_n.astype(jnp.bfloat16), w2_ref[...],
                     preferred_element_type=jnp.float32)              # (B, tc)
    sine = jnp.sqrt(jnp.maximum(1.0 - cosine * cosine, 0.0))
    phi = cosine * COS_M - sine * SIN_M                               # cos(th+m)
    phi = jnp.where(cosine > TH, phi, cosine - MM)                    # easy_margin=False

    col = j * tile_c + jax.lax.broadcasted_iota(jnp.int32, cosine.shape, 1)
    one_hot = col == y_ref[...]                                       # (B,1) bcast
    out_ref[...] = (S_SCALE * jnp.where(one_hot, phi, cosine)).astype(out_ref.dtype)


# --------------------------------------------------------------------------
# One-time weight preparation (hoisted out of the per-call forward path).
# --------------------------------------------------------------------------
def prepare_params(w1a, w1b, b1, w2):
    F, D = w1a.shape
    D2, C = w2.shape
    assert D2 == D and w1b.shape == (F, D) and b1.shape == (1, D)
    tile_c = _pick_tile_c(C)
    # L2-normalize ArcMargin weight columns ONCE (f32), pad C to a multiple of
    # the class tile, cast matmul operands to bf16.
    w2_n = w2 * jax.lax.rsqrt(jnp.sum(w2 * w2, axis=0, keepdims=True) + 1e-12)
    w2_p = _pad_axis(w2_n, 1, _round_up(C, tile_c)).astype(jnp.bfloat16)
    return dict(
        w1a=w1a.astype(jnp.bfloat16),
        w1b=w1b.astype(jnp.bfloat16),
        b1=b1.astype(jnp.float32),
        w2=w2_p,
        tile_c=tile_c,
        num_classes=C,
    )


# --------------------------------------------------------------------------
# Forward: two pipelined pallas_calls.
# --------------------------------------------------------------------------
def speakernet_forward(x, y, params, *, tile_t_max=TILE_T_MAX):
    B, T, F = x.shape
    w1a, w1b, b1, w2 = params["w1a"], params["w1b"], params["b1"], params["w2"]
    tile_c = params["tile_c"]
    C = params["num_classes"]
    D = w1a.shape[1]
    C_pad = w2.shape[1]
    assert w1a.shape[0] == F and C_pad % tile_c == 0

    # Time tiling: big tiles, clamped for short utterances (no pad inflation).
    tile_t = min(tile_t_max, _round_up(T, 8))
    total_steps = _cdiv(T, tile_t)
    n_splits = 2 if total_steps >= 2 else 1      # give both v7x TCs T-work
    steps_per_split = _cdiv(total_steps, n_splits)
    mask_tail = (n_splits * steps_per_split * tile_t) != T

    vmem_limit = _vmem_limit_bytes()

    # Stream x at bf16 (halves stage-1 HBM traffic; accumulation stays f32).
    # TODO(synk): in deployment the fbank features should already arrive bf16
    # so this cast (an extra HBM pass) disappears entirely.
    x_bf16 = x if x.dtype == jnp.bfloat16 else x.astype(jnp.bfloat16)

    def x_index_map(c, t):
        # Clamp tiles that fall fully past T (they are zero-masked in-kernel).
        blk = jnp.minimum(c * steps_per_split + t, total_steps - 1)
        return (0, blk, 0)

    # ---- stage 1: streamed per-split sum / sum-of-squares ----
    psum, psq = pl.pallas_call(
        functools.partial(_stats_kernel, n_frames=T, tile_t=tile_t,
                          steps_per_split=steps_per_split, mask_tail=mask_tail),
        out_shape=(jax.ShapeDtypeStruct((n_splits, B, F), jnp.float32),
                   jax.ShapeDtypeStruct((n_splits, B, F), jnp.float32)),
        grid_spec=pltpu.PrefetchScalarGridSpec(
            num_scalar_prefetch=0,
            grid=(n_splits, steps_per_split),
            in_specs=[pl.BlockSpec((B, tile_t, F), x_index_map)],
            out_specs=[pl.BlockSpec((1, B, F), lambda c, t: (c, 0, 0)),
                       pl.BlockSpec((1, B, F), lambda c, t: (c, 0, 0))],
            scratch_shapes=[pltpu.VMEM((B, F), jnp.float32),
                            pltpu.VMEM((B, F), jnp.float32)],
        ),
        compiler_params=pltpu.CompilerParams(
            dimension_semantics=("parallel", "arbitrary"),
            vmem_limit_bytes=vmem_limit),
    )(x_bf16)

    # Labels as a (B,1) int32 column -> one vector compare builds one_hot.
    y_col = y.reshape(B, 1).astype(jnp.int32)

    # ---- stage 2: fused TSTP finalize + FC + ArcMargin over class tiles ----
    logits = pl.pallas_call(
        functools.partial(_arcmargin_kernel, n_frames=T, tile_c=tile_c),
        out_shape=jax.ShapeDtypeStruct((B, C_pad), jnp.float32),
        grid_spec=pltpu.PrefetchScalarGridSpec(
            num_scalar_prefetch=0,
            grid=(C_pad // tile_c,),
            in_specs=[
                pl.BlockSpec((B, 1), lambda j: (0, 0)),
                pl.BlockSpec((n_splits, B, F), lambda j: (0, 0, 0)),
                pl.BlockSpec((n_splits, B, F), lambda j: (0, 0, 0)),
                pl.BlockSpec((F, D), lambda j: (0, 0)),
                pl.BlockSpec((F, D), lambda j: (0, 0)),
                pl.BlockSpec((1, D), lambda j: (0, 0)),
                pl.BlockSpec((D, tile_c), lambda j: (0, j)),
            ],
            out_specs=pl.BlockSpec((B, tile_c), lambda j: (0, j)),
        ),
        compiler_params=pltpu.CompilerParams(
            dimension_semantics=("parallel",),
            vmem_limit_bytes=vmem_limit),
    )(y_col, psum, psq, w1a, w1b, b1, w2)

    return logits[:, :C]


if __name__ == "__main__":
    # Small but representative shapes that exercise time splitting, the tail
    # mask, and multi-tile classes: batch=2, frames=1200, fbank=80, emb=256,
    # classes=600.
    B, T, F, D, C = 2, 1200, 80, 256, 600

    key = jax.random.PRNGKey(0)
    kx, kw1, kb1, kw2 = jax.random.split(key, 4)

    # Features arrive in bf16 (streamed dtype of the kernel).
    x = jax.random.normal(kx, (B, T, F), dtype=jnp.float32).astype(jnp.bfloat16)
    y = jnp.array([3, 117], dtype=jnp.int32)                 # target labels

    w1 = jax.random.normal(kw1, (2 * F, D), dtype=jnp.float32) * 0.05
    w1a, w1b = w1[:F, :], w1[F:, :]                          # split for mean/std
    b1 = jax.random.normal(kb1, (1, D), dtype=jnp.float32) * 0.01
    w2 = jax.random.normal(kw2, (D, C), dtype=jnp.float32) * 0.05

    params = prepare_params(w1a, w1b, b1, w2)                # one-time prep
    out = speakernet_forward(x, y, params)
    out = jax.block_until_ready(out)

    # Pure-JAX reference using the same bf16-operand / f32-accumulation math.
    x32 = x.astype(jnp.float32)
    mean = jnp.mean(x32, axis=1)
    std = jnp.sqrt(jnp.maximum(jnp.mean(x32 * x32, axis=1) - mean * mean, 0.0) + 1e-5)
    emb = (jnp.dot(mean.astype(jnp.bfloat16), w1a.astype(jnp.bfloat16),
                   preferred_element_type=jnp.float32)
           + jnp.dot(std.astype(jnp.bfloat16), w1b.astype(jnp.bfloat16),
                     preferred_element_type=jnp.float32)
           + b1)
    emb_n = emb * jax.lax.rsqrt(jnp.sum(emb * emb, axis=-1, keepdims=True) + 1e-12)
    w2_n = w2 * jax.lax.rsqrt(jnp.sum(w2 * w2, axis=0, keepdims=True) + 1e-12)
    cos = jnp.dot(emb_n.astype(jnp.bfloat16), w2_n.astype(jnp.bfloat16),
                  preferred_element_type=jnp.float32)
    sin = jnp.sqrt(jnp.maximum(1.0 - cos * cos, 0.0))
    phi = jnp.where(cos > TH, cos * COS_M - sin * SIN_M, cos - MM)
    oh = jax.nn.one_hot(y, C, dtype=bool)
    ref = S_SCALE * jnp.where(oh, phi, cos)

    assert jnp.allclose(out, ref, atol=5e-2, rtol=5e-2), float(
        jnp.max(jnp.abs(out - ref)))
    print("KERNEL_OK")
</pallas_src>

<mosaic_0001>
module attributes {stable_mosaic.version = 11 : i64} {
  func.func @_stats_kernel(%arg0: i32, %arg1: i32, %arg2: memref<2x512x80xbf16, #tpu.memory_space<vmem>>, %arg3: memref<1x2x80xf32, #tpu.memory_space<vmem>>, %arg4: memref<1x2x80xf32, #tpu.memory_space<vmem>>, %arg5: memref<2x80xf32, #tpu.memory_space<vmem>>, %arg6: memref<2x80xf32, #tpu.memory_space<vmem>>) attributes {dimension_semantics = [#tpu.dimension_semantics<parallel>, #tpu.dimension_semantics<arbitrary>], iteration_bounds = array<i64: 2, 2>, scalar_prefetch = 0 : i64, scratch_operands = 2 : i64, tpu.core_type = #tpu.core_type<tc>, window_params = [{transform_indices = @transform_0, window_bounds = array<i64: 2, 512, 80>}, {transform_indices = @transform_1, window_bounds = array<i64: 1, 2, 80>}, {transform_indices = @transform_2, window_bounds = array<i64: 1, 2, 80>}]} {
    %c0_i32 = arith.constant 0 : i32
    %0 = arith.cmpi eq, %arg1, %c0_i32 : i32
    %1 = arith.extui %0 : i1 to i32
    %c0_i32_0 = arith.constant 0 : i32
    %2 = arith.cmpi ne, %1, %c0_i32_0 : i32
    scf.if %2 {
      %cst_14 = arith.constant 0.000000e+00 : f32
      %30 = vector.broadcast %cst_14 : f32 to vector<2x80xf32>
      %c0_15 = arith.constant 0 : index
      %c0_16 = arith.constant 0 : index
      %31 = vector.load %arg5[%c0_15, %c0_16] : memref<2x80xf32, #tpu.memory_space<vmem>>, vector<2x80xf32>
      tpu.vector_store %arg5[%c0_15, %c0_16], %30 {strides = array<i32>} : memref<2x80xf32, #tpu.memory_space<vmem>>, vector<2x80xf32>,
      %cst_17 = arith.constant 0.000000e+00 : f32
      %32 = vector.broadcast %cst_17 : f32 to vector<2x80xf32>
      %c0_18 = arith.constant 0 : index
      %c0_19 = arith.constant 0 : index
      %33 = vector.load %arg6[%c0_18, %c0_19] : memref<2x80xf32, #tpu.memory_space<vmem>>, vector<2x80xf32>
      tpu.vector_store %arg6[%c0_18, %c0_19], %32 {strides = array<i32>} : memref<2x80xf32, #tpu.memory_space<vmem>>, vector<2x80xf32>,
    } else {
    }
    %c0 = arith.constant 0 : index
    %c0_1 = arith.constant 0 : index
    %c0_2 = arith.constant 0 : index
    %3 = vector.load %arg2[%c0, %c0_1, %c0_2] : memref<2x512x80xbf16, #tpu.memory_space<vmem>>, vector<2x512x80xbf16>
    %4 = arith.extf %3 : vector<2x512x80xbf16> to vector<2x512x80xf32>
    %c2_i32 = arith.constant 2 : i32
    %5 = arith.muli %arg0, %c2_i32 : i32
    %6 = arith.addi %5, %arg1 : i32
    %c512_i32 = arith.constant 512 : i32
    %7 = arith.muli %6, %c512_i32 : i32
    %8 = tpu.iota {dimensions = array<i32: 0>} : vector<512x80xi32>
    %9 = vector.broadcast %7 : i32 to vector<512x80xi32>
    %10 = arith.addi %9, %8 : vector<512x80xi32>
    %11 = vector.shape_cast %10 : vector<512x80xi32> to vector<1x512x80xi32>
    %c1200_i32 = arith.constant 1200 : i32
    %12 = vector.broadcast %c1200_i32 : i32 to vector<1x512x80xi32>
    %13 = arith.cmpi slt, %11, %12 : vector<1x512x80xi32>
    %cst = arith.constant 0.000000e+00 : f32
    %14 = vector.shape_cast %13 : vector<1x512x80xi1> to vector<1x512x80xi1>
    %15 = vector.broadcast %14 : vector<1x512x80xi1> to vector<2x512x80xi1>
    %16 = vector.broadcast %cst : f32 to vector<2x512x80xf32>
    %17 = arith.select %15, %4, %16 : vector<2x512x80xi1>, vector<2x512x80xf32>
    %c0_3 = arith.constant 0 : index
    %c0_4 = arith.constant 0 : index
    %18 = vector.load %arg5[%c0_3, %c0_4] : memref<2x80xf32, #tpu.memory_space<vmem>>, vector<2x80xf32>
    %cst_5 = arith.constant dense<0.000000e+00> : vector<2x80xf32>
    %19 = vector.multi_reduction <add>, %17, %cst_5 [1] : vector<2x512x80xf32> to vector<2x80xf32>
    %20 = arith.addf %18, %19 : vector<2x80xf32>
    %c0_6 = arith.constant 0 : index
    %c0_7 = arith.constant 0 : index
    %21 = vector.load %arg5[%c0_6, %c0_7] : memref<2x80xf32, #tpu.memory_space<vmem>>, vector<2x80xf32>
    tpu.vector_store %arg5[%c0_6, %c0_7], %20 {strides = array<i32>} : memref<2x80xf32, #tpu.memory_space<vmem>>, vector<2x80xf32>,
    %c0_8 = arith.constant 0 : index
    %c0_9 = arith.constant 0 : index
    %22 = vector.load %arg6[%c0_8, %c0_9] : memref<2x80xf32, #tpu.memory_space<vmem>>, vector<2x80xf32>
    %23 = arith.mulf %17, %17 : vector<2x512x80xf32>
    %cst_10 = arith.constant dense<0.000000e+00> : vector<2x80xf32>
    %24 = vector.multi_reduction <add>, %23, %cst_10 [1] : vector<2x512x80xf32> to vector<2x80xf32>
    %25 = arith.addf %22, %24 : vector<2x80xf32>
    %c0_11 = arith.constant 0 : index
    %c0_12 = arith.constant 0 : index
    %26 = vector.load %arg6[%c0_11, %c0_12] : memref<2x80xf32, #tpu.memory_space<vmem>>, vector<2x80xf32>
    tpu.vector_store %arg6[%c0_11, %c0_12], %25 {strides = array<i32>} : memref<2x80xf32, #tpu.memory_space<vmem>>, vector<2x80xf32>,
    %c1_i32 = arith.constant 1 : i32
    %27 = arith.cmpi eq, %arg1, %c1_i32 : i32
    %28 = arith.extui %27 : i1 to i32
    %c0_i32_13 = arith.constant 0 : i32
    %29 = arith.cmpi ne, %28, %c0_i32_13 : i32
    scf.if %29 {
      %c0_14 = arith.constant 0 : index
      %c0_15 = arith.constant 0 : index
      %30 = vector.load %arg5[%c0_14, %c0_15] : memref<2x80xf32, #tpu.memory_space<vmem>>, vector<2x80xf32>
      %31 = vector.shape_cast %30 : vector<2x80xf32> to vector<1x2x80xf32>
      %c0_16 = arith.constant 0 : index
      %c0_17 = arith.constant 0 : index
      %c0_18 = arith.constant 0 : index
      %32 = vector.load %arg3[%c0_16, %c0_17, %c0_18] : memref<1x2x80xf32, #tpu.memory_space<vmem>>, vector<1x2x80xf32>
      tpu.vector_store %arg3[%c0_16, %c0_17, %c0_18], %31 {strides = array<i32>} : memref<1x2x80xf32, #tpu.memory_space<vmem>>, vector<1x2x80xf32>,
      %c0_19 = arith.constant 0 : index
      %c0_20 = arith.constant 0 : index
      %33 = vector.load %arg6[%c0_19, %c0_20] : memref<2x80xf32, #tpu.memory_space<vmem>>, vector<2x80xf32>
      %34 = vector.shape_cast %33 : vector<2x80xf32> to vector<1x2x80xf32>
      %c0_21 = arith.constant 0 : index
      %c0_22 = arith.constant 0 : index
      %c0_23 = arith.constant 0 : index
      %35 = vector.load %arg4[%c0_21, %c0_22, %c0_23] : memref<1x2x80xf32, #tpu.memory_space<vmem>>, vector<1x2x80xf32>
      tpu.vector_store %arg4[%c0_21, %c0_22, %c0_23], %34 {strides = array<i32>} : memref<1x2x80xf32, #tpu.memory_space<vmem>>, vector<1x2x80xf32>,
    } else {
    }
    return
  }
  func.func @transform_0(%arg0: i32, %arg1: i32) -> (i32, i32, i32) {
    %c2_i32 = arith.constant 2 : i32
    %0 = arith.muli %arg0, %c2_i32 : i32
    %1 = arith.addi %0, %arg1 : i32
    %c2_i32_0 = arith.constant 2 : i32
    %2 = arith.minsi %1, %c2_i32_0 : i32
    %c0_i32 = arith.constant 0 : i32
    %c0_i32_1 = arith.constant 0 : i32
    %c0_i32_2 = arith.constant 0 : i32
    return %c0_i32, %2, %c0_i32_1 : i32, i32, i32
  }
  func.func @transform_1(%arg0: i32, %arg1: i32) -> (i32, i32, i32) {
    %c0_i32 = arith.constant 0 : i32
    %c0_i32_0 = arith.constant 0 : i32
    %c0_i32_1 = arith.constant 0 : i32
    return %arg0, %c0_i32, %c0_i32_0 : i32, i32, i32
  }
  func.func @transform_2(%arg0: i32, %arg1: i32) -> (i32, i32, i32) {
    %c0_i32 = arith.constant 0 : i32
    %c0_i32_0 = arith.constant 0 : i32
    %c0_i32_1 = arith.constant 0 : i32
    return %arg0, %c0_i32, %c0_i32_0 : i32, i32, i32
  }
}

</mosaic_0001>

<bundles_post_ra>
// kernel: tpu_custom_call.1
= control target key start
LH: loop header
LB: loop body
LE: loop exit
PB: predicated region body
PF: predicated region fallthrough
CT: control target
= control target key end

     0   :  { %s5456_s0 = inlined_call_operand.vmem [shape: bf16[2,1200,80], index: 0, kind: input, shape index: {}]   ;;  %s5457_s1 = inlined_call_operand.hbm [shape: f32[2,2,80], index: 1, kind: output, shape index: {0}]   ;;  %s5458_s2 = inlined_call_operand.hbm [shape: f32[2,2,80], index: 2, kind: output, shape index: {1}]  }
   0x1   :  { %5751 = sst [smem:[#allocation133_spill]] %s5456_s0 }
   0x2   :  { %8 = vsyncpa [#allocation6], 0 }
   0x3   :  { %10 = vsyncpa [#allocation6 + $0x1], 0 }
   0x4   :  { %11 = vsyncpa [#allocation8], 0 }
   0x5   :  { %13 = vsyncpa [#allocation8 + $0x1], 0  ;;  %s2930_s9 = smov 0   ;;  %s2932_s10 = smov 0  }
   0x6   :  { %s2934_s11 = smov 0   ;;  %s2936_s12 = smov 0  }
   0x7   :  { %s2938_s13 = smov 0   ;;  %s2940_s14 = smov 0  }
   0x8   :  { %s2942_s15 = smov 0   ;;  %s2944_s16 = smov 0  }
   0x9   :  { %s2946_s17 = smov 0   ;;  %s2948_s18 = smov 0  }
   0xa LB: > { %s2193_s19 = sadd.s32 4294967295, %s2878_s18   ;;  %s2194_s20 = sadd.s32 4294967294, %s2878_s18   ;;  %s2878_s18 = sphi %s2948_s18, %s19_s18   ;;  %s2874_s17 = sphi %s2946_s17, %s6398_s17   ;;  %s2870_s16 = sphi %s2944_s16, %s6397_s16   ;;  %s2866_s15 = sphi %s2942_s15, %s6396_s15   ;;  %s2862_s14 = sphi %s2940_s14, %s6395_s14   ;;  %s2858_s13 = sphi %s2938_s13, %s6394_s13   ;;  %s2854_s12 = sphi %s2936_s12, %s6393_s12   ;;  %s2850_s11 = sphi %s2934_s11, %s6392_s11   ;;  %s2846_s10 = sphi %s2932_s10, %s6391_s10   ;;  %s2842_s9 = sphi %s2930_s9, %s6390_s9  }
   0xb   : > { %s28_s21 = sadd.s32 1, %s2870_s16  ;;  %s31_s22 = sadd.s32 1, %s2874_s17 }
   0xc   : > { %p29_p0 = scmp.ge.s32.totalorder %s28_s21, 2  ;;  %s2195_s23 = sshll.u32 %s2874_s17, 1 }
   0xd   : > { %s36_s24 = sadd.s32 %s2870_s16, %s2195_s23  ;;  %s46_s25 = sadd.s32 1, %s2858_s13 }
   0xe   : > { %s6400_s21 = smov (%p29_p0, %s28_s21), 0  ;;  %s6402_s22 = smov (!%p29_p0, %s31_s22), %s2874_s17 }
   0xf   : > { %5752 = sst [smem:[#allocation11_spill]] %s6400_s21  ;;  %p37_p1 = scmp.lt.s32.totalorder %s36_s24, 2 }
  0x10   : > { %p53_p2 = scmp.ne.s32.totalorder %s2858_s13, %s2854_s12  ;;  %p33_p3 = scmp.ge.s32.totalorder %s6402_s22, 2 }
  0x11   : > { %p54_p4 = scmp.eq.s32.totalorder %s2878_s18, 0  ;;  %s6404_s24 = smov (!%p37_p1, %s36_s24), 2 }
  0x12   : > { %s6406_s22 = smov (%p33_p3, %s6402_s22), 0  ;;  %s72_s27 = sadd.s32 1, %s2850_s11 }
  0x13   : > { %5753 = sst [smem:[#allocation12_spill]] %s6406_s22  ;;  %p2997_p5 = por %p54_p4, %p53_p2 }
  0x14   : > { %s2196_s28 = sshll.u32 %s6406_s22, 1  ;;  %s69_s29 = ssub.s32 %s2874_s17, %s6406_s22 }
  0x15   : > { %s40_s30 = sadd.s32 %s2196_s28, %s6400_s21  ;;  %p70_p6 = scmp.eq.s32.totalorder %s69_s29, 0 }
  0x16   : > { %p41_p7 = scmp.lt.s32.totalorder %s40_s30, 2  ;;  %p82_p8 = scmp.ne.s32.totalorder %s2850_s11, %s2846_s10 }
  0x17   : > { %s3009_s3 = scalar_select %p70_p6, %s2850_s11, %s72_s27  }
  0x18   : > { %s6408_s30 = smov (!%p41_p7, %s40_s30), 2  ;;  %p83_p9 = scmp.eq.s32.totalorder %s2193_s19, 3 }
  0x19   : > { %p88_p10 = scmp.ne.s32.totalorder %s2846_s10, %s2842_s9  ;;  %s43_s4 = ssub.s32 %s6404_s24, %s6408_s30 }
  0x1a   : > { %p89_p11 = scmp.eq.s32.totalorder %s2194_s20, 3  ;;  %p44_p12 = scmp.eq.s32.totalorder %s43_s4, 0 }
  0x1b   : > { %p3014_p13 = por %p83_p9, %p82_p8  ;;  %p2198_p1 = scmp.ge.s32.totalorder %s2878_s18, 4 }
  0x1c   : > { %p3018_p0 = por %p89_p11, %p88_p10 }
  0x1d   : > { %s3023_s7 = scalar_select %p44_p12, %s2858_s13, %s46_s25  }
  0x1e   : > { %131 = sbr.rel (%p2198_p1) target bundleno = 121 (0x79), region = 16 }
  0x23   : > { %134 = sbr.rel (!%p2997_p5) target bundleno = 121 (0x79), region = 20  ;;  %s136_s8 = sand.u32 (%p2997_p5), 1, %s2858_s13  }
  0x24   : > { %s2201_s19 = sshll.u32 (%p2997_p5), %s6404_s24, 6  ;;  %s2199_s20 = sshll.u32 (%p2997_p5), %s136_s8, 9 }
  0x25   : > { %s144_s23 = ssub.s32 (%p2997_p5), 150, %s2201_s19  ;;  %s2229_s27 = sshll.u32 (%p2997_p5), %s6404_s24, 8 }
  0x26   : > { %p145_p2 = scmp.lt.s32.totalorder (%p2997_p5), %s144_s23, 64  ;;  %s5757_s0 = sld [smem:[#allocation133_spill]] (%p2997_p5) }
  0x27   : > { %s3039_s26 = scalar_lea.vmem (%p2997_p5), [#allocation4], %s2199_s20  }
  0x28   : > { %s6410_s23 = smov (!%p145_p2, %s144_s23), 64 }
  0x29   : > { %s2202_s30 = sshll.u32 %s6410_s23, 7 }
  0x2a   : > { %p2205_p3 = scmp.eq.s32.totalorder %s2202_s30, 0 }
  0x2b   : > { %s3042_s4 = sshrl.u32 (!%p2205_p3), %s6410_s23, 5 }
  0x2c   : > { %s3036_s29 = scalar_lea.vmem %s5757_s0, %s2229_s27   ;;  %153 = sbr.rel (%p2205_p3) target bundleno = 121 (0x79), region = 24 }
  0x2d   : > { %p2206_p4 = scmp.le.s32.totalorder (!%p2205_p3), %s3042_s4, 0 }
  0x31   : > { %2129 = sbr.rel (%p2206_p4) target bundleno = 104 (0x68), region = 159  ;;  %s5758_s24 = smov (!%p2206_p4), %s3039_s26 }
  0x32   : > { %s5759_s8 = smov (!%p2206_p4), %s3036_s29  ;;  %s3051_s19 = smov (!%p2206_p4), 0  }
  0x33   : > { %s3053_s27 = smov (!%p2206_p4), 0  }
  0x36 LB: >> { %v170_v0 = vld [vmem:[%s2886_s8] sm:$0xf]  ;;  %v172_v1 = vld [vmem:[%s2886_s8 + $0x4] sm:$0xf]  ;;  %v174_v2 = vld [vmem:[%s2886_s8 + $0x8] sm:$0xf]  ;;  %s2894_s27 = sphi %s3053_s27, %s164_s27   ;;  %s2890_s19 = sphi %s3051_s19, %s5760_s19   ;;  %s2886_s8 = sphi %s5759_s8, %s303_s8   ;;  %s2882_s24 = sphi %s5758_s24, %s304_s24  }
  0x37   : >> { %171 = vst [vmem:[%s2882_s24] sm:$0xf] %v170_v0  ;;  %173 = vst [vmem:[%s2882_s24 + $0x4] sm:$0xf] %v172_v1  ;;  %v176_v3 = vld [vmem:[%s2886_s8 + $0xc] sm:$0xf]  ;;  %s298_s20 = sadd.s32 1, %s2890_s19 }
  0x38   : >> { %175 = vst [vmem:[%s2882_s24 + $0x8] sm:$0xf] %v174_v2  ;;  %v178_v4 = vld [vmem:[%s2886_s8 + $0x10] sm:$0xf]  ;;  %v180_v5 = vld [vmem:[%s2886_s8 + $0x14] sm:$0xf]  ;;  %p299_p5 = scmp.ge.s32.totalorder %s298_s20, %s3042_s4 }
  0x39   : >> { %177 = vst [vmem:[%s2882_s24 + $0xc] sm:$0xf] %v176_v3  ;;  %179 = vst [vmem:[%s2882_s24 + $0x10] sm:$0xf] %v178_v4  ;;  %v182_v6 = vld [vmem:[%s2886_s8 + $0x18] sm:$0xf] }
  0x3a   : >> { %181 = vst [vmem:[%s2882_s24 + $0x14] sm:$0xf] %v180_v5  ;;  %v184_v7 = vld [vmem:[%s2886_s8 + $0x1c] sm:$0xf]  ;;  %v186_v8 = vld [vmem:[%s2886_s8 + $0x20] sm:$0xf] }
  0x3b   : >> { %183 = vst [vmem:[%s2882_s24 + $0x18] sm:$0xf] %v182_v6  ;;  %185 = vst [vmem:[%s2882_s24 + $0x1c] sm:$0xf] %v184_v7  ;;  %v188_v9 = vld [vmem:[%s2886_s8 + $0x24] sm:$0xf] }
  0x3c   : >> { %187 = vst [vmem:[%s2882_s24 + $0x20] sm:$0xf] %v186_v8  ;;  %v190_v10 = vld [vmem:[%s2886_s8 + $0x28] sm:$0xf]  ;;  %v192_v11 = vld [vmem:[%s2886_s8 + $0x2c] sm:$0xf] }
  0x3d   : >> { %189 = vst [vmem:[%s2882_s24 + $0x24] sm:$0xf] %v188_v9  ;;  %191 = vst [vmem:[%s2882_s24 + $0x28] sm:$0xf] %v190_v10  ;;  %v194_v12 = vld [vmem:[%s2886_s8 + $0x30] sm:$0xf] }
  0x3e   : >> { %193 = vst [vmem:[%s2882_s24 + $0x2c] sm:$0xf] %v192_v11  ;;  %v196_v13 = vld [vmem:[%s2886_s8 + $0x34] sm:$0xf]  ;;  %v198_v14 = vld [vmem:[%s2886_s8 + $0x38] sm:$0xf] }
  0x3f   : >> { %195 = vst [vmem:[%s2882_s24 + $0x30] sm:$0xf] %v194_v12  ;;  %197 = vst [vmem:[%s2882_s24 + $0x34] sm:$0xf] %v196_v13  ;;  %v200_v15 = vld [vmem:[%s2886_s8 + $0x3c] sm:$0xf] }
  0x40   : >> { %199 = vst [vmem:[%s2882_s24 + $0x38] sm:$0xf] %v198_v14  ;;  %v202_v16 = vld [vmem:[%s2886_s8 + $0x40] sm:$0xf]  ;;  %v204_v17 = vld [vmem:[%s2886_s8 + $0x44] sm:$0xf] }
  0x41   : >> { %201 = vst [vmem:[%s2882_s24 + $0x3c] sm:$0xf] %v200_v15  ;;  %203 = vst [vmem:[%s2882_s24 + $0x40] sm:$0xf] %v202_v16  ;;  %v206_v18 = vld [vmem:[%s2886_s8 + $0x48] sm:$0xf] }
  0x42   : >> { %205 = vst [vmem:[%s2882_s24 + $0x44] sm:$0xf] %v204_v17  ;;  %v208_v19 = vld [vmem:[%s2886_s8 + $0x4c] sm:$0xf]  ;;  %v210_v20 = vld [vmem:[%s2886_s8 + $0x50] sm:$0xf] }
  0x43   : >> { %207 = vst [vmem:[%s2882_s24 + $0x48] sm:$0xf] %v206_v18  ;;  %209 = vst [vmem:[%s2882_s24 + $0x4c] sm:$0xf] %v208_v19  ;;  %v212_v21 = vld [vmem:[%s2886_s8 + $0x54] sm:$0xf] }
  0x44   : >> { %211 = vst [vmem:[%s2882_s24 + $0x50] sm:$0xf] %v210_v20  ;;  %v214_v22 = vld [vmem:[%s2886_s8 + $0x58] sm:$0xf]  ;;  %v216_v23 = vld [vmem:[%s2886_s8 + $0x5c] sm:$0xf] }
  0x45   : >> { %213 = vst [vmem:[%s2882_s24 + $0x54] sm:$0xf] %v212_v21  ;;  %215 = vst [vmem:[%s2882_s24 + $0x58] sm:$0xf] %v214_v22  ;;  %v218_v24 = vld [vmem:[%s2886_s8 + $0x60] sm:$0xf] }
  0x46   : >> { %217 = vst [vmem:[%s2882_s24 + $0x5c] sm:$0xf] %v216_v23  ;;  %v220_v25 = vld [vmem:[%s2886_s8 + $0x64] sm:$0xf]  ;;  %v222_v26 = vld [vmem:[%s2886_s8 + $0x68] sm:$0xf] }
  0x47   : >> { %219 = vst [vmem:[%s2882_s24 + $0x60] sm:$0xf] %v218_v24  ;;  %221 = vst [vmem:[%s2882_s24 + $0x64] sm:$0xf] %v220_v25  ;;  %v224_v27 = vld [vmem:[%s2886_s8 + $0x6c] sm:$0xf] }
  0x48   : >> { %223 = vst [vmem:[%s2882_s24 + $0x68] sm:$0xf] %v222_v26  ;;  %v226_v28 = vld [vmem:[%s2886_s8 + $0x70] sm:$0xf]  ;;  %v228_v29 = vld [vmem:[%s2886_s8 + $0x74] sm:$0xf] }
  0x49   : >> { %225 = vst [vmem:[%s2882_s24 + $0x6c] sm:$0xf] %v224_v27  ;;  %227 = vst [vmem:[%s2882_s24 + $0x70] sm:$0xf] %v226_v28  ;;  %v230_v30 = vld [vmem:[%s2886_s8 + $0x78] sm:$0xf] }
  0x4a   : >> { %229 = vst [vmem:[%s2882_s24 + $0x74] sm:$0xf] %v228_v29  ;;  %v232_v31 = vld [vmem:[%s2886_s8 + $0x7c] sm:$0xf]  ;;  %v234_v32 = vld [vmem:[%s2886_s8 + $0x258] sm:$0xf] }
  0x4b   : >> { %231 = vst [vmem:[%s2882_s24 + $0x78] sm:$0xf] %v230_v30  ;;  %233 = vst [vmem:[%s2882_s24 + $0x7c] sm:$0xf] %v232_v31  ;;  %v236_v33 = vld [vmem:[%s2886_s8 + $0x25c] sm:$0xf] }
  0x4c   : >> { %235 = vst [vmem:[%s2882_s24 + $0x100] sm:$0xf] %v234_v32  ;;  %v238_v34 = vld [vmem:[%s2886_s8 + $0x260] sm:$0xf]  ;;  %v240_v35 = vld [vmem:[%s2886_s8 + $0x264] sm:$0xf] }
  0x4d   : >> { %237 = vst [vmem:[%s2882_s24 + $0x104] sm:$0xf] %v236_v33  ;;  %239 = vst [vmem:[%s2882_s24 + $0x108] sm:$0xf] %v238_v34  ;;  %v242_v36 = vld [vmem:[%s2886_s8 + $0x268] sm:$0xf] }
  0x4e   : >> { %241 = vst [vmem:[%s2882_s24 + $0x10c] sm:$0xf] %v240_v35  ;;  %v244_v37 = vld [vmem:[%s2886_s8 + $0x26c] sm:$0xf]  ;;  %v246_v38 = vld [vmem:[%s2886_s8 + $0x270] sm:$0xf] }
  0x4f   : >> { %243 = vst [vmem:[%s2882_s24 + $0x110] sm:$0xf] %v242_v36  ;;  %245 = vst [vmem:[%s2882_s24 + $0x114] sm:$0xf] %v244_v37  ;;  %v248_v39 = vld [vmem:[%s2886_s8 + $0x274] sm:$0xf] }
  0x50   : >> { %247 = vst [vmem:[%s2882_s24 + $0x118] sm:$0xf] %v246_v38  ;;  %v250_v40 = vld [vmem:[%s2886_s8 + $0x278] sm:$0xf]  ;;  %v252_v41 = vld [vmem:[%s2886_s8 + $0x27c] sm:$0xf] }
  0x51   : >> { %249 = vst [vmem:[%s2882_s24 + $0x11c] sm:$0xf] %v248_v39  ;;  %251 = vst [vmem:[%s2882_s24 + $0x120] sm:$0xf] %v250_v40  ;;  %v254_v42 = vld [vmem:[%s2886_s8 + $0x280] sm:$0xf] }
  0x52   : >> { %253 = vst [vmem:[%s2882_s24 + $0x124] sm:$0xf] %v252_v41  ;;  %v256_v43 = vld [vmem:[%s2886_s8 + $0x284] sm:$0xf]  ;;  %v258_v44 = vld [vmem:[%s2886_s8 + $0x288] sm:$0xf] }
  0x53   : >> { %255 = vst [vmem:[%s2882_s24 + $0x128] sm:$0xf] %v254_v42  ;;  %257 = vst [vmem:[%s2882_s24 + $0x12c] sm:$0xf] %v256_v43  ;;  %v260_v45 = vld [vmem:[%s2886_s8 + $0x28c] sm:$0xf] }
  0x54   : >> { %259 = vst [vmem:[%s2882_s24 + $0x130] sm:$0xf] %v258_v44  ;;  %v262_v46 = vld [vmem:[%s2886_s8 + $0x290] sm:$0xf]  ;;  %v264_v47 = vld [vmem:[%s2886_s8 + $0x294] sm:$0xf] }
  0x55   : >> { %261 = vst [vmem:[%s2882_s24 + $0x134] sm:$0xf] %v260_v45  ;;  %263 = vst [vmem:[%s2882_s24 + $0x138] sm:$0xf] %v262_v46  ;;  %v266_v48 = vld [vmem:[%s2886_s8 + $0x298] sm:$0xf] }
  0x56   : >> { %265 = vst [vmem:[%s2882_s24 + $0x13c] sm:$0xf] %v264_v47  ;;  %v268_v49 = vld [vmem:[%s2886_s8 + $0x29c] sm:$0xf]  ;;  %v270_v50 = vld [vmem:[%s2886_s8 + $0x2a0] sm:$0xf] }
  0x57   : >> { %267 = vst [vmem:[%s2882_s24 + $0x140] sm:$0xf] %v266_v48  ;;  %269 = vst [vmem:[%s2882_s24 + $0x144] sm:$0xf] %v268_v49  ;;  %v272_v51 = vld [vmem:[%s2886_s8 + $0x2a4] sm:$0xf] }
  0x58   : >> { %271 = vst [vmem:[%s2882_s24 + $0x148] sm:$0xf] %v270_v50  ;;  %v274_v52 = vld [vmem:[%s2886_s8 + $0x2a8] sm:$0xf]  ;;  %v276_v53 = vld [vmem:[%s2886_s8 + $0x2ac] sm:$0xf] }
  0x59   : >> { %273 = vst [vmem:[%s2882_s24 + $0x14c] sm:$0xf] %v272_v51  ;;  %275 = vst [vmem:[%s2882_s24 + $0x150] sm:$0xf] %v274_v52  ;;  %v278_v54 = vld [vmem:[%s2886_s8 + $0x2b0] sm:$0xf] }
  0x5a   : >> { %277 = vst [vmem:[%s2882_s24 + $0x154] sm:$0xf] %v276_v53  ;;  %v280_v55 = vld [vmem:[%s2886_s8 + $0x2b4] sm:$0xf]  ;;  %v282_v56 = vld [vmem:[%s2886_s8 + $0x2b8] sm:$0xf] }
  0x5b   : >> { %279 = vst [vmem:[%s2882_s24 + $0x158] sm:$0xf] %v278_v54  ;;  %281 = vst [vmem:[%s2882_s24 + $0x15c] sm:$0xf] %v280_v55  ;;  %v284_v57 = vld [vmem:[%s2886_s8 + $0x2bc] sm:$0xf] }
  0x5c   : >> { %283 = vst [vmem:[%s2882_s24 + $0x160] sm:$0xf] %v282_v56  ;;  %v286_v58 = vld [vmem:[%s2886_s8 + $0x2c0] sm:$0xf]  ;;  %v288_v59 = vld [vmem:[%s2886_s8 + $0x2c4] sm:$0xf] }
  0x5d   : >> { %285 = vst [vmem:[%s2882_s24 + $0x164] sm:$0xf] %v284_v57  ;;  %287 = vst [vmem:[%s2882_s24 + $0x168] sm:$0xf] %v286_v58  ;;  %v290_v60 = vld [vmem:[%s2886_s8 + $0x2c8] sm:$0xf] }
  0x5e   : >> { %289 = vst [vmem:[%s2882_s24 + $0x16c] sm:$0xf] %v288_v59  ;;  %v292_v61 = vld [vmem:[%s2886_s8 + $0x2cc] sm:$0xf]  ;;  %v294_v62 = vld [vmem:[%s2886_s8 + $0x2d0] sm:$0xf] }
  0x5f   : >> { %291 = vst [vmem:[%s2882_s24 + $0x170] sm:$0xf] %v290_v60  ;;  %293 = vst [vmem:[%s2882_s24 + $0x174] sm:$0xf] %v292_v61  ;;  %v296_v63 = vld [vmem:[%s2886_s8 + $0x2d4] sm:$0xf] }
  0x60   : >> { %295 = vst [vmem:[%s2882_s24 + $0x178] sm:$0xf] %v294_v62  ;;  %297 = vst [vmem:[%s2882_s24 + $0x17c] sm:$0xf] %v296_v63  ;;  %s6412_s20 = smov (%p299_p5, %s298_s20), 0  ;;  %s164_s27 = sadd.s32 1, %s2894_s27  }
  0x61   : >> { %s2207_s28 = sshll.u32 %s6412_s20, 7  ;;  %p163_p6 = scmp.ge.s32.totalorder %s164_s27, %s3042_s4 }
  0x62   : >> { %s303_s8 = scalar_lea.vmem %s3036_s29, %s2207_s28   ;;  %s304_s24 = scalar_lea.vmem %s3039_s26, %s2207_s28 [#allocation4]  }
  0x63   : >> { %s5760_s19 = smov %s6412_s20  ;;  %166 = sbr.rel (!%p163_p6) target bundleno = 54 (0x36), region = 165 }
  0x68 PF: > { %s3210_s25 = sand.u32 31, %s6410_s23   ;;  %s2230_s30 = sshll.u32 %s3042_s4, 7 }
  0x69   : > { %s3214_s28 = scalar_lea.vmem %s3036_s29, %s2230_s30   ;;  %s311_s0 = scalar_lea.vmem %s3039_s26, %s2230_s30 [#allocation4]  }
  0x6a   : > { %p2212_p7 = scmp.le.s32.totalorder %s3210_s25, 0 }
  0x6b   : > { %s2896_s22 = smov (!%p2212_p7), %s311_s0   ;;  %s2900_s20 = smov (!%p2212_p7), %s3214_s28  }
  0x6c   : > { %2143 = sbr.rel (%p2212_p7) target bundleno = 121 (0x79), region = 170  ;;  %s2904_s21 = smov (!%p2212_p7), 0  }
  0x6d   : > { %s2908_s27 = smov (!%p2212_p7), 0  }
  0x71 LB: >> { %v321_v0 = vld [vmem:[%s2902_s20] sm:$0xf]  ;;  %v323_v1 = vld [vmem:[%s2902_s20 + $0x258] sm:$0xf]  ;;  %s325_s23 = sadd.s32 1, %s2906_s21  ;;  %s315_s27 = sadd.s32 1, %s2910_s27   ;;  %s2910_s27 = sphi %s2908_s27, %s315_s27   ;;  %s2906_s21 = sphi %s2904_s21, %s2905_s21   ;;  %s2902_s20 = sphi %s2900_s20, %s330_s20   ;;  %s2898_s22 = sphi %s2896_s22, %s331_s22  }
  0x72   : >> { %322 = vst [vmem:[%s2898_s22] sm:$0xf] %v321_v0  ;;  %324 = vst [vmem:[%s2898_s22 + $0x100] sm:$0xf] %v323_v1  ;;  %p326_p8 = scmp.ge.s32.totalorder %s325_s23, %s3210_s25  ;;  %p314_p9 = scmp.ge.s32.totalorder %s315_s27, %s3210_s25 }
  0x74   : >> { %s6414_s23 = smov (%p326_p8, %s325_s23), 0  ;;  %317 = sbr.rel (!%p314_p9) target bundleno = 113 (0x71), region = 176 }
  0x75   : >> { %s2213_s29 = sshll.u32 %s6414_s23, 2  ;;  %s2905_s21 = smov %s6414_s23  }
  0x76   : >> { %s330_s20 = scalar_lea.vmem %s3214_s28, %s2213_s29   ;;  %s331_s22 = scalar_lea.vmem %s311_s0, %s2213_s29 [#allocation4]  }
  0x79 PF: > { %p2215_p10 = scmp.ge.s32.totalorder %s2878_s18, 1  ;;  %p550_p11 = scmp.lt.s32.totalorder %s2878_s18, 5 }
  0x7b   : > { %p551_p12 = pnand %p2215_p10, %p550_p11 }
  0x7d   : > { %554 = sbr.rel (%p551_p12) target bundleno = 557 (0x22d), region = 82 }
  0x82   : > { %s557_s21 = sand.u32 1, %s2854_s12   ;;  %s3226_s26 = sand.u32 1, %s2846_s10  }
  0x83   : > { %s2216_s22 = sshll.u32 %s557_s21, 9  ;;  %s2217_s4 = sshll.u32 %s3226_s26, 1 }
  0x84   : > { %s3229_s24 = scalar_lea.vmem [#allocation4], %s2216_s22  ;;  %s3231_s0 = scalar_lea.vmem [#allocation5], %s2217_s4 }
  0x85   : > { %s3233_s8 = scalar_lea.vmem [#allocation7], %s2217_s4  ;;  %p2219_p1 = scmp.ne.s32.totalorder %s2862_s14, 0 }
  0x87   : > { %595 = sbr.rel (%p2219_p1) target bundleno = 142 (0x8e), region = 90 }
  0x8c   : > { %vm596_vm0 = vcmask 648192   ;;  %v2912_v2 = vmov 0.0  }
  0x8d   : > { %597 = vst.msk [vmem:[#allocation2] sm:$0x3] %vm596_vm0, %v2912_v2  ;;  %598 = vst.msk [vmem:[#allocation3] sm:$0x3] %vm596_vm0, %v2912_v2 }
  0x8e PF: > { %s2220_s12 = sshll.u32 %s2866_s15, 1  ;;  %v858_v3 = vlaneseq  ;;  %v3334_v57 = vld [vmem:[%s3229_s24] sm:$0xff]   ;;  %v3349_v62 = vld [vmem:[%s3229_s24 + $0x8] sm:$0xff]   ;;  %v3352_v63 = vld [vmem:[%s3229_s24 + $0x10] sm:$0xff]   ;;  %vm1309_vm1 = vcmask 654336   ;;  %p2222_p2 = scmp.ne.s32.totalorder %s2862_s14, 1 }
  0x8f   : > { %s856_s19 = sadd.s32 %s2862_s14, %s2220_s12 }
  0x90   : > { %s2221_s25 = sshll.u32 %s856_s19, 9  ;;  %v3238_v4 = vshrl.u32 %v858_v3, 7 }
  0x91   : > { %v3243_v8 = vstv %s2221_s25 }
  0x92   : > { %v892_v5 = vadd.s32 264, %v3238_v4  ;;  %v893_v6 = vadd.s32 272, %v3238_v4  ;;  %v894_v7 = vadd.s32 280, %v3238_v4  ;;  %v895_v9 = vadd.s32 288, %v3238_v4 }
  0x93   : > { %v896_v10 = vadd.s32 296, %v3238_v4  ;;  %v897_v11 = vadd.s32 304, %v3238_v4  ;;  %v898_v12 = vadd.s32 312, %v3238_v4  ;;  %v899_v13 = vadd.s32 320, %v3238_v4 }
  0x94   : > { %v900_v14 = vadd.s32 328, %v3238_v4  ;;  %v901_v15 = vadd.s32 336, %v3238_v4  ;;  %v902_v16 = vadd.s32 344, %v3238_v4  ;;  %v903_v17 = vadd.s32 352, %v3238_v4 }
  0x95   : > { %v904_v18 = vadd.s32 360, %v3238_v4  ;;  %v905_v19 = vadd.s32 368, %v3238_v4  ;;  %v906_v20 = vadd.s32 376, %v3238_v4  ;;  %v907_v21 = vadd.s32 384, %v3238_v4 }
  0x96   : > { %v908_v22 = vadd.s32 392, %v3238_v4  ;;  %v909_v23 = vadd.s32 400, %v3238_v4  ;;  %v910_v24 = vadd.s32 408, %v3238_v4  ;;  %v911_v25 = vadd.s32 416, %v3238_v4 }
  0x97   : > { %v912_v26 = vadd.s32 424, %v3238_v4  ;;  %v913_v27 = vadd.s32 432, %v3238_v4  ;;  %v914_v28 = vadd.s32 440, %v3238_v4  ;;  %v915_v29 = vadd.s32 448, %v3238_v4 }
  0x98   : > { %v916_v30 = vadd.s32 456, %v3238_v4  ;;  %v917_v31 = vadd.s32 464, %v3238_v4  ;;  %v918_v32 = vadd.s32 472, %v3238_v4  ;;  %v919_v33 = vadd.s32 480, %v3238_v4 }
  0x99   : > { %v920_v34 = vadd.s32 488, %v3238_v4  ;;  %v921_v35 = vadd.s32 496, %v3238_v4  ;;  %v922_v36 = vadd.s32 504, %v3238_v4  ;;  %v3274_v37 = vadd.s32 %v3243_v8, %v892_v5  ;;  %v3367_v5 = vld [vmem:[%s3229_s24 + $0x18] sm:$0xff]  }
  0x9a   : > { %v3277_v38 = vadd.s32 %v3243_v8, %v893_v6  ;;  %v3280_v39 = vadd.s32 %v3243_v8, %v894_v7  ;;  %v3283_v40 = vadd.s32 %v3243_v8, %v895_v9  ;;  %v3286_v41 = vadd.s32 %v3243_v8, %v896_v10  ;;  %v3370_v6 = vld [vmem:[%s3229_s24 + $0x20] sm:$0xff]  }
  0x9b   : > { %v3289_v42 = vadd.s32 %v3243_v8, %v897_v11  ;;  %v3292_v43 = vadd.s32 %v3243_v8, %v898_v12  ;;  %v3295_v44 = vadd.s32 %v3243_v8, %v899_v13  ;;  %v3298_v45 = vadd.s32 %v3243_v8, %v900_v14  ;;  %v3384_v13 = vld [vmem:[%s3229_s24 + $0x28] sm:$0xff]   ;;  %v3387_v14 = vld [vmem:[%s3229_s24 + $0x30] sm:$0xff]   ;;  %v3477_v11 = vld [vmem:[%s3229_s24 + $0xc0] sm:$0xff]  }
  0x9c   : > { %5761 = vst [vmem:[#allocation13_spill] sm:$0xff] %v3280_v39  ;;  %5762 = vst [vmem:[#allocation14_spill] sm:$0xff] %v3283_v40  ;;  %v3301_v46 = vadd.s32 %v3243_v8, %v901_v15  ;;  %v3304_v47 = vadd.s32 %v3243_v8, %v902_v16  ;;  %v3307_v48 = vadd.s32 %v3243_v8, %v903_v17  ;;  %v3457_v17 = vld [vmem:[%s3229_s24 + $0xa0] sm:$0xff]   ;;  %v3467_v15 = vld [vmem:[%s3229_s24 + $0xb0] sm:$0xff]  }
  0x9d   : > { %5763 = vst [vmem:[#allocation15_spill] sm:$0xff] %v3292_v43  ;;  %5764 = vst [vmem:[#allocation16_spill] sm:$0xff] %v3295_v44  ;;  %v3310_v49 = vadd.s32 %v3243_v8, %v904_v18  ;;  %v3313_v50 = vadd.s32 %v3243_v8, %v905_v19  ;;  %v3316_v51 = vadd.s32 %v3243_v8, %v906_v20  ;;  %v3394_v19 = vld [vmem:[%s3229_s24 + $0x38] sm:$0xff]   ;;  %v3397_v20 = vld [vmem:[%s3229_s24 + $0x40] sm:$0xff]  }
  0x9e   : > { %5765 = vst [vmem:[#allocation17_spill] sm:$0xff] %v3298_v45  ;;  %5766 = vst [vmem:[#allocation18_spill] sm:$0xff] %v3301_v46  ;;  %v3319_v52 = vadd.s32 %v3243_v8, %v907_v21  ;;  %v3322_v53 = vadd.s32 %v3243_v8, %v908_v22  ;;  %v3325_v54 = vadd.s32 %v3243_v8, %v909_v23  ;;  %v3437_v23 = vld [vmem:[%s3229_s24 + $0x80] sm:$0xff]   ;;  %v3447_v21 = vld [vmem:[%s3229_s24 + $0x90] sm:$0xff]  }
  0x9f   : > { %5767 = vst [vmem:[#allocation19_spill] sm:$0xff] %v3304_v47  ;;  %5768 = vst [vmem:[#allocation20_spill] sm:$0xff] %v3307_v48  ;;  %v3328_v55 = vadd.s32 %v3243_v8, %v910_v24  ;;  %v3331_v56 = vadd.s32 %v3243_v8, %v911_v25  ;;  %v3337_v58 = vadd.s32 %v3243_v8, %v912_v26  ;;  %v3404_v25 = vld [vmem:[%s3229_s24 + $0x48] sm:$0xff]   ;;  %v3407_v26 = vld [vmem:[%s3229_s24 + $0x50] sm:$0xff]   ;;  %v891_v47 = vadd.s32 256, %v3238_v4 }
  0xa0   : > { %5769 = vst [vmem:[#allocation21_spill] sm:$0xff] %v3310_v49  ;;  %5770 = vst [vmem:[#allocation22_spill] sm:$0xff] %v3313_v50  ;;  %v3340_v59 = vadd.s32 %v3243_v8, %v913_v27  ;;  %v3343_v60 = vadd.s32 %v3243_v8, %v914_v28  ;;  %v3346_v61 = vadd.s32 %v3243_v8, %v915_v29  ;;  %v3424_v28 = vld [vmem:[%s3229_s24 + $0x68] sm:$0xff]   ;;  %v3427_v27 = vld [vmem:[%s3229_s24 + $0x70] sm:$0xff]   ;;  %v890_v49 = vadd.s32 248, %v3238_v4 }
  0xa1   : > { %5771 = vst [vmem:[#allocation23_spill] sm:$0xff] %v3316_v51  ;;  %5772 = vst [vmem:[#allocation24_spill] sm:$0xff] %v3319_v52  ;;  %v3355_v0 = vadd.s32 %v3243_v8, %v916_v30  ;;  %v3358_v1 = vadd.s32 %v3243_v8, %v917_v31  ;;  %v3361_v2 = vadd.s32 %v3243_v8, %v918_v32  ;;  %v3414_v31 = vld [vmem:[%s3229_s24 + $0x58] sm:$0xff]   ;;  %v3417_v32 = vld [vmem:[%s3229_s24 + $0x60] sm:$0xff]   ;;  %v886_v52 = vadd.s32 216, %v3238_v4 }
  0xa2   : > { %5773 = vst [vmem:[#allocation25_spill] sm:$0xff] %v3322_v53  ;;  %5774 = vst [vmem:[#allocation26_spill] sm:$0xff] %v3325_v54  ;;  %v3364_v3 = vadd.s32 %v3243_v8, %v919_v33  ;;  %v3373_v7 = vadd.s32 %v3243_v8, %v920_v34  ;;  %v3376_v9 = vadd.s32 %v3243_v8, %v921_v35  ;;  %v3434_v34 = vld [vmem:[%s3229_s24 + $0x78] sm:$0xff]   ;;  %v3444_v29 = vld [vmem:[%s3229_s24 + $0x88] sm:$0xff]   ;;  %v883_v54 = vadd.s32 192, %v3238_v4 }
  0xa3   : > { %5775 = vst [vmem:[#allocation27_spill] sm:$0xff] %v3328_v55  ;;  %5776 = vst [vmem:[#allocation28_spill] sm:$0xff] %v3331_v56  ;;  %v3379_v10 = vadd.s32 %v3243_v8, %v922_v36  ;;  %v3454_v35 = vld [vmem:[%s3229_s24 + $0x98] sm:$0xff]   ;;  %v3464_v33 = vld [vmem:[%s3229_s24 + $0xa8] sm:$0xff]   ;;  %v879_v56 = vadd.s32 160, %v3238_v4  ;;  %v881_v55 = vadd.s32 176, %v3238_v4  ;;  %v3717_v50 = vadd.s32 %v3243_v8, %v3238_v4 }
  0xa4   : > { %5777 = vst [vmem:[#allocation29_spill] sm:$0xff] %v3337_v58  ;;  %5778 = vst [vmem:[#allocation30_spill] sm:$0xff] %v3340_v59  ;;  %v3474_v30 = vld [vmem:[%s3229_s24 + $0xb8] sm:$0xff]   ;;  %v3484_v36 = vld [vmem:[%s3229_s24 + $0xc8] sm:$0xff]   ;;  %v878_v58 = vadd.s32 152, %v3238_v4  ;;  %v884_v53 = vadd.s32 200, %v3238_v4 }
  0xa5   : > { %5779 = vst [vmem:[#allocation31_spill] sm:$0xff] %v3343_v60  ;;  %5780 = vst [vmem:[#allocation32_spill] sm:$0xff] %v3346_v61  ;;  %v3494_v24 = vld [vmem:[%s3229_s24 + $0xd8] sm:$0xff]   ;;  %v3504_v22 = vld [vmem:[%s3229_s24 + $0xe8] sm:$0xff]   ;;  %v888_v51 = vadd.s32 232, %v3238_v4  ;;  %vm5595_vm2 = vcmp.lt.s32.totalorder %v3717_v50, 1200 }
  0xa6   : > { %5781 = vst [vmem:[#allocation33_spill] sm:$0xff] %v3355_v0  ;;  %5782 = vst [vmem:[#allocation34_spill] sm:$0xff] %v3358_v1  ;;  %v3514_v18 = vld [vmem:[%s3229_s24 + $0xf8] sm:$0xff]   ;;  %v3524_v16 = vld [vmem:[%s3229_s24 + $0x108] sm:$0xff]   ;;  %v3830_v43 = vadd.s32 %v3243_v8, %v884_v53 }
  0xa7   : > { %5783 = vst [vmem:[#allocation35_spill] sm:$0xff] %v3361_v2  ;;  %5784 = vst [vmem:[#allocation36_spill] sm:$0xff] %v3364_v3  ;;  %v3497_v3 = vld [vmem:[%s3229_s24 + $0xe0] sm:$0xff]   ;;  %v3534_v12 = vld [vmem:[%s3229_s24 + $0x118] sm:$0xff]  }
  0xa8   : > { %5785 = vst [vmem:[#allocation37_spill] sm:$0xff] %v3373_v7  ;;  %5786 = vst [vmem:[#allocation38_spill] sm:$0xff] %v3376_v9  ;;  %v3487_v9 = vld [vmem:[%s3229_s24 + $0xd0] sm:$0xff]   ;;  %v3554_v7 = vld [vmem:[%s3229_s24 + $0x138] sm:$0xff]  }
  0xa9   : > { %5787 = vst [vmem:[#allocation39_spill] sm:$0xff] %v3379_v10  ;;  %5788 = vst [vmem:[#allocation40_spill] sm:$0xff] %v3414_v31  ;;  %v3544_v10 = vld [vmem:[%s3229_s24 + $0x128] sm:$0xff]   ;;  %v3577_v61 = vld [vmem:[%s3229_s24 + $0x160] sm:$0xff]   ;;  %v5847_v31 = vunpack.c.h.bf16 %v3349_v62 }
  0xaa   : > { %5789 = vst [vmem:[#allocation41_spill] sm:$0xff] %v3417_v32  ;;  %5790 = vst [vmem:[#allocation42_spill] sm:$0xff] %v3424_v28  ;;  %v3564_v2 = vld [vmem:[%s3229_s24 + $0x148] sm:$0xff]   ;;  %v3634_v0 = vld [vmem:[%s3229_s24 + $0x1b8] sm:$0xff]  }
  0xab   : > { %5791 = vst [vmem:[#allocation43_spill] sm:$0xff] %v3427_v27  ;;  %5792 = vst [vmem:[#allocation44_spill] sm:$0xff] %v3434_v34  ;;  %v3624_v1 = vld [vmem:[%s3229_s24 + $0x1a8] sm:$0xff]   ;;  %v3667_v59 = vld [vmem:[%s3229_s24 + $0x1f0] sm:$0xff]   ;;  %v887_v34 = vadd.s32 224, %v3238_v4  ;;  %v889_v27 = vadd.s32 240, %v3238_v4 }
  0xac   : > { %5793 = vst [vmem:[#allocation45_spill] sm:$0xff] %v3437_v23  ;;  %5794 = vst [vmem:[#allocation46_spill] sm:$0xff] %v3444_v29  ;;  %v3644_v60 = vld [vmem:[%s3229_s24 + $0x1c8] sm:$0xff]   ;;  %v880_v29 = vadd.s32 168, %v3238_v4  ;;  %v885_v23 = vadd.s32 208, %v3238_v4 }
  0xad   : > { %5795 = vst [vmem:[#allocation47_spill] sm:$0xff] %v3447_v21  ;;  %5796 = vst [vmem:[#allocation48_spill] sm:$0xff] %v3454_v35  ;;  %v3654_v35 = vld [vmem:[%s3229_s24 + $0x1d8] sm:$0xff]   ;;  %v877_v21 = vadd.s32 144, %v3238_v4 }
  0xae   : > { %5797 = vst [vmem:[#allocation49_spill] sm:$0xff] %v3457_v17  ;;  %5798 = vst [vmem:[#allocation50_spill] sm:$0xff] %v3464_v33  ;;  %v3507_v33 = vld [vmem:[%s3229_s24 + $0xf0] sm:$0xff]  }
  0xaf   : > { %5799 = vst [vmem:[#allocation51_spill] sm:$0xff] %v3467_v15  ;;  %5800 = vst [vmem:[#allocation52_spill] sm:$0xff] %v3474_v30  ;;  %v3517_v30 = vld [vmem:[%s3229_s24 + $0x100] sm:$0xff]   ;;  %v3567_v17 = vld [vmem:[%s3229_s24 + $0x150] sm:$0xff]  }
  0xb0   : > { %5801 = vst [vmem:[#allocation53_spill] sm:$0xff] %v3477_v11  ;;  %5802 = vst [vmem:[#allocation54_spill] sm:$0xff] %v3484_v36  ;;  %v3527_v36 = vld [vmem:[%s3229_s24 + $0x110] sm:$0xff]   ;;  %v3574_v15 = vld [vmem:[%s3229_s24 + $0x158] sm:$0xff]  }
  0xb1   : > { %5803 = vst [vmem:[#allocation55_spill] sm:$0xff] %v3487_v9  ;;  %5804 = vst [vmem:[#allocation56_spill] sm:$0xff] %v3494_v24  ;;  %v3537_v24 = vld [vmem:[%s3229_s24 + $0x120] sm:$0xff]   ;;  %v3584_v11 = vld [vmem:[%s3229_s24 + $0x168] sm:$0xff]  }
  0xb2   : > { %5805 = vst [vmem:[#allocation57_spill] sm:$0xff] %v3497_v3  ;;  %5806 = vst [vmem:[#allocation58_spill] sm:$0xff] %v3504_v22  ;;  %v3547_v22 = vld [vmem:[%s3229_s24 + $0x130] sm:$0xff]   ;;  %v3594_v9 = vld [vmem:[%s3229_s24 + $0x178] sm:$0xff]  }
  0xb3   : > { %5807 = vst [vmem:[#allocation59_spill] sm:$0xff] %v3507_v33  ;;  %5808 = vst [vmem:[#allocation60_spill] sm:$0xff] %v3514_v18  ;;  %v3557_v18 = vld [vmem:[%s3229_s24 + $0x140] sm:$0xff]   ;;  %v3604_v3 = vld [vmem:[%s3229_s24 + $0x188] sm:$0xff]  }
  0xb4   : > { %5809 = vst [vmem:[#allocation61_spill] sm:$0xff] %v3534_v12  ;;  %5810 = vst [vmem:[#allocation62_spill] sm:$0xff] %v3537_v24  ;;  %v3614_v33 = vld [vmem:[%s3229_s24 + $0x198] sm:$0xff]   ;;  %v882_v24 = vadd.s32 184, %v3238_v4 }
  0xb5   : > { %5811 = vst [vmem:[#allocation63_spill] sm:$0xff] %v3544_v10  ;;  %5812 = vst [vmem:[#allocation64_spill] sm:$0xff] %v3547_v22  ;;  %v3587_v10 = vld [vmem:[%s3229_s24 + $0x170] sm:$0xff]   ;;  %v3657_v22 = vld [vmem:[%s3229_s24 + $0x1e0] sm:$0xff]  }
  0xb6   : > { %5813 = vst [vmem:[#allocation65_spill] sm:$0xff] %v3554_v7  ;;  %5814 = vst [vmem:[#allocation66_spill] sm:$0xff] %v3557_v18  ;;  %v3597_v7 = vld [vmem:[%s3229_s24 + $0x180] sm:$0xff]   ;;  %v867_v18 = vadd.s32 64, %v3238_v4 }
  0xb7   : > { %5815 = vst [vmem:[#allocation67_spill] sm:$0xff] %v3564_v2  ;;  %5816 = vst [vmem:[#allocation68_spill] sm:$0xff] %v3567_v17  ;;  %v3607_v2 = vld [vmem:[%s3229_s24 + $0x190] sm:$0xff]   ;;  %v863_v17 = vadd.s32 32, %v3238_v4 }
  0xb8   : > { %5817 = vst [vmem:[#allocation69_spill] sm:$0xff] %v3574_v15  ;;  %5818 = vst [vmem:[#allocation70_spill] sm:$0xff] %v3577_v61  ;;  %v3617_v15 = vld [vmem:[%s3229_s24 + $0x1a0] sm:$0xff]   ;;  %v866_v61 = vadd.s32 56, %v3238_v4 }
  0xb9   : > { %5819 = vst [vmem:[#allocation71_spill] sm:$0xff] %v3584_v11  ;;  %5820 = vst [vmem:[#allocation72_spill] sm:$0xff] %v3587_v10  ;;  %v3627_v11 = vld [vmem:[%s3229_s24 + $0x1b0] sm:$0xff]   ;;  %v3664_v10 = vld [vmem:[%s3229_s24 + $0x1e8] sm:$0xff]   ;;  %v3732_v46 = vadd.s32 %v3243_v8, %v863_v17 }
  0xba   : > { %5821 = vst [vmem:[#allocation73_spill] sm:$0xff] %v3594_v9  ;;  %5822 = vst [vmem:[#allocation74_spill] sm:$0xff] %v3597_v7  ;;  %v3637_v9 = vld [vmem:[%s3229_s24 + $0x1c0] sm:$0xff]   ;;  %v860_v7 = vadd.s32 8, %v3238_v4 }
  0xbb   : > { %5823 = vst [vmem:[#allocation75_spill] sm:$0xff] %v3604_v3  ;;  %5824 = vst [vmem:[#allocation76_spill] sm:$0xff] %v3607_v2  ;;  %v3647_v3 = vld [vmem:[%s3229_s24 + $0x1d0] sm:$0xff]   ;;  %v865_v2 = vadd.s32 48, %v3238_v4  ;;  %vm5590_vm6 = vcmp.lt.s32.totalorder %v3732_v46, 1200 }
  0xbc   : > { %5825 = vst [vmem:[#allocation77_spill] sm:$0xff] %v3614_v33  ;;  %5826 = vst [vmem:[#allocation78_spill] sm:$0xff] %v3617_v15  ;;  %v861_v15 = vadd.s32 16, %v3238_v4  ;;  %v862_v33 = vadd.s32 24, %v3238_v4  ;;  %v3722_v12 = vadd.s32 %v3243_v8, %v860_v7  ;;  %v3741_v7 = vadd.s32 %v3243_v8, %v866_v61 }
  0xbd   : > { %5827 = vst [vmem:[#allocation79_spill] sm:$0xff] %v3624_v1  ;;  %5828 = vst [vmem:[#allocation80_spill] sm:$0xff] %v3627_v11  ;;  %v3674_v1 = vld [vmem:[%s3229_s24 + $0x1f8] sm:$0xff]   ;;  %v868_v11 = vadd.s32 72, %v3238_v4  ;;  %v3738_v45 = vadd.s32 %v3243_v8, %v865_v2 }
  0xbe   : > { %5829 = vst [vmem:[#allocation81_spill] sm:$0xff] %v3634_v0  ;;  %5830 = vst [vmem:[#allocation82_spill] sm:$0xff] %v3637_v9  ;;  %v864_v9 = vadd.s32 40, %v3238_v4  ;;  %v876_v0 = vadd.s32 136, %v3238_v4  ;;  %v3725_v48 = vadd.s32 %v3243_v8, %v861_v15  ;;  %v3729_v28 = vadd.s32 %v3243_v8, %v862_v33 }
  0xbf   : > { %5831 = vst [vmem:[#allocation83_spill] sm:$0xff] %v3644_v60  ;;  %5832 = vst [vmem:[#allocation84_spill] sm:$0xff] %v3647_v3  ;;  %v869_v3 = vadd.s32 80, %v3238_v4  ;;  %v875_v60 = vadd.s32 128, %v3238_v4  ;;  %v3744_v15 = vadd.s32 %v3243_v8, %v867_v18  ;;  %vm5594_vm3 = vcmp.lt.s32.totalorder %v3722_v12, 1200 }
  0xc0   : > { %5833 = vst [vmem:[#allocation85_spill] sm:$0xff] %v3654_v35  ;;  %5834 = vst [vmem:[#allocation86_spill] sm:$0xff] %v3657_v22  ;;  %v873_v22 = vadd.s32 112, %v3238_v4  ;;  %v874_v35 = vadd.s32 120, %v3238_v4  ;;  %v3735_v32 = vadd.s32 %v3243_v8, %v864_v9  ;;  %vm5593_vm4 = vcmp.lt.s32.totalorder %v3725_v48, 1200 }
  0xc1   : > { %5835 = vst [vmem:[#allocation87_spill] sm:$0xff] %v3664_v10  ;;  %5836 = vst [vmem:[#allocation88_spill] sm:$0xff] %v3667_v59  ;;  %v871_v59 = vadd.s32 96, %v3238_v4  ;;  %v872_v10 = vadd.s32 104, %v3238_v4  ;;  %v3750_v33 = vadd.s32 %v3243_v8, %v869_v3  ;;  %v3783_v18 = vadd.s32 %v3243_v8, %v879_v56 }
  0xc2   : > { %5837 = vst [vmem:[#allocation89_spill] sm:$0xff] %v3674_v1  ;;  %v870_v1 = vadd.s32 88, %v3238_v4  ;;  %v3747_v4 = vadd.s32 %v3243_v8, %v868_v11  ;;  %v3763_v2 = vadd.s32 %v3243_v8, %v873_v22  ;;  %v3768_v3 = vadd.s32 %v3243_v8, %v874_v35  ;;  %5849 = vst [vmem:[#allocation97_spill] sm:$0xff] %v3830_v43 }
  0xc3   : > { %v3756_v9 = vadd.s32 %v3243_v8, %v871_v59  ;;  %v3760_v61 = vadd.s32 %v3243_v8, %v872_v10  ;;  %v3774_v59 = vadd.s32 %v3243_v8, %v876_v0  ;;  %v3777_v11 = vadd.s32 %v3243_v8, %v877_v21 }
  0xc4   : > { %v3753_v17 = vadd.s32 %v3243_v8, %v870_v1  ;;  %v3771_v1 = vadd.s32 %v3243_v8, %v875_v60  ;;  %v3780_v10 = vadd.s32 %v3243_v8, %v878_v58  ;;  %vm5592_vm5 = vcmp.lt.s32.totalorder %v3729_v28, 1200 }
  0xc5   : > { %v5838_v22 = vunpack.c.l.bf16 %v3334_v57  ;;  %v3793_v0 = vadd.s32 %v3243_v8, %v880_v29  ;;  %v5840_v21 = vunpack.c.h.bf16 %v3334_v57  ;;  %v5842_v56 = vunpack.c.l.bf16 %v3349_v62 }
  0xc6   : > { %vm5589_vm7 = vcmp.lt.s32.totalorder %v3735_v32, 1200  ;;  %v3842_v62 = vadd.s32 %v3243_v8, %v887_v34  ;;  %vm5591_vm8 = vcmp.lt.s32.totalorder %v3738_v45, 1200  ;;  %v3860_v34 = vadd.s32 %v3243_v8, %v890_v49 }
  0xc7   : > { %v3790_v60 = vsel %vm5595_vm2, %v5838_v22, 0.0  ;;  %v3799_v58 = vsel %vm5594_vm3, %v5840_v21, 0.0  ;;  %v3805_v35 = vsel %vm5593_vm4, %v5842_v56, 0.0  ;;  %v3810_v22 = vadd.s32 %v3243_v8, %v881_v55 }
  0xc8   : > { %5839 = vst [vmem:[#allocation90_spill] sm:$0xff] %v3790_v60  ;;  %5841 = vst [vmem:[#allocation91_spill] sm:$0xff] %v3799_v58  ;;  %v1310_v44 = vsel %vm1309_vm1, %v3790_v60, 0.0  ;;  %v1311_v57 = vsel %vm1309_vm1, %v3799_v58, 0.0  ;;  %v1313_v29 = vsel %vm1309_vm1, %v3805_v35, 0.0  ;;  %v3818_v21 = vadd.s32 %v3243_v8, %v882_v24 }
  0xc9   : > { %5843 = vst [vmem:[#allocation92_spill] sm:$0xff] %v3805_v35  ;;  %5844 = vst [vmem:[#allocation93_spill] sm:$0xff] %v3810_v22  ;;  %v3821_v56 = vadd.s32 %v3243_v8, %v883_v54  ;;  %v3827_v55 = vsel %vm5592_vm5, %v5847_v31, 0.0  ;;  %v1312_v60 = vadd.f32 %v1311_v57, %v1310_v44  ;;  %v3833_v58 = vadd.s32 %v3243_v8, %v885_v23 }
  0xca   : > { %5845 = vst [vmem:[#allocation94_spill] sm:$0xff] %v3818_v21  ;;  %5848 = vst [vmem:[#allocation96_spill] sm:$0xff] %v3827_v55  ;;  %v1315_v24 = vsel %vm1309_vm1, %v3827_v55, 0.0  ;;  %v3839_v54 = vadd.s32 %v3243_v8, %v886_v52  ;;  %v5853_v31 = vunpack.c.l.bf16 %v3352_v63  ;;  %v3851_v23 = vadd.s32 %v3243_v8, %v888_v51 }
  0xcb   : > { %5846 = vst [vmem:[#allocation95_spill] sm:$0xff] %v3821_v56  ;;  %5850 = vst [vmem:[#allocation98_spill] sm:$0xff] %v3833_v58  ;;  %v1314_v53 = vadd.f32 %v1313_v29, %v1312_v60  ;;  %v3854_v57 = vadd.s32 %v3243_v8, %v889_v27  ;;  %v3863_v55 = vadd.s32 %v3243_v8, %v891_v47  ;;  %vm5596_vm9 = vcmp.lt.s32.totalorder %v3741_v7, 1200 }
  0xcc   : > { %5851 = vst [vmem:[#allocation99_spill] sm:$0xff] %v3839_v54  ;;  %5852 = vst [vmem:[#allocation100_spill] sm:$0xff] %v3842_v62  ;;  %v3848_v44 = vsel %vm5590_vm6, %v5853_v31, 0.0  ;;  %v5857_v31 = vunpack.c.h.bf16 %v3352_v63  ;;  %vm5597_vm10 = vcmp.lt.s32.totalorder %v3744_v15, 1200  ;;  %vm5599_vm11 = vcmp.lt.s32.totalorder %v3747_v4, 1200 }
  0xcd   : > { %5854 = vst [vmem:[#allocation101_spill] sm:$0xff] %v3848_v44  ;;  %5855 = vst [vmem:[#allocation102_spill] sm:$0xff] %v3851_v23  ;;  %v1317_v52 = vsel %vm1309_vm1, %v3848_v44, 0.0  ;;  %v1316_v60 = vadd.f32 %v1315_v24, %v1314_v53  ;;  %vm5611_vm12 = vcmp.lt.s32.totalorder %v3750_v33, 1200  ;;  %vm5601_vm13 = vcmp.lt.s32.totalorder %v3753_v17, 1200  ;;  %v5924_v44 = vld [vmem:[#allocation18_spill] sm:$0xff] }
  0xce   : > { %5856 = vst [vmem:[#allocation103_spill] sm:$0xff] %v3854_v57  ;;  %v3869_v51 = vsel %vm5589_vm7, %v5857_v31, 0.0  ;;  %v5859_v8 = vunpack.c.l.bf16 %v3367_v5  ;;  %vm5610_vm14 = vcmp.lt.s32.totalorder %v3756_v9, 1200  ;;  %vm5606_vm15 = vcmp.lt.s32.totalorder %v3760_v61, 1200 }
  0xcf   : > { %5858 = vst [vmem:[#allocation104_spill] sm:$0xff] %v3869_v51  ;;  %v1319_v49 = vsel %vm1309_vm1, %v3869_v51, 0.0  ;;  %v1318_v63 = vadd.f32 %v1317_v52, %v1316_v60  ;;  %vm5604_vm0 = vcmp.lt.s32.totalorder %v3763_v2, 1200  ;;  %vm5605_vm7 = vcmp.lt.s32.totalorder %v3768_v3, 1200 }
  0xd0   : > { %v3882_v47 = vsel %vm5591_vm8, %v5859_v8, 0.0  ;;  %vm5607_vm6 = vcmp.lt.s32.totalorder %v3771_v1, 1200  ;;  %v5861_v29 = vunpack.c.h.bf16 %v3367_v5  ;;  %vm5608_vm8 = vcmp.lt.s32.totalorder %v3774_v59, 1200 }
  0xd1   : > { %5860 = vst [vmem:[#allocation105_spill] sm:$0xff] %v3882_v47  ;;  %v1321_v27 = vsel %vm1309_vm1, %v3882_v47, 0.0  ;;  %v1320_v53 = vadd.f32 %v1319_v49, %v1318_v63  ;;  %v5863_v5 = vunpack.c.l.bf16 %v3370_v6  ;;  %vm5618_vm5 = vcmp.lt.s32.totalorder %v3818_v21, 1200  ;;  %v5927_v21 = vld [vmem:[#allocation42_spill] sm:$0xff] }
  0xd2   : > { %v3895_v24 = vsel %vm5596_vm9, %v5861_v29, 0.0  ;;  %vm5622_vm9 = vcmp.lt.s32.totalorder %v3810_v22, 1200  ;;  %vm5627_vm4 = vcmp.lt.s32.totalorder %v3821_v56, 1200  ;;  %vm5630_vm3 = vcmp.lt.s32.totalorder %v3830_v43, 1200 }
  0xd3   : > { %5862 = vst [vmem:[#allocation106_spill] sm:$0xff] %v3895_v24  ;;  %v1323_v52 = vsel %vm1309_vm1, %v3895_v24, 0.0  ;;  %v3908_v31 = vsel %vm5597_vm10, %v5863_v5, 0.0  ;;  %v1322_v60 = vadd.f32 %v1321_v27, %v1320_v53  ;;  %v5865_v8 = vunpack.c.h.bf16 %v3370_v6 }
  0xd4   : > { %5864 = vst [vmem:[#allocation107_spill] sm:$0xff] %v3908_v31  ;;  %v1325_v49 = vsel %vm1309_vm1, %v3908_v31, 0.0  ;;  %vm5634_vm10 = vcmp.lt.s32.totalorder %v3839_v54, 1200  ;;  %v5867_v29 = vunpack.c.l.bf16 %v3384_v13  ;;  %v5869_v5 = vunpack.c.h.bf16 %v3384_v13  ;;  %v5956_v54 = vld [vmem:[#allocation45_spill] sm:$0xff] }
  0xd5   : > { %v3921_v63 = vsel %vm5599_vm11, %v5865_v8, 0.0  ;;  %v1324_v27 = vadd.f32 %v1323_v52, %v1322_v60  ;;  %vm5639_vm11 = vcmp.lt.s32.totalorder %v3842_v62, 1200  ;;  %vm5635_vm2 = vcmp.lt.s32.totalorder %v3851_v23, 1200 }
  0xd6   : > { %5866 = vst [vmem:[#allocation108_spill] sm:$0xff] %v3921_v63  ;;  %v3928_v53 = vsel %vm5611_vm12, %v5867_v29, 0.0  ;;  %v3934_v31 = vsel %vm5601_vm13, %v5869_v5, 0.0  ;;  %v1327_v6 = vsel %vm1309_vm1, %v3921_v63, 0.0  ;;  %v5871_v52 = vunpack.c.l.bf16 %v3387_v14 }
  0xd7   : > { %5868 = vst [vmem:[#allocation109_spill] sm:$0xff] %v3928_v53  ;;  %5870 = vst [vmem:[#allocation110_spill] sm:$0xff] %v3934_v31  ;;  %v5873_v8 = vunpack.c.h.bf16 %v3387_v14  ;;  %v5875_v29 = vunpack.c.l.bf16 %v3394_v19  ;;  %v1326_v63 = vadd.f32 %v1325_v49, %v1324_v27  ;;  %vm5644_vm13 = vcmp.lt.s32.totalorder %v3854_v57, 1200 }
  0xd8   : > { %v3944_v60 = vsel %vm5610_vm14, %v5871_v52, 0.0  ;;  %v5877_v24 = vunpack.c.h.bf16 %v3394_v19  ;;  %v5879_v14 = vunpack.c.l.bf16 %v3397_v20  ;;  %v5881_v47 = vunpack.c.h.bf16 %v3397_v20 }
  0xd9   : > { %5872 = vst [vmem:[#allocation111_spill] sm:$0xff] %v3944_v60  ;;  %v3950_v13 = vsel %vm5606_vm15, %v5873_v8, 0.0  ;;  %v3956_v5 = vsel %vm5604_vm0, %v5875_v29, 0.0  ;;  %v1329_v49 = vsel %vm1309_vm1, %v3928_v53, 0.0  ;;  %vm5645_vm0 = vcmp.lt.s32.totalorder %v3860_v34, 1200 }
  0xda   : > { %5874 = vst [vmem:[#allocation112_spill] sm:$0xff] %v3950_v13  ;;  %5876 = vst [vmem:[#allocation113_spill] sm:$0xff] %v3956_v5  ;;  %v3963_v52 = vsel %vm5605_vm7, %v5877_v24, 0.0  ;;  %v3969_v8 = vsel %vm5607_vm6, %v5879_v14, 0.0  ;;  %v3975_v29 = vsel %vm5608_vm8, %v5881_v47, 0.0  ;;  %vm5646_vm7 = vcmp.lt.s32.totalorder %v3863_v55, 1200 }
  0xdb   : > { %5878 = vst [vmem:[#allocation114_spill] sm:$0xff] %v3963_v52  ;;  %5880 = vst [vmem:[#allocation115_spill] sm:$0xff] %v3969_v8  ;;  %v5883_v19 = vunpack.c.l.bf16 %v3517_v30  ;;  %vm5884_vm15 = vcmp.lt.s32.totalorder %v3717_v50, 1200  ;;  %v5886_v27 = vunpack.c.h.bf16 %v3517_v30  ;;  %vm5887_vm6 = vcmp.lt.s32.totalorder %v3722_v12, 1200 }
  0xdc   : > { %5882 = vst [vmem:[#allocation116_spill] sm:$0xff] %v3975_v29  ;;  %v5889_v47 = vunpack.c.l.bf16 %v3524_v16  ;;  %vm5890_vm8 = vcmp.lt.s32.totalorder %v3725_v48, 1200  ;;  %v1328_v53 = vadd.f32 %v1327_v6, %v1326_v63  ;;  %v1331_v50 = vsel %vm1309_vm1, %v3934_v31, 0.0 }
  0xdd   : > { %v3985_v24 = vsel %vm5884_vm15, %v5883_v19, 0.0  ;;  %v3991_v20 = vsel %vm5887_vm6, %v5886_v27, 0.0  ;;  %v5892_v48 = vunpack.c.l.bf16 %v3404_v25  ;;  %vm5893_vm15 = vcmp.lt.s32.totalorder %v3777_v11, 1200 }
  0xde   : > { %5885 = vst [vmem:[#allocation117_spill] sm:$0xff] %v3985_v24  ;;  %5888 = vst [vmem:[#allocation118_spill] sm:$0xff] %v3991_v20  ;;  %v3997_v14 = vsel %vm5890_vm8, %v5889_v47, 0.0  ;;  %v1443_v19 = vsel %vm1309_vm1, %v3985_v24, 0.0  ;;  %v1444_v12 = vsel %vm1309_vm1, %v3991_v20, 0.0  ;;  %v5895_v6 = vunpack.c.h.bf16 %v3524_v16 }
  0xdf   : > { %5891 = vst [vmem:[#allocation119_spill] sm:$0xff] %v3997_v14  ;;  %v1446_v30 = vsel %vm1309_vm1, %v3997_v14, 0.0  ;;  %v4014_v63 = vsel %vm5893_vm15, %v5892_v48, 0.0  ;;  %vm5896_vm12 = vcmp.lt.s32.totalorder %v3729_v28, 1200  ;;  %v1330_v47 = vadd.f32 %v1329_v49, %v1328_v53 }
  0xe0   : > { %5894 = vst [vmem:[#allocation120_spill] sm:$0xff] %v4014_v63  ;;  %v4020_v27 = vsel %vm5896_vm12, %v5895_v6, 0.0  ;;  %v1445_v20 = vadd.f32 %v1444_v12, %v1443_v19  ;;  %v5898_v14 = vunpack.c.h.bf16 %v3404_v25  ;;  %vm5899_vm8 = vcmp.lt.s32.totalorder %v3780_v10, 1200  ;;  %v5910_v12 = vld [vmem:[#allocation15_spill] sm:$0xff]  ;;  %v5911_v6 = vld [vmem:[#allocation40_spill] sm:$0xff] }
  0xe1   : > { %5897 = vst [vmem:[#allocation121_spill] sm:$0xff] %v4020_v27  ;;  %v5901_v31 = vunpack.c.l.bf16 %v3407_v26  ;;  %vm5902_vm15 = vcmp.lt.s32.totalorder %v3783_v18, 1200  ;;  %v1333_v16 = vsel %vm1309_vm1, %v3944_v60, 0.0  ;;  %v1448_v28 = vsel %vm1309_vm1, %v4020_v27, 0.0 }
  0xe2   : > { %v4027_v24 = vsel %vm5899_vm8, %v5898_v14, 0.0  ;;  %vm5662_vm12 = vcmp.lt.s32.totalorder %v3286_v41, 1200  ;;  %vm5659_vm14 = vcmp.lt.s32.totalorder %v3289_v42, 1200  ;;  %v5904_v25 = vunpack.c.h.bf16 %v3407_v26 }
  0xe3   : > { %5900 = vst [vmem:[#allocation122_spill] sm:$0xff] %v4027_v24  ;;  %v4033_v48 = vsel %vm5902_vm15, %v5901_v31, 0.0  ;;  %vm5905_vm8 = vcmp.lt.s32.totalorder %v3793_v0, 1200  ;;  %v5907_v49 = vunpack.c.l.bf16 %v3527_v36  ;;  %vm5908_vm15 = vcmp.lt.s32.totalorder %v3732_v46, 1200 }
  0xe4   : > { %5903 = vst [vmem:[#allocation123_spill] sm:$0xff] %v4033_v48  ;;  %v4045_v53 = vsel %vm5905_vm8, %v5904_v25, 0.0  ;;  %v1332_v14 = vadd.f32 %v1331_v50, %v1330_v47  ;;  %v1447_v19 = vadd.f32 %v1446_v30, %v1445_v20  ;;  %vm5666_vm6 = vcmp.lt.s32.totalorder %v5910_v12, 1200  ;;  %v5916_v50 = vld [vmem:[#allocation16_spill] sm:$0xff]  ;;  %v5917_v30 = vld [vmem:[#allocation17_spill] sm:$0xff] }
  0xe5   : > { %5906 = vst [vmem:[#allocation124_spill] sm:$0xff] %v4045_v53  ;;  %v4051_v31 = vsel %vm5908_vm15, %v5907_v49, 0.0  ;;  %v5912_v27 = vunpack.c.l.bf16 %v5911_v6  ;;  %v5914_v26 = vunpack.c.h.bf16 %v5911_v6  ;;  %v1335_v46 = vsel %vm1309_vm1, %v3950_v13, 0.0  ;;  %v5918_v47 = vld [vmem:[#allocation41_spill] sm:$0xff] }
  0xe6   : > { %5909 = vst [vmem:[#allocation125_spill] sm:$0xff] %v4051_v31  ;;  %v1450_v20 = vsel %vm1309_vm1, %v4051_v31, 0.0  ;;  %vm5667_vm8 = vcmp.lt.s32.totalorder %v5916_v50, 1200  ;;  %vm5668_vm15 = vcmp.lt.s32.totalorder %v5917_v30, 1200  ;;  %v5919_v49 = vunpack.c.l.bf16 %v5918_v47  ;;  %v6017_v30 = vld [vmem:[#allocation51_spill] sm:$0xff] }
  0xe7   : > { %v4058_v60 = vsel %vm5622_vm9, %v5912_v27, 0.0  ;;  %v4064_v25 = vsel %vm5618_vm5, %v5914_v26, 0.0  ;;  %v5921_v6 = vunpack.c.h.bf16 %v3527_v36  ;;  %vm5922_vm5 = vcmp.lt.s32.totalorder %v3735_v32, 1200 }
  0xe8   : > { %5913 = vst [vmem:[#allocation15_spill] sm:$0xff] %v4058_v60  ;;  %5915 = vst [vmem:[#allocation40_spill] sm:$0xff] %v4064_v25  ;;  %v4076_v27 = vsel %vm5627_vm4, %v5919_v49, 0.0  ;;  %v1334_v13 = vadd.f32 %v1333_v16, %v1332_v14  ;;  %v1449_v51 = vadd.f32 %v1448_v28, %v1447_v19  ;;  %v5925_v31 = vunpack.c.h.bf16 %v5918_v47  ;;  %v5931_v16 = vld [vmem:[#allocation19_spill] sm:$0xff]  ;;  %v5932_v28 = vld [vmem:[#allocation20_spill] sm:$0xff] }
  0xe9   : > { %5920 = vst [vmem:[#allocation16_spill] sm:$0xff] %v4076_v27  ;;  %v4082_v26 = vsel %vm5922_vm5, %v5921_v6, 0.0  ;;  %v5928_v56 = vunpack.c.l.bf16 %v5927_v21  ;;  %vm5929_vm4 = vcmp.lt.s32.totalorder %v3833_v58, 1200  ;;  %v1337_v32 = vsel %vm1309_vm1, %v3956_v5, 0.0  ;;  %v5935_v19 = vld [vmem:[#allocation61_spill] sm:$0xff] }
  0xea   : > { %5923 = vst [vmem:[#allocation41_spill] sm:$0xff] %v4082_v26  ;;  %v4089_v35 = vsel %vm5630_vm3, %v5925_v31, 0.0  ;;  %v1452_v36 = vsel %vm1309_vm1, %v4082_v26, 0.0  ;;  %vm5679_vm5 = vcmp.lt.s32.totalorder %v5931_v16, 1200  ;;  %vm5676_vm9 = vcmp.lt.s32.totalorder %v5932_v28, 1200  ;;  %v5939_v58 = vld [vmem:[#allocation21_spill] sm:$0xff] }
  0xeb   : > { %5926 = vst [vmem:[#allocation126_spill] sm:$0xff] %v4089_v35  ;;  %v4095_v49 = vsel %vm5929_vm4, %v5928_v56, 0.0  ;;  %v5933_v14 = vunpack.c.h.bf16 %v5927_v21  ;;  %v5936_v47 = vunpack.c.l.bf16 %v5935_v19  ;;  %vm5937_vm4 = vcmp.lt.s32.totalorder %v3738_v45, 1200  ;;  %v5940_v26 = vld [vmem:[#allocation43_spill] sm:$0xff] }
  0xec   : > { %5930 = vst [vmem:[#allocation42_spill] sm:$0xff] %v4095_v49  ;;  %v1336_v6 = vadd.f32 %v1335_v46, %v1334_v13  ;;  %v1451_v5 = vadd.f32 %v1450_v20, %v1449_v51  ;;  %vm5689_vm3 = vcmp.lt.s32.totalorder %v5939_v58, 1200  ;;  %v5941_v43 = vunpack.c.l.bf16 %v5940_v26  ;;  %v5945_v13 = vld [vmem:[#allocation22_spill] sm:$0xff]  ;;  %v5946_v46 = vld [vmem:[#allocation23_spill] sm:$0xff]  ;;  %v5947_v20 = vld [vmem:[#allocation44_spill] sm:$0xff] }
  0xed   : > { %v4107_v31 = vsel %vm5634_vm10, %v5933_v14, 0.0  ;;  %v4113_v56 = vsel %vm5937_vm4, %v5936_v47, 0.0  ;;  %v5943_v21 = vunpack.c.h.bf16 %v5940_v26  ;;  %v1339_v45 = vsel %vm1309_vm1, %v3963_v52, 0.0 }
  0xee   : > { %5934 = vst [vmem:[#allocation19_spill] sm:$0xff] %v4107_v31  ;;  %5938 = vst [vmem:[#allocation20_spill] sm:$0xff] %v4113_v56  ;;  %v4120_v22 = vsel %vm5639_vm11, %v5941_v43, 0.0  ;;  %v1454_v51 = vsel %vm1309_vm1, %v4113_v56, 0.0  ;;  %vm5683_vm4 = vcmp.lt.s32.totalorder %v5945_v13, 1200  ;;  %vm5685_vm10 = vcmp.lt.s32.totalorder %v5946_v46, 1200 }
  0xef   : > { %5942 = vst [vmem:[#allocation61_spill] sm:$0xff] %v4120_v22  ;;  %v4126_v14 = vsel %vm5635_vm2, %v5943_v21, 0.0  ;;  %v5948_v47 = vunpack.c.l.bf16 %v5947_v20  ;;  %v5950_v26 = vunpack.c.h.bf16 %v5935_v19  ;;  %vm5951_vm2 = vcmp.lt.s32.totalorder %v3741_v7, 1200 }
  0xf0   : > { %5944 = vst [vmem:[#allocation21_spill] sm:$0xff] %v4126_v14  ;;  %v1338_v52 = vadd.f32 %v1337_v32, %v1336_v6  ;;  %v1453_v23 = vadd.f32 %v1452_v36, %v1451_v5  ;;  %v5953_v14 = vld [vmem:[#allocation24_spill] sm:$0xff]  ;;  %v5954_v56 = vunpack.c.h.bf16 %v5947_v20  ;;  %v5957_v57 = vunpack.c.l.bf16 %v5956_v54  ;;  %v5959_v32 = vld [vmem:[#allocation25_spill] sm:$0xff]  ;;  %v5960_v36 = vld [vmem:[#allocation26_spill] sm:$0xff] }
  0xf1   : > { %v4138_v43 = vsel %vm5644_vm13, %v5948_v47, 0.0  ;;  %v4144_v21 = vsel %vm5951_vm2, %v5950_v26, 0.0  ;;  %v1341_v7 = vsel %vm1309_vm1, %v3969_v8, 0.0  ;;  %v5961_v19 = vunpack.c.h.bf16 %v5956_v54  ;;  %v5964_v6 = vld [vmem:[#allocation62_spill] sm:$0xff] }
  0xf2   : > { %5949 = vst [vmem:[#allocation43_spill] sm:$0xff] %v4138_v43  ;;  %5952 = vst [vmem:[#allocation22_spill] sm:$0xff] %v4144_v21  ;;  %v4151_v62 = vsel %vm5645_vm0, %v5954_v56, 0.0  ;;  %v4157_v47 = vsel %vm5646_vm7, %v5957_v57, 0.0  ;;  %v1456_v5 = vsel %vm1309_vm1, %v4144_v21, 0.0  ;;  %vm5962_vm0 = vcmp.lt.s32.totalorder %v3274_v37, 1200 }
  0xf3   : > { %5955 = vst [vmem:[#allocation23_spill] sm:$0xff] %v4151_v62  ;;  %5958 = vst [vmem:[#allocation44_spill] sm:$0xff] %v4157_v47  ;;  %v4169_v56 = vsel %vm5962_vm0, %v5961_v19, 0.0  ;;  %v5965_v20 = vunpack.c.l.bf16 %v5964_v6  ;;  %vm5966_vm7 = vcmp.lt.s32.totalorder %v3744_v15, 1200  ;;  %v1340_v26 = vadd.f32 %v1339_v45, %v1338_v52  ;;  %v5968_v47 = vld [vmem:[#allocation27_spill] sm:$0xff]  ;;  %v5969_v21 = vld [vmem:[#allocation46_spill] sm:$0xff] }
  0xf4   : > { %5963 = vst [vmem:[#allocation24_spill] sm:$0xff] %v4169_v56  ;;  %v1455_v8 = vadd.f32 %v1454_v51, %v1453_v23  ;;  %v5970_v62 = vunpack.c.l.bf16 %v5969_v21  ;;  %vm5971_vm13 = vcmp.lt.s32.totalorder %v3277_v38, 1200  ;;  %v5973_v54 = vunpack.c.h.bf16 %v5969_v21  ;;  %v5976_v52 = vld [vmem:[#allocation28_spill] sm:$0xff]  ;;  %v5977_v45 = vld [vmem:[#allocation29_spill] sm:$0xff]  ;;  %v5978_v51 = vld [vmem:[#allocation47_spill] sm:$0xff] }
  0xf5   : > { %v4175_v57 = vsel %vm5966_vm7, %v5965_v20, 0.0  ;;  %vm5974_vm0 = vcmp.lt.s32.totalorder %v3280_v39, 1200  ;;  %v1343_v15 = vsel %vm1309_vm1, %v3975_v29, 0.0  ;;  %vm1040_vm7 = vcmp.lt.s32.totalorder %v5976_v52, 1200  ;;  %v5988_v39 = vld [vmem:[#allocation48_spill] sm:$0xff] }
  0xf6   : > { %5967 = vst [vmem:[#allocation45_spill] sm:$0xff] %v4175_v57  ;;  %v4182_v43 = vsel %vm5971_vm13, %v5970_v62, 0.0  ;;  %v4188_v19 = vsel %vm5974_vm0, %v5973_v54, 0.0  ;;  %v1458_v23 = vsel %vm1309_vm1, %v4175_v57, 0.0  ;;  %vm1041_vm11 = vcmp.lt.s32.totalorder %v5977_v45, 1200 }
  0xf7   : > { %5972 = vst [vmem:[#allocation25_spill] sm:$0xff] %v4182_v43  ;;  %5975 = vst [vmem:[#allocation26_spill] sm:$0xff] %v4188_v19  ;;  %v5979_v20 = vunpack.c.l.bf16 %v5978_v51  ;;  %vm5980_vm13 = vcmp.lt.s32.totalorder %v3283_v40, 1200  ;;  %v5982_v21 = vunpack.c.h.bf16 %v5964_v6  ;;  %vm5983_vm0 = vcmp.lt.s32.totalorder %v3747_v4, 1200  ;;  %v5985_v43 = vld [vmem:[#allocation30_spill] sm:$0xff] }
  0xf8   : > { %v1342_v29 = vadd.f32 %v1341_v7, %v1340_v26  ;;  %v1457_v19 = vadd.f32 %v1456_v5, %v1455_v8  ;;  %vm1042_vm2 = vcmp.lt.s32.totalorder %v5985_v43, 1200  ;;  %v5986_v57 = vunpack.c.h.bf16 %v5978_v51  ;;  %v5991_v7 = vld [vmem:[#allocation31_spill] sm:$0xff]  ;;  %v5992_v5 = vld [vmem:[#allocation32_spill] sm:$0xff] }
  0xf9   : > { %v4200_v62 = vsel %vm5980_vm13, %v5979_v20, 0.0  ;;  %v4206_v54 = vsel %vm5983_vm0, %v5982_v21, 0.0  ;;  %v5989_v40 = vunpack.c.l.bf16 %v5988_v39  ;;  %v1345_v4 = vsel %vm1309_vm1, %v4014_v63, 0.0  ;;  %v5995_v26 = vld [vmem:[#allocation63_spill] sm:$0xff] }
  0xfa   : > { %5981 = vst [vmem:[#allocation62_spill] sm:$0xff] %v4200_v62  ;;  %5984 = vst [vmem:[#allocation27_spill] sm:$0xff] %v4206_v54  ;;  %v4213_v56 = vsel %vm5662_vm12, %v5986_v57, 0.0  ;;  %v1460_v8 = vsel %vm1309_vm1, %v4206_v54, 0.0  ;;  %vm1043_vm13 = vcmp.lt.s32.totalorder %v5991_v7, 1200  ;;  %vm1044_vm0 = vcmp.lt.s32.totalorder %v5992_v5, 1200 }
  0xfb   : > { %5987 = vst [vmem:[#allocation46_spill] sm:$0xff] %v4213_v56  ;;  %v4219_v20 = vsel %vm5659_vm14, %v5989_v40, 0.0  ;;  %v5993_v6 = vunpack.c.h.bf16 %v5988_v39  ;;  %v5996_v51 = vunpack.c.l.bf16 %v5995_v26  ;;  %vm5997_vm14 = vcmp.lt.s32.totalorder %v3750_v33, 1200  ;;  %v6000_v54 = vld [vmem:[#allocation49_spill] sm:$0xff]  ;;  %v6240_v7 = vld [vmem:[#allocation87_spill] sm:$0xff] }
  0xfc   : > { %5990 = vst [vmem:[#allocation28_spill] sm:$0xff] %v4219_v20  ;;  %v1344_v21 = vadd.f32 %v1343_v15, %v1342_v29  ;;  %v1459_v63 = vadd.f32 %v1458_v23, %v1457_v19  ;;  %v5999_v20 = vld [vmem:[#allocation33_spill] sm:$0xff]  ;;  %v6001_v56 = vunpack.c.l.bf16 %v6000_v54  ;;  %v6003_v39 = vunpack.c.h.bf16 %v6000_v54  ;;  %v6005_v19 = vld [vmem:[#allocation34_spill] sm:$0xff]  ;;  %v6006_v15 = vld [vmem:[#allocation35_spill] sm:$0xff] }
  0xfd   : > { %v4231_v57 = vsel %vm5666_vm6, %v5993_v6, 0.0  ;;  %v4237_v40 = vsel %vm5997_vm14, %v5996_v51, 0.0  ;;  %v1347_v33 = vsel %vm1309_vm1, %v4027_v24, 0.0  ;;  %vm1046_vm14 = vcmp.lt.s32.totalorder %v6005_v19, 1200  ;;  %v6007_v23 = vld [vmem:[#allocation50_spill] sm:$0xff] }
  0xfe   : > { %5994 = vst [vmem:[#allocation29_spill] sm:$0xff] %v4231_v57  ;;  %5998 = vst [vmem:[#allocation47_spill] sm:$0xff] %v4237_v40  ;;  %v4244_v62 = vsel %vm5667_vm8, %v6001_v56, 0.0  ;;  %v4250_v6 = vsel %vm5668_vm15, %v6003_v39, 0.0  ;;  %v1462_v29 = vsel %vm1309_vm1, %v4237_v40, 0.0  ;;  %vm1047_vm6 = vcmp.lt.s32.totalorder %v6006_v15, 1200 }
  0xff   : > { %6002 = vst [vmem:[#allocation30_spill] sm:$0xff] %v4244_v62  ;;  %6004 = vst [vmem:[#allocation48_spill] sm:$0xff] %v4250_v6  ;;  %v6008_v51 = vunpack.c.l.bf16 %v6007_v23  ;;  %vm6009_vm8 = vcmp.lt.s32.totalorder %v5924_v44, 1200  ;;  %v6011_v54 = vunpack.c.h.bf16 %v5995_v26  ;;  %vm6012_vm15 = vcmp.lt.s32.totalorder %v3753_v17, 1200  ;;  %v6014_v62 = vld [vmem:[#allocation36_spill] sm:$0xff]  ;;  %v6249_v15 = vld [vmem:[#allocation89_spill] sm:$0xff] }
 0x100   : > { %v1346_v24 = vadd.f32 %v1345_v4, %v1344_v21  ;;  %v1461_v6 = vadd.f32 %v1460_v8, %v1459_v63  ;;  %vm1048_vm12 = vcmp.lt.s32.totalorder %v6014_v62, 1200  ;;  %v6015_v40 = vunpack.c.h.bf16 %v6007_v23  ;;  %v6020_v4 = vld [vmem:[#allocation37_spill] sm:$0xff]  ;;  %v6021_v8 = vld [vmem:[#allocation38_spill] sm:$0xff]  ;;  %v6024_v21 = vld [vmem:[#allocation64_spill] sm:$0xff] }
 0x101   : > { %v4262_v56 = vsel %vm6009_vm8, %v6008_v51, 0.0  ;;  %v4268_v39 = vsel %vm6012_vm15, %v6011_v54, 0.0  ;;  %v6018_v44 = vunpack.c.l.bf16 %v6017_v30  ;;  %v1349_v17 = vsel %vm1309_vm1, %v4033_v48, 0.0 }
 0x102   : > { %6010 = vst [vmem:[#allocation31_spill] sm:$0xff] %v4262_v56  ;;  %6013 = vst [vmem:[#allocation32_spill] sm:$0xff] %v4268_v39  ;;  %v4275_v57 = vsel %vm5679_vm5, %v6015_v40, 0.0  ;;  %v1464_v63 = vsel %vm1309_vm1, %v4268_v39, 0.0  ;;  %vm1049_vm8 = vcmp.lt.s32.totalorder %v6020_v4, 1200  ;;  %vm1050_vm15 = vcmp.lt.s32.totalorder %v6021_v8, 1200 }
 0x103   : > { %6016 = vst [vmem:[#allocation63_spill] sm:$0xff] %v4275_v57  ;;  %v4281_v51 = vsel %vm5676_vm9, %v6018_v44, 0.0  ;;  %v6022_v26 = vunpack.c.h.bf16 %v6017_v30  ;;  %v6025_v23 = vunpack.c.l.bf16 %v6024_v21  ;;  %vm6026_vm9 = vcmp.lt.s32.totalorder %v3756_v9, 1200  ;;  %v6029_v39 = vld [vmem:[#allocation52_spill] sm:$0xff] }
 0x104   : > { %6019 = vst [vmem:[#allocation33_spill] sm:$0xff] %v4281_v51  ;;  %v1348_v54 = vadd.f32 %v1347_v33, %v1346_v24  ;;  %v1463_v48 = vadd.f32 %v1462_v29, %v1461_v6  ;;  %v6028_v51 = vld [vmem:[#allocation39_spill] sm:$0xff]  ;;  %v6030_v57 = vunpack.c.l.bf16 %v6029_v39  ;;  %v6032_v30 = vunpack.c.h.bf16 %v6029_v39  ;;  %v6034_v6 = vld [vmem:[#allocation53_spill] sm:$0xff] }
 0x105   : > { %v4293_v40 = vsel %vm5689_vm3, %v6022_v26, 0.0  ;;  %v4299_v44 = vsel %vm6026_vm9, %v6025_v23, 0.0  ;;  %vm1051_vm5 = vcmp.lt.s32.totalorder %v6028_v51, 1200  ;;  %v1351_v9 = vsel %vm1309_vm1, %v4045_v53, 0.0  ;;  %v6255_v4 = vld [vmem:[#allocation29_spill] sm:$0xff] }
 0x106   : > { %6023 = vst [vmem:[#allocation49_spill] sm:$0xff] %v4293_v40  ;;  %6027 = vst [vmem:[#allocation34_spill] sm:$0xff] %v4299_v44  ;;  %v4306_v56 = vsel %vm5683_vm4, %v6030_v57, 0.0  ;;  %v4312_v26 = vsel %vm5685_vm10, %v6032_v30, 0.0  ;;  %v1466_v24 = vsel %vm1309_vm1, %v4299_v44, 0.0  ;;  %v6035_v33 = vunpack.c.l.bf16 %v6034_v6  ;;  %v6044_v44 = vld [vmem:[#allocation54_spill] sm:$0xff] }
 0x107   : > { %6031 = vst [vmem:[#allocation35_spill] sm:$0xff] %v4306_v56  ;;  %6033 = vst [vmem:[#allocation50_spill] sm:$0xff] %v4312_v26  ;;  %vm6036_vm9 = vcmp.lt.s32.totalorder %v5953_v14, 1200  ;;  %v6038_v57 = vunpack.c.h.bf16 %v6024_v21  ;;  %vm6039_vm4 = vcmp.lt.s32.totalorder %v3760_v61, 1200  ;;  %v1350_v23 = vadd.f32 %v1349_v17, %v1348_v54 }
 0x108   : > { %v4322_v29 = vsel %vm6036_vm9, %v6035_v33, 0.0  ;;  %v1465_v30 = vadd.f32 %v1464_v63, %v1463_v48  ;;  %v6041_v26 = vunpack.c.h.bf16 %v6034_v6  ;;  %vm6042_vm10 = vcmp.lt.s32.totalorder %v5959_v32, 1200  ;;  %v6051_v63 = vld [vmem:[#allocation65_spill] sm:$0xff] }
 0x109   : > { %6037 = vst [vmem:[#allocation36_spill] sm:$0xff] %v4322_v29  ;;  %v4328_v39 = vsel %vm6039_vm4, %v6038_v57, 0.0  ;;  %v6045_v56 = vunpack.c.l.bf16 %v6044_v44  ;;  %vm6046_vm3 = vcmp.lt.s32.totalorder %v5960_v36, 1200  ;;  %v1353_v21 = vsel %vm1309_vm1, %v4058_v60, 0.0  ;;  %v6055_v57 = vld [vmem:[#allocation55_spill] sm:$0xff] }
 0x10a   : > { %6040 = vst [vmem:[#allocation51_spill] sm:$0xff] %v4328_v39  ;;  %v4334_v53 = vsel %vm6042_vm10, %v6041_v26, 0.0  ;;  %v1468_v61 = vsel %vm1309_vm1, %v4328_v39, 0.0  ;;  %v6048_v48 = vunpack.c.h.bf16 %v6044_v44  ;;  %vm6049_vm4 = vcmp.lt.s32.totalorder %v5968_v47, 1200  ;;  %v6258_v51 = vld [vmem:[#allocation31_spill] sm:$0xff] }
 0x10b   : > { %6043 = vst [vmem:[#allocation37_spill] sm:$0xff] %v4334_v53  ;;  %v4340_v33 = vsel %vm6046_vm3, %v6045_v56, 0.0  ;;  %v6052_v54 = vunpack.c.l.bf16 %v6051_v63  ;;  %vm6053_vm10 = vcmp.lt.s32.totalorder %v3763_v2, 1200  ;;  %v1352_v56 = vadd.f32 %v1351_v9, %v1350_v23  ;;  %v6060_v9 = vld [vmem:[#allocation56_spill] sm:$0xff] }
 0x10c   : > { %6047 = vst [vmem:[#allocation38_spill] sm:$0xff] %v4340_v33  ;;  %v4350_v17 = vsel %vm6049_vm4, %v6048_v48, 0.0  ;;  %v1467_v6 = vadd.f32 %v1466_v24, %v1465_v30  ;;  %v6056_v33 = vunpack.c.l.bf16 %v6055_v57  ;;  %v6058_v44 = vunpack.c.h.bf16 %v6055_v57 }
 0x10d   : > { %6050 = vst [vmem:[#allocation64_spill] sm:$0xff] %v4350_v17  ;;  %v4356_v26 = vsel %vm6053_vm10, %v6052_v54, 0.0  ;;  %v1355_v39 = vsel %vm1309_vm1, %v4064_v25, 0.0  ;;  %v6061_v24 = vunpack.c.l.bf16 %v6060_v9  ;;  %v6063_v30 = vunpack.c.h.bf16 %v6051_v63 }
 0x10e   : > { %6054 = vst [vmem:[#allocation39_spill] sm:$0xff] %v4356_v26  ;;  %v4362_v60 = vsel %vm1040_vm7, %v6056_v33, 0.0  ;;  %v4368_v48 = vsel %vm1041_vm11, %v6058_v44, 0.0  ;;  %v1470_v2 = vsel %vm1309_vm1, %v4356_v26, 0.0  ;;  %vm6064_vm3 = vcmp.lt.s32.totalorder %v3768_v3, 1200  ;;  %v6068_v26 = vld [vmem:[#allocation57_spill] sm:$0xff] }
 0x10f   : > { %6057 = vst [vmem:[#allocation52_spill] sm:$0xff] %v4362_v60  ;;  %6059 = vst [vmem:[#allocation53_spill] sm:$0xff] %v4368_v48  ;;  %v4378_v23 = vsel %vm1042_vm2, %v6061_v24, 0.0  ;;  %v4384_v33 = vsel %vm6064_vm3, %v6063_v30, 0.0  ;;  %v1354_v54 = vadd.f32 %v1353_v21, %v1352_v56  ;;  %v1469_v57 = vadd.f32 %v1468_v61, %v1467_v6  ;;  %v6074_v56 = vld [vmem:[#allocation66_spill] sm:$0xff] }
 0x110   : > { %6062 = vst [vmem:[#allocation54_spill] sm:$0xff] %v4378_v23  ;;  %6065 = vst [vmem:[#allocation65_spill] sm:$0xff] %v4384_v33  ;;  %v6066_v44 = vunpack.c.h.bf16 %v6060_v9  ;;  %v6069_v48 = vunpack.c.l.bf16 %v6068_v26  ;;  %v1357_v63 = vsel %vm1309_vm1, %v4076_v27, 0.0  ;;  %v1472_v3 = vsel %vm1309_vm1, %v4384_v33, 0.0 }
 0x111   : > { %v6071_v21 = vunpack.c.h.bf16 %v6068_v26  ;;  %vm6072_vm9 = vcmp.lt.s32.totalorder %v5999_v20, 1200  ;;  %v6075_v6 = vunpack.c.l.bf16 %v6074_v56  ;;  %vm6076_vm4 = vcmp.lt.s32.totalorder %v3771_v1, 1200 }
 0x112   : > { %v4390_v25 = vsel %vm1043_vm13, %v6066_v44, 0.0  ;;  %v4396_v24 = vsel %vm1044_vm0, %v6069_v48, 0.0  ;;  %v1356_v48 = vadd.f32 %v1355_v39, %v1354_v54  ;;  %v1471_v30 = vadd.f32 %v1470_v2, %v1469_v57  ;;  %v6078_v44 = vld [vmem:[#allocation58_spill] sm:$0xff]  ;;  %v6083_v39 = vld [vmem:[#allocation59_spill] sm:$0xff] }
 0x113   : > { %6067 = vst [vmem:[#allocation55_spill] sm:$0xff] %v4390_v25  ;;  %6070 = vst [vmem:[#allocation56_spill] sm:$0xff] %v4396_v24  ;;  %v4406_v61 = vsel %vm6072_vm9, %v6071_v21, 0.0  ;;  %v4412_v9 = vsel %vm6076_vm4, %v6075_v6, 0.0  ;;  %v6079_v24 = vunpack.c.l.bf16 %v6078_v44  ;;  %v6081_v26 = vunpack.c.h.bf16 %v6078_v44 }
 0x114   : > { %6073 = vst [vmem:[#allocation57_spill] sm:$0xff] %v4406_v61  ;;  %6077 = vst [vmem:[#allocation66_spill] sm:$0xff] %v4412_v9  ;;  %v1359_v33 = vsel %vm1309_vm1, %v4089_v35, 0.0  ;;  %v1474_v1 = vsel %vm1309_vm1, %v4412_v9, 0.0  ;;  %v6084_v2 = vunpack.c.l.bf16 %v6083_v39  ;;  %v6086_v57 = vunpack.c.h.bf16 %v6074_v56  ;;  %v6091_v9 = vld [vmem:[#allocation60_spill] sm:$0xff] }
 0x115   : > { %v4418_v27 = vsel %vm1046_vm14, %v6079_v24, 0.0  ;;  %v4424_v21 = vsel %vm1047_vm6, %v6081_v26, 0.0  ;;  %vm6087_vm10 = vcmp.lt.s32.totalorder %v3774_v59, 1200  ;;  %v1358_v6 = vadd.f32 %v1357_v63, %v1356_v48  ;;  %v6096_v48 = vld [vmem:[#allocation67_spill] sm:$0xff] }
 0x116   : > { %6080 = vst [vmem:[#allocation58_spill] sm:$0xff] %v4418_v27  ;;  %6082 = vst [vmem:[#allocation127_spill] sm:$0xff] %v4424_v21  ;;  %v4434_v54 = vsel %vm1048_vm12, %v6084_v2, 0.0  ;;  %v4440_v24 = vsel %vm6087_vm10, %v6086_v57, 0.0  ;;  %v1473_v44 = vadd.f32 %v1472_v3, %v1471_v30  ;;  %v6089_v26 = vunpack.c.h.bf16 %v6083_v39 }
 0x117   : > { %6085 = vst [vmem:[#allocation59_spill] sm:$0xff] %v4434_v54  ;;  %6088 = vst [vmem:[#allocation128_spill] sm:$0xff] %v4440_v24  ;;  %v6092_v21 = vunpack.c.l.bf16 %v6091_v9  ;;  %v1361_v56 = vsel %vm1309_vm1, %v4095_v49, 0.0  ;;  %v1476_v59 = vsel %vm1309_vm1, %v4440_v24, 0.0  ;;  %v6094_v63 = vunpack.c.h.bf16 %v6091_v9  ;;  %v6103_v24 = vld [vmem:[#allocation68_spill] sm:$0xff] }
 0x118   : > { %v4446_v35 = vsel %vm1049_vm8, %v6089_v26, 0.0  ;;  %v6097_v30 = vunpack.c.l.bf16 %v6096_v48  ;;  %vm6098_vm3 = vcmp.lt.s32.totalorder %v3777_v11, 1200  ;;  %v1475_v57 = vadd.f32 %v1474_v1, %v1473_v44  ;;  %v6112_v44 = vld [vmem:[#allocation93_spill] sm:$0xff]  ;;  %v6139_v54 = vld [vmem:[#allocation100_spill] sm:$0xff] }
 0x119   : > { %6090 = vst [vmem:[#allocation129_spill] sm:$0xff] %v4446_v35  ;;  %v4452_v2 = vsel %vm1050_vm15, %v6092_v21, 0.0  ;;  %v4462_v3 = vsel %vm1051_vm5, %v6094_v63, 0.0  ;;  %v1360_v21 = vadd.f32 %v1359_v33, %v1358_v6  ;;  %v6100_v26 = vunpack.c.h.bf16 %v6096_v48 }
 0x11a   : > { %6093 = vst [vmem:[#allocation60_spill] sm:$0xff] %v4452_v2  ;;  %6095 = vst [vmem:[#allocation130_spill] sm:$0xff] %v4462_v3  ;;  %v4468_v39 = vsel %vm6098_vm3, %v6097_v30, 0.0  ;;  %vm6101_vm9 = vcmp.lt.s32.totalorder %v3780_v10, 1200  ;;  %v6104_v9 = vunpack.c.l.bf16 %v6103_v24  ;;  %vm6105_vm4 = vcmp.lt.s32.totalorder %v3783_v18, 1200  ;;  %v6110_v10 = vld [vmem:[#allocation69_spill] sm:$0xff] }
 0x11b   : > { %6099 = vst [vmem:[#allocation67_spill] sm:$0xff] %v4468_v39  ;;  %v4474_v49 = vsel %vm6101_vm9, %v6100_v26, 0.0  ;;  %v1363_v3 = vsel %vm1309_vm1, %v4107_v31, 0.0  ;;  %v1478_v11 = vsel %vm1309_vm1, %v4468_v39, 0.0  ;;  %v6107_v33 = vunpack.c.h.bf16 %v6103_v24  ;;  %v6119_v39 = vld [vmem:[#allocation70_spill] sm:$0xff]  ;;  %v6121_v2 = vld [vmem:[#allocation95_spill] sm:$0xff] }
 0x11c   : > { %6102 = vst [vmem:[#allocation131_spill] sm:$0xff] %v4474_v49  ;;  %v4480_v63 = vsel %vm6105_vm4, %v6104_v9, 0.0  ;;  %vm6108_vm10 = vcmp.lt.s32.totalorder %v3793_v0, 1200  ;;  %v6111_v6 = vunpack.c.l.bf16 %v6110_v10  ;;  %vm6113_vm3 = vcmp.lt.s32.totalorder %v6112_v44, 1200  ;;  %v6116_v9 = vld [vmem:[#allocation94_spill] sm:$0xff] }
 0x11d   : > { %6106 = vst [vmem:[#allocation68_spill] sm:$0xff] %v4480_v63  ;;  %v4490_v1 = vsel %vm6108_vm10, %v6107_v33, 0.0  ;;  %v1362_v18 = vadd.f32 %v1361_v56, %v1360_v21  ;;  %v1477_v30 = vadd.f32 %v1476_v59, %v1475_v57  ;;  %v6115_v26 = vunpack.c.h.bf16 %v6110_v10  ;;  %v6125_v59 = vld [vmem:[#allocation97_spill] sm:$0xff]  ;;  %v6128_v57 = vld [vmem:[#allocation71_spill] sm:$0xff]  ;;  %v6130_v44 = vld [vmem:[#allocation98_spill] sm:$0xff] }
 0x11e   : > { %6109 = vst [vmem:[#allocation132_spill] sm:$0xff] %v4490_v1  ;;  %v4496_v48 = vsel %vm6113_vm3, %v6111_v6, 0.0  ;;  %vm6117_vm9 = vcmp.lt.s32.totalorder %v6116_v9, 1200  ;;  %v6120_v24 = vunpack.c.l.bf16 %v6119_v39  ;;  %vm6122_vm4 = vcmp.lt.s32.totalorder %v6121_v2, 1200 }
 0x11f   : > { %6114 = vst [vmem:[#allocation69_spill] sm:$0xff] %v4496_v48  ;;  %v4502_v31 = vsel %vm6117_vm9, %v6115_v26, 0.0  ;;  %v1365_v33 = vsel %vm1309_vm1, %v4120_v22, 0.0  ;;  %v1480_v6 = vsel %vm1309_vm1, %v4474_v49, 0.0  ;;  %v6124_v56 = vunpack.c.h.bf16 %v6119_v39  ;;  %v6134_v22 = vld [vmem:[#allocation99_spill] sm:$0xff]  ;;  %v6137_v49 = vld [vmem:[#allocation72_spill] sm:$0xff] }
 0x120   : > { %6118 = vst [vmem:[#allocation93_spill] sm:$0xff] %v4502_v31  ;;  %v4508_v0 = vsel %vm6122_vm4, %v6120_v24, 0.0  ;;  %vm6126_vm10 = vcmp.lt.s32.totalorder %v6125_v59, 1200  ;;  %v6129_v10 = vunpack.c.l.bf16 %v6128_v57  ;;  %vm6131_vm3 = vcmp.lt.s32.totalorder %v6130_v44, 1200  ;;  %v6142_v59 = vld [vmem:[#allocation21_spill] sm:$0xff] }
 0x121   : > { %6123 = vst [vmem:[#allocation94_spill] sm:$0xff] %v4508_v0  ;;  %v4518_v21 = vsel %vm6126_vm10, %v6124_v56, 0.0  ;;  %v1364_v2 = vadd.f32 %v1363_v3, %v1362_v18  ;;  %v1479_v9 = vadd.f32 %v1478_v11, %v1477_v30  ;;  %v6133_v24 = vunpack.c.h.bf16 %v6128_v57  ;;  %v6144_v11 = vld [vmem:[#allocation102_spill] sm:$0xff]  ;;  %v6149_v57 = vld [vmem:[#allocation103_spill] sm:$0xff] }
 0x122   : > { %6127 = vst [vmem:[#allocation70_spill] sm:$0xff] %v4518_v21  ;;  %v4524_v26 = vsel %vm6131_vm3, %v6129_v10, 0.0  ;;  %vm6135_vm9 = vcmp.lt.s32.totalorder %v6134_v22, 1200  ;;  %v6138_v39 = vunpack.c.l.bf16 %v6137_v49  ;;  %vm6140_vm4 = vcmp.lt.s32.totalorder %v6139_v54, 1200  ;;  %v6147_v22 = vld [vmem:[#allocation73_spill] sm:$0xff] }
 0x123   : > { %6132 = vst [vmem:[#allocation95_spill] sm:$0xff] %v4524_v26  ;;  %v4530_v35 = vsel %vm6135_vm9, %v6133_v24, 0.0  ;;  %v1367_v27 = vsel %vm1309_vm1, %v6142_v59, 0.0  ;;  %v1482_v10 = vsel %vm1309_vm1, %v4480_v63, 0.0  ;;  %v6143_v3 = vunpack.c.h.bf16 %v6137_v49  ;;  %v6155_v63 = vld [vmem:[#allocation74_spill] sm:$0xff] }
 0x124   : > { %6136 = vst [vmem:[#allocation97_spill] sm:$0xff] %v4530_v35  ;;  %v4536_v56 = vsel %vm6140_vm4, %v6138_v39, 0.0  ;;  %vm6145_vm10 = vcmp.lt.s32.totalorder %v6144_v11, 1200  ;;  %v6148_v30 = vunpack.c.l.bf16 %v6147_v22  ;;  %vm6150_vm3 = vcmp.lt.s32.totalorder %v6149_v57, 1200  ;;  %v6159_v11 = vld [vmem:[#allocation43_spill] sm:$0xff] }
 0x125   : > { %6141 = vst [vmem:[#allocation71_spill] sm:$0xff] %v4536_v56  ;;  %v4546_v18 = vsel %vm6145_vm10, %v6143_v3, 0.0  ;;  %v1366_v54 = vadd.f32 %v1365_v33, %v1364_v2  ;;  %v1481_v24 = vadd.f32 %v1480_v6, %v1479_v9  ;;  %v6152_v39 = vunpack.c.h.bf16 %v6147_v22 }
 0x126   : > { %6146 = vst [vmem:[#allocation98_spill] sm:$0xff] %v4546_v18  ;;  %v4552_v44 = vsel %vm6150_vm3, %v6148_v30, 0.0  ;;  %vm6153_vm9 = vcmp.lt.s32.totalorder %v3860_v34, 1200  ;;  %v6156_v49 = vunpack.c.l.bf16 %v6155_v63  ;;  %vm6157_vm4 = vcmp.lt.s32.totalorder %v3863_v55, 1200  ;;  %v6163_v34 = vld [vmem:[#allocation75_spill] sm:$0xff] }
 0x127   : > { %6151 = vst [vmem:[#allocation99_spill] sm:$0xff] %v4552_v44  ;;  %v4558_v59 = vsel %vm6153_vm9, %v6152_v39, 0.0  ;;  %v1369_v61 = vsel %vm1309_vm1, %v6159_v11, 0.0  ;;  %v1484_v30 = vsel %vm1309_vm1, %v4490_v1, 0.0  ;;  %v6160_v33 = vunpack.c.h.bf16 %v6155_v63  ;;  %v6168_v39 = vld [vmem:[#allocation13_spill] sm:$0xff]  ;;  %v6170_v1 = vld [vmem:[#allocation76_spill] sm:$0xff] }
 0x128   : > { %6154 = vst [vmem:[#allocation72_spill] sm:$0xff] %v4558_v59  ;;  %v4564_v3 = vsel %vm6157_vm4, %v6156_v49, 0.0  ;;  %vm6161_vm10 = vcmp.lt.s32.totalorder %v3274_v37, 1200  ;;  %v6164_v2 = vunpack.c.l.bf16 %v6163_v34  ;;  %vm6165_vm3 = vcmp.lt.s32.totalorder %v3277_v38, 1200  ;;  %v6172_v11 = vld [vmem:[#allocation14_spill] sm:$0xff] }
 0x129   : > { %6158 = vst [vmem:[#allocation100_spill] sm:$0xff] %v4564_v3  ;;  %v4574_v6 = vsel %vm6161_vm10, %v6160_v33, 0.0  ;;  %v1368_v55 = vadd.f32 %v1367_v27, %v1366_v54  ;;  %v1483_v22 = vadd.f32 %v1482_v10, %v1481_v24  ;;  %v6167_v57 = vunpack.c.h.bf16 %v6163_v34  ;;  %v6174_v33 = vld [vmem:[#allocation23_spill] sm:$0xff]  ;;  %v6178_v54 = vld [vmem:[#allocation77_spill] sm:$0xff] }
 0x12a   : > { %6162 = vst [vmem:[#allocation102_spill] sm:$0xff] %v4574_v6  ;;  %v4580_v9 = vsel %vm6165_vm3, %v6164_v2, 0.0  ;;  %vm6169_vm9 = vcmp.lt.s32.totalorder %v6168_v39, 1200  ;;  %v6171_v63 = vunpack.c.l.bf16 %v6170_v1  ;;  %vm6173_vm4 = vcmp.lt.s32.totalorder %v6172_v11, 1200 }
 0x12b   : > { %6166 = vst [vmem:[#allocation73_spill] sm:$0xff] %v4580_v9  ;;  %v4586_v49 = vsel %vm6169_vm9, %v6167_v57, 0.0  ;;  %v1371_v6 = vsel %vm1309_vm1, %v6174_v33, 0.0  ;;  %v1486_v38 = vsel %vm1309_vm1, %v4496_v48, 0.0  ;;  %v6175_v27 = vunpack.c.h.bf16 %v6170_v1 }
 0x12c   : > { %v4592_v37 = vsel %vm6173_vm4, %v6171_v63, 0.0  ;;  %vm6176_vm10 = vcmp.lt.s32.totalorder %v3286_v41, 1200  ;;  %v6179_v24 = vunpack.c.l.bf16 %v6178_v54  ;;  %vm6180_vm3 = vcmp.lt.s32.totalorder %v3289_v42, 1200  ;;  %v6183_v63 = vld [vmem:[#allocation78_spill] sm:$0xff] }
 0x12d   : > { %v4602_v10 = vsel %vm6176_vm10, %v6175_v27, 0.0  ;;  %v1370_v11 = vadd.f32 %v1369_v61, %v1368_v55  ;;  %v1485_v2 = vadd.f32 %v1484_v30, %v1483_v22  ;;  %v6181_v57 = vunpack.c.h.bf16 %v6178_v54  ;;  %v6186_v27 = vld [vmem:[#allocation44_spill] sm:$0xff]  ;;  %v6188_v30 = vld [vmem:[#allocation17_spill] sm:$0xff]  ;;  %v6192_v54 = vld [vmem:[#allocation18_spill] sm:$0xff] }
 0x12e   : > { %6177 = vst [vmem:[#allocation103_spill] sm:$0xff] %v4602_v10  ;;  %v4608_v34 = vsel %vm6180_vm3, %v6179_v24, 0.0  ;;  %vm6182_vm9 = vcmp.lt.s32.totalorder %v5910_v12, 1200  ;;  %v6184_v1 = vunpack.c.l.bf16 %v6183_v63  ;;  %vm6185_vm4 = vcmp.lt.s32.totalorder %v5916_v50, 1200  ;;  %v6190_v12 = vld [vmem:[#allocation79_spill] sm:$0xff] }
 0x12f   : > { %v4614_v39 = vsel %vm6182_vm9, %v6181_v57, 0.0  ;;  %v1373_v48 = vsel %vm1309_vm1, %v6186_v27, 0.0  ;;  %v1488_v42 = vsel %vm1309_vm1, %v4502_v31, 0.0  ;;  %v6187_v61 = vunpack.c.h.bf16 %v6183_v63  ;;  %v6197_v31 = vld [vmem:[#allocation80_spill] sm:$0xff] }
 0x130   : > { %v4620_v41 = vsel %vm6185_vm4, %v6184_v1, 0.0  ;;  %vm6189_vm10 = vcmp.lt.s32.totalorder %v6188_v30, 1200  ;;  %v6191_v22 = vunpack.c.l.bf16 %v6190_v12  ;;  %vm6193_vm3 = vcmp.lt.s32.totalorder %v6192_v54, 1200  ;;  %v6200_v30 = vld [vmem:[#allocation24_spill] sm:$0xff] }
 0x131   : > { %v4630_v55 = vsel %vm6189_vm10, %v6187_v61, 0.0  ;;  %v1372_v50 = vadd.f32 %v1371_v6, %v1370_v11  ;;  %v1487_v57 = vadd.f32 %v1486_v38, %v1485_v2  ;;  %v6195_v1 = vunpack.c.h.bf16 %v6190_v12 }
 0x132   : > { %v4636_v24 = vsel %vm6193_vm3, %v6191_v22, 0.0  ;;  %vm6196_vm9 = vcmp.lt.s32.totalorder %v5931_v16, 1200  ;;  %v6198_v63 = vunpack.c.l.bf16 %v6197_v31  ;;  %vm6199_vm4 = vcmp.lt.s32.totalorder %v5932_v28, 1200  ;;  %v6203_v16 = vld [vmem:[#allocation81_spill] sm:$0xff] }
 0x133   : > { %6194 = vst [vmem:[#allocation74_spill] sm:$0xff] %v4636_v24  ;;  %v4642_v27 = vsel %vm6196_vm9, %v6195_v1, 0.0  ;;  %v1375_v33 = vsel %vm1309_vm1, %v6200_v30, 0.0  ;;  %v1490_v22 = vsel %vm1309_vm1, %v4508_v0, 0.0  ;;  %v6201_v6 = vunpack.c.h.bf16 %v6197_v31 }
 0x134   : > { %v4648_v61 = vsel %vm6199_vm4, %v6198_v63, 0.0  ;;  %vm6202_vm10 = vcmp.lt.s32.totalorder %v5939_v58, 1200  ;;  %v6204_v11 = vunpack.c.l.bf16 %v6203_v16  ;;  %vm6205_vm3 = vcmp.lt.s32.totalorder %v5945_v13, 1200  ;;  %v6208_v63 = vld [vmem:[#allocation82_spill] sm:$0xff] }
 0x135   : > { %v4658_v38 = vsel %vm6202_vm10, %v6201_v6, 0.0  ;;  %v1374_v28 = vadd.f32 %v1373_v48, %v1372_v50  ;;  %v1489_v12 = vadd.f32 %v1488_v42, %v1487_v57  ;;  %v6206_v54 = vunpack.c.h.bf16 %v6203_v16  ;;  %v6211_v6 = vld [vmem:[#allocation25_spill] sm:$0xff] }
 0x136   : > { %v4664_v2 = vsel %vm6205_vm3, %v6204_v11, 0.0  ;;  %vm6207_vm9 = vcmp.lt.s32.totalorder %v5946_v46, 1200  ;;  %v6209_v31 = vunpack.c.l.bf16 %v6208_v63  ;;  %vm6210_vm4 = vcmp.lt.s32.totalorder %v5953_v14, 1200  ;;  %v6215_v46 = vld [vmem:[#allocation83_spill] sm:$0xff] }
 0x137   : > { %v4670_v1 = vsel %vm6207_vm9, %v6206_v54, 0.0  ;;  %v1377_v0 = vsel %vm1309_vm1, %v6211_v6, 0.0  ;;  %v1492_v13 = vsel %vm1309_vm1, %v4518_v21, 0.0  ;;  %v6212_v48 = vunpack.c.h.bf16 %v6208_v63  ;;  %v6272_v6 = vld [vmem:[#allocation101_spill] sm:$0xff] }
 0x138   : > { %v4676_v58 = vsel %vm6210_vm4, %v6209_v31, 0.0  ;;  %vm6213_vm10 = vcmp.lt.s32.totalorder %v5959_v32, 1200  ;;  %v6216_v50 = vunpack.c.l.bf16 %v6215_v46  ;;  %vm6217_vm3 = vcmp.lt.s32.totalorder %v5960_v36, 1200  ;;  %v6222_v31 = vld [vmem:[#allocation84_spill] sm:$0xff] }
 0x139   : > { %v4686_v42 = vsel %vm6213_vm10, %v6212_v48, 0.0  ;;  %v1376_v14 = vadd.f32 %v1375_v33, %v1374_v28  ;;  %v1491_v16 = vadd.f32 %v1490_v22, %v1489_v12  ;;  %v6219_v11 = vunpack.c.h.bf16 %v6215_v46  ;;  %v6225_v48 = vld [vmem:[#allocation26_spill] sm:$0xff] }
 0x13a   : > { %6214 = vst [vmem:[#allocation75_spill] sm:$0xff] %v4686_v42  ;;  %v4692_v57 = vsel %vm6217_vm3, %v6216_v50, 0.0  ;;  %vm6220_vm9 = vcmp.lt.s32.totalorder %v5968_v47, 1200  ;;  %v6223_v63 = vunpack.c.l.bf16 %v6222_v31  ;;  %v1379_v21 = vsel %vm1309_vm1, %v6225_v48, 0.0  ;;  %v6228_v47 = vld [vmem:[#allocation85_spill] sm:$0xff]  ;;  %v6270_v48 = vld [vmem:[#allocation56_spill] sm:$0xff] }
 0x13b   : > { %6218 = vst [vmem:[#allocation13_spill] sm:$0xff] %v4692_v57  ;;  %v4698_v54 = vsel %vm6220_vm9, %v6219_v11, 0.0  ;;  %v1494_v36 = vsel %vm1309_vm1, %v4524_v26, 0.0  ;;  %v6226_v33 = vunpack.c.h.bf16 %v6222_v31  ;;  %v6229_v28 = vunpack.c.l.bf16 %v6228_v47 }
 0x13c   : > { %6221 = vst [vmem:[#allocation76_spill] sm:$0xff] %v4698_v54  ;;  %v4704_v32 = vsel %vm1040_vm7, %v6223_v63, 0.0  ;;  %v1378_v52 = vadd.f32 %v1377_v0, %v1376_v14  ;;  %v1493_v46 = vadd.f32 %v1492_v13, %v1491_v16  ;;  %v6231_v50 = vunpack.c.h.bf16 %v6228_v47  ;;  %v6233_v63 = vld [vmem:[#allocation86_spill] sm:$0xff] }
 0x13d   : > { %6224 = vst [vmem:[#allocation14_spill] sm:$0xff] %v4704_v32  ;;  %v4714_v22 = vsel %vm1041_vm11, %v6226_v33, 0.0  ;;  %v4720_v12 = vsel %vm1042_vm2, %v6229_v28, 0.0  ;;  %v6234_v31 = vunpack.c.l.bf16 %v6233_v63  ;;  %v6236_v33 = vld [vmem:[#allocation62_spill] sm:$0xff]  ;;  %v1496_v43 = vsel %vm1309_vm1, %v4530_v35, 0.0 }
 0x13e   : > { %6227 = vst [vmem:[#allocation77_spill] sm:$0xff] %v4714_v22  ;;  %6230 = vst [vmem:[#allocation78_spill] sm:$0xff] %v4720_v12  ;;  %v4726_v11 = vsel %vm1043_vm13, %v6231_v50, 0.0  ;;  %v1381_v26 = vsel %vm1309_vm1, %v6236_v33, 0.0  ;;  %v6237_v0 = vunpack.c.h.bf16 %v6233_v63  ;;  %vm6238_vm11 = vcmp.lt.s32.totalorder %v5999_v20, 1200 }
 0x13f   : > { %6232 = vst [vmem:[#allocation17_spill] sm:$0xff] %v4726_v11  ;;  %v4732_v45 = vsel %vm1044_vm0, %v6234_v31, 0.0  ;;  %v6241_v14 = vunpack.c.l.bf16 %v6240_v7  ;;  %v1380_v5 = vadd.f32 %v1379_v21, %v1378_v52  ;;  %v1495_v47 = vadd.f32 %v1494_v36, %v1493_v46  ;;  %v6244_v31 = vld [vmem:[#allocation88_spill] sm:$0xff] }
 0x140   : > { %6235 = vst [vmem:[#allocation79_spill] sm:$0xff] %v4732_v45  ;;  %v4742_v13 = vsel %vm6238_vm11, %v6237_v0, 0.0  ;;  %v6243_v28 = vunpack.c.h.bf16 %v6240_v7  ;;  %v6245_v63 = vunpack.c.l.bf16 %v6244_v31  ;;  %v6246_v0 = vld [vmem:[#allocation46_spill] sm:$0xff]  ;;  %v1498_v19 = vsel %vm1309_vm1, %v4536_v56, 0.0 }
 0x141   : > { %6239 = vst [vmem:[#allocation18_spill] sm:$0xff] %v4742_v13  ;;  %v4748_v16 = vsel %vm1046_vm14, %v6241_v14, 0.0  ;;  %v1383_v35 = vsel %vm1309_vm1, %v6246_v0, 0.0  ;;  %v6247_v21 = vunpack.c.h.bf16 %v6244_v31  ;;  %v6250_v52 = vunpack.c.l.bf16 %v6249_v15  ;;  %v6260_v0 = vld [vmem:[#allocation33_spill] sm:$0xff] }
 0x142   : > { %6242 = vst [vmem:[#allocation80_spill] sm:$0xff] %v4748_v16  ;;  %v4754_v50 = vsel %vm1047_vm6, %v6243_v28, 0.0  ;;  %v4760_v20 = vsel %vm1048_vm12, %v6245_v63, 0.0  ;;  %v1382_v62 = vadd.f32 %v1381_v26, %v1380_v5  ;;  %v1497_v7 = vadd.f32 %v1496_v43, %v1495_v47  ;;  %v6254_v63 = vld [vmem:[#allocation28_spill] sm:$0xff] }
 0x143   : > { %v4770_v36 = vsel %vm1049_vm8, %v6247_v21, 0.0  ;;  %v4776_v46 = vsel %vm1050_vm15, %v6250_v52, 0.0  ;;  %v6252_v14 = vunpack.c.h.bf16 %v6249_v15  ;;  %v1385_v31 = vsel %vm1309_vm1, %v6254_v63, 0.0  ;;  %v6256_v52 = vld [vmem:[#allocation30_spill] sm:$0xff]  ;;  %v6257_v43 = vld [vmem:[#allocation48_spill] sm:$0xff] }
 0x144   : > { %6248 = vst [vmem:[#allocation81_spill] sm:$0xff] %v4770_v36  ;;  %6251 = vst [vmem:[#allocation82_spill] sm:$0xff] %v4776_v46  ;;  %v1387_v21 = vsel %vm1309_vm1, %v6255_v4, 0.0  ;;  %v1500_v56 = vsel %vm1309_vm1, %v4546_v18, 0.0  ;;  %v1384_v8 = vadd.f32 %v1383_v35, %v1382_v62  ;;  %v1389_v26 = vsel %vm1309_vm1, %v6256_v52, 0.0  ;;  %v6261_v52 = vld [vmem:[#allocation35_spill] sm:$0xff] }
 0x145   : > { %v4782_v28 = vsel %vm1051_vm5, %v6252_v14, 0.0  ;;  %v1391_v5 = vsel %vm1309_vm1, %v6257_v43, 0.0  ;;  %v1499_v47 = vadd.f32 %v1498_v19, %v1497_v7  ;;  %v1393_v15 = vsel %vm1309_vm1, %v6258_v51, 0.0  ;;  %v6259_v14 = vld [vmem:[#allocation63_spill] sm:$0xff]  ;;  %v6262_v7 = vld [vmem:[#allocation50_spill] sm:$0xff] }
 0x146   : > { %6253 = vst [vmem:[#allocation83_spill] sm:$0xff] %v4782_v28  ;;  %v1395_v63 = vsel %vm1309_vm1, %v6259_v14, 0.0  ;;  %v1397_v4 = vsel %vm1309_vm1, %v6260_v0, 0.0  ;;  %v1502_v18 = vsel %vm1309_vm1, %v4552_v44, 0.0  ;;  %v1386_v35 = vadd.f32 %v1385_v31, %v1384_v8  ;;  %v6266_v44 = vld [vmem:[#allocation53_spill] sm:$0xff]  ;;  %v6273_v46 = vld [vmem:[#allocation58_spill] sm:$0xff] }
 0x147   : > { %v1399_v62 = vsel %vm1309_vm1, %v4293_v40, 0.0  ;;  %v1401_v43 = vsel %vm1309_vm1, %v6261_v52, 0.0  ;;  %v1501_v19 = vadd.f32 %v1500_v56, %v1499_v47  ;;  %v4808_v51 = vsel %vm1309_vm1, %v6262_v7, 0.0  ;;  %v6263_v40 = vld [vmem:[#allocation38_spill] sm:$0xff]  ;;  %v6275_v36 = vld [vmem:[#allocation127_spill] sm:$0xff] }
 0x148   : > { %v4812_v14 = vsel %vm1309_vm1, %v4322_v29, 0.0  ;;  %v4816_v0 = vsel %vm1309_vm1, %v4334_v53, 0.0  ;;  %v1504_v31 = vsel %vm1309_vm1, %v4558_v59, 0.0  ;;  %v1388_v8 = vadd.f32 %v1387_v21, %v1386_v35  ;;  %v6264_v7 = vld [vmem:[#allocation90_spill] sm:$0xff]  ;;  %v6265_v21 = vld [vmem:[#allocation91_spill] sm:$0xff] }
 0x149   : > { %v4822_v52 = vsel %vm1309_vm1, %v6263_v40, 0.0  ;;  %v4826_v56 = vsel %vm1309_vm1, %v4350_v17, 0.0  ;;  %v1503_v47 = vadd.f32 %v1502_v18, %v1501_v19  ;;  %v4830_v29 = vsel %vm1309_vm1, %v4362_v60, 0.0  ;;  %v6267_v18 = vld [vmem:[#allocation92_spill] sm:$0xff] }
 0x14a   : > { %v1506_v53 = vsel %vm1309_vm1, %v4564_v3, 0.0  ;;  %v1585_v59 = vmul.f32 %v6264_v7, %v6264_v7  ;;  %v1586_v35 = vmul.f32 %v6265_v21, %v6265_v21  ;;  %v1390_v40 = vadd.f32 %v1389_v26, %v1388_v8  ;;  %v6268_v7 = vld [vmem:[#allocation102_spill] sm:$0xff]  ;;  %v6269_v26 = vld [vmem:[#allocation96_spill] sm:$0xff] }
 0x14b   : > { %v4840_v33 = vsel %vm1309_vm1, %v6266_v44, 0.0  ;;  %v1505_v17 = vadd.f32 %v1504_v31, %v1503_v47  ;;  %v1587_v19 = vmul.f32 %v6267_v18, %v6267_v18  ;;  %v4846_v60 = vsel %vm1309_vm1, %v4378_v23, 0.0  ;;  %v6271_v47 = vld [vmem:[#allocation57_spill] sm:$0xff] }
 0x14c   : > { %v4850_v3 = vsel %vm1309_vm1, %v4390_v25, 0.0  ;;  %v1508_v21 = vsel %vm1309_vm1, %v6268_v7, 0.0  ;;  %v1588_v8 = vmul.f32 %v6269_v26, %v6269_v26  ;;  %v1392_v44 = vadd.f32 %v1391_v5, %v1390_v40 }
 0x14d   : > { %v4858_v31 = vsel %vm1309_vm1, %v6270_v48, 0.0  ;;  %v4862_v18 = vsel %vm1309_vm1, %v6271_v47, 0.0  ;;  %v1507_v23 = vadd.f32 %v1506_v53, %v1505_v17  ;;  %v1510_v25 = vsel %vm1309_vm1, %v4580_v9, 0.0  ;;  %v6274_v17 = vld [vmem:[#allocation104_spill] sm:$0xff] }
 0x14e   : > { %v1589_v30 = vmul.f32 %v6272_v6, %v6272_v6  ;;  %v1713_v7 = vsel %vm1309_vm1, %v1585_v59, 0.0  ;;  %v1714_v26 = vsel %vm1309_vm1, %v1586_v35, 0.0  ;;  %v1394_v40 = vadd.f32 %v1393_v15, %v1392_v44  ;;  %v6276_v35 = vld [vmem:[#allocation59_spill] sm:$0xff] }
 0x14f   : > { %v1509_v5 = vadd.f32 %v1508_v21, %v1507_v23  ;;  %v1715_v28 = vadd.f32 %v1714_v26, %v1713_v7  ;;  %v1716_v48 = vsel %vm1309_vm1, %v1587_v19, 0.0  ;;  %v4873_v47 = vsel %vm1309_vm1, %v6273_v46, 0.0  ;;  %v6277_v21 = vld [vmem:[#allocation105_spill] sm:$0xff] }
 0x150   : > { %v1512_v53 = vsel %vm1309_vm1, %v4586_v49, 0.0  ;;  %v1590_v9 = vmul.f32 %v6274_v17, %v6274_v17  ;;  %v1718_v6 = vsel %vm1309_vm1, %v1588_v8, 0.0  ;;  %v1396_v59 = vadd.f32 %v1395_v63, %v1394_v40  ;;  %v6278_v63 = vld [vmem:[#allocation129_spill] sm:$0xff] }
 0x151   : > { %v4882_v44 = vsel %vm1309_vm1, %v6275_v36, 0.0  ;;  %v1511_v23 = vadd.f32 %v1510_v25, %v1509_v5  ;;  %v1717_v15 = vadd.f32 %v1716_v48, %v1715_v28  ;;  %v4886_v19 = vsel %vm1309_vm1, %v6276_v35, 0.0  ;;  %v6279_v48 = vld [vmem:[#allocation60_spill] sm:$0xff]  ;;  %v6280_v35 = vld [vmem:[#allocation106_spill] sm:$0xff] }
 0x152   : > { %v1514_v7 = vsel %vm1309_vm1, %v4592_v37, 0.0  ;;  %v1591_v26 = vmul.f32 %v6277_v21, %v6277_v21  ;;  %v1720_v17 = vsel %vm1309_vm1, %v1589_v30, 0.0  ;;  %v1398_v8 = vadd.f32 %v1397_v4, %v1396_v59  ;;  %v6281_v4 = vld [vmem:[#allocation130_spill] sm:$0xff] }
 0x153   : > { %v4895_v40 = vsel %vm1309_vm1, %v6278_v63, 0.0  ;;  %v1513_v36 = vadd.f32 %v1512_v53, %v1511_v23  ;;  %v1719_v25 = vadd.f32 %v1718_v6, %v1717_v15  ;;  %v4899_v28 = vsel %vm1309_vm1, %v6279_v48, 0.0  ;;  %v6282_v15 = vld [vmem:[#allocation107_spill] sm:$0xff] }
 0x154   : > { %v1516_v5 = vsel %vm1309_vm1, %v4602_v10, 0.0  ;;  %v1592_v46 = vmul.f32 %v6280_v35, %v6280_v35  ;;  %v1722_v21 = vsel %vm1309_vm1, %v1590_v9, 0.0  ;;  %v1400_v30 = vadd.f32 %v1399_v62, %v1398_v8 }
 0x155   : > { %v4908_v59 = vsel %vm1309_vm1, %v6281_v4, 0.0  ;;  %v1515_v63 = vadd.f32 %v1514_v7, %v1513_v36  ;;  %v1721_v53 = vadd.f32 %v1720_v17, %v1719_v25  ;;  %v1518_v6 = vsel %vm1309_vm1, %v4608_v34, 0.0  ;;  %v6283_v17 = vld [vmem:[#allocation108_spill] sm:$0xff] }
 0x156   : > { %v1520_v23 = vsel %vm1309_vm1, %v4614_v39, 0.0  ;;  %v1593_v48 = vmul.f32 %v6282_v15, %v6282_v15  ;;  %v1724_v35 = vsel %vm1309_vm1, %v1591_v26, 0.0  ;;  %v1402_v10 = vadd.f32 %v1401_v43, %v1400_v30  ;;  %v6284_v30 = vld [vmem:[#allocation109_spill] sm:$0xff] }
 0x157   : > { %v1517_v9 = vadd.f32 %v1516_v5, %v1515_v63  ;;  %v1522_v62 = vsel %vm1309_vm1, %v4620_v41, 0.0  ;;  %v1723_v8 = vadd.f32 %v1722_v21, %v1721_v53  ;;  %v1524_v36 = vsel %vm1309_vm1, %v4630_v55, 0.0 }
 0x158   : > { %v1526_v7 = vsel %vm1309_vm1, %v4636_v24, 0.0  ;;  %v1594_v25 = vmul.f32 %v6283_v17, %v6283_v17  ;;  %v1726_v4 = vsel %vm1309_vm1, %v1592_v46, 0.0  ;;  %v1404_v15 = vadd.f32 %v4808_v51, %v1402_v10 }
 0x159   : > { %v1519_v26 = vadd.f32 %v1518_v6, %v1517_v9  ;;  %v1528_v43 = vsel %vm1309_vm1, %v4642_v27, 0.0  ;;  %v1725_v63 = vadd.f32 %v1724_v35, %v1723_v8  ;;  %v1530_v5 = vsel %vm1309_vm1, %v4648_v61, 0.0  ;;  %v6285_v9 = vld [vmem:[#allocation110_spill] sm:$0xff] }
 0x15a   : > { %v1532_v21 = vsel %vm1309_vm1, %v4658_v38, 0.0  ;;  %v1595_v53 = vmul.f32 %v6284_v30, %v6284_v30  ;;  %v1728_v17 = vsel %vm1309_vm1, %v1593_v48, 0.0  ;;  %v1406_v46 = vadd.f32 %v4812_v14, %v1404_v15 }
 0x15b   : > { %v1521_v24 = vadd.f32 %v1520_v23, %v1519_v26  ;;  %v1534_v10 = vsel %vm1309_vm1, %v4664_v2, 0.0  ;;  %v1727_v51 = vadd.f32 %v1726_v4, %v1725_v63  ;;  %v1536_v6 = vsel %vm1309_vm1, %v4670_v1, 0.0  ;;  %v6286_v63 = vld [vmem:[#allocation111_spill] sm:$0xff] }
 0x15c   : > { %v4943_v35 = vsel %vm1309_vm1, %v4676_v58, 0.0  ;;  %v1596_v8 = vmul.f32 %v6285_v9, %v6285_v9  ;;  %v1730_v30 = vsel %vm1309_vm1, %v1594_v25, 0.0  ;;  %v1408_v48 = vadd.f32 %v4816_v0, %v1406_v46 }
 0x15d   : > { %v1523_v14 = vadd.f32 %v1522_v62, %v1521_v24  ;;  %v4951_v23 = vsel %vm1309_vm1, %v4686_v42, 0.0  ;;  %v1729_v4 = vadd.f32 %v1728_v17, %v1727_v51  ;;  %v4955_v15 = vsel %vm1309_vm1, %v4692_v57, 0.0  ;;  %v6297_v42 = vld [vmem:[#allocation120_spill] sm:$0xff] }
 0x15e   : > { %v4959_v26 = vsel %vm1309_vm1, %v4698_v54, 0.0  ;;  %v1597_v9 = vmul.f32 %v6286_v63, %v6286_v63  ;;  %v1732_v25 = vsel %vm1309_vm1, %v1595_v53, 0.0  ;;  %v1410_v24 = vadd.f32 %v4822_v52, %v1408_v48  ;;  %v6287_v54 = vld [vmem:[#allocation112_spill] sm:$0xff] }
 0x15f   : > { %v1525_v0 = vadd.f32 %v1524_v36, %v1523_v14  ;;  %v4967_v62 = vsel %vm1309_vm1, %v4704_v32, 0.0  ;;  %v1731_v17 = vadd.f32 %v1730_v30, %v1729_v4  ;;  %v4971_v46 = vsel %vm1309_vm1, %v4714_v22, 0.0 }
 0x160   : > { %v4975_v51 = vsel %vm1309_vm1, %v4720_v12, 0.0  ;;  %v1598_v63 = vmul.f32 %v6287_v54, %v6287_v54  ;;  %v1734_v53 = vsel %vm1309_vm1, %v1596_v8, 0.0  ;;  %v1412_v52 = vadd.f32 %v4826_v56, %v1410_v24  ;;  %v6288_v12 = vld [vmem:[#allocation113_spill] sm:$0xff]  ;;  %v6289_v24 = vld [vmem:[#allocation114_spill] sm:$0xff] }
 0x161   : > { %v1527_v36 = vadd.f32 %v1526_v7, %v1525_v0  ;;  %v4983_v48 = vsel %vm1309_vm1, %v4726_v11, 0.0  ;;  %v1733_v30 = vadd.f32 %v1732_v25, %v1731_v17  ;;  %v4987_v14 = vsel %vm1309_vm1, %v4732_v45, 0.0  ;;  %v6290_v17 = vld [vmem:[#allocation117_spill] sm:$0xff]  ;;  %v6291_v11 = vld [vmem:[#allocation118_spill] sm:$0xff] }
 0x162   : > { %v4991_v4 = vsel %vm1309_vm1, %v4742_v13, 0.0  ;;  %v1599_v54 = vmul.f32 %v6288_v12, %v6288_v12  ;;  %v1736_v8 = vsel %vm1309_vm1, %v1597_v9, 0.0  ;;  %v1414_v56 = vadd.f32 %v4830_v29, %v1412_v52  ;;  %v6292_v13 = vld [vmem:[#allocation119_spill] sm:$0xff] }
 0x163   : > { %v1529_v7 = vadd.f32 %v1528_v43, %v1527_v36  ;;  %v1600_v0 = vmul.f32 %v6289_v24, %v6289_v24  ;;  %v1735_v25 = vadd.f32 %v1734_v53, %v1733_v30  ;;  %v1649_v45 = vmul.f32 %v6290_v17, %v6290_v17  ;;  %v6293_v53 = vld [vmem:[#allocation115_spill] sm:$0xff]  ;;  %v6294_v36 = vld [vmem:[#allocation116_spill] sm:$0xff] }
 0x164   : > { %v1650_v22 = vmul.f32 %v6291_v11, %v6291_v11  ;;  %v1651_v32 = vmul.f32 %v6292_v13, %v6292_v13  ;;  %v1738_v12 = vsel %vm1309_vm1, %v1598_v63, 0.0  ;;  %v1416_v9 = vadd.f32 %v4840_v33, %v1414_v56  ;;  %v6295_v11 = vld [vmem:[#allocation121_spill] sm:$0xff] }
 0x165   : > { %v1531_v57 = vadd.f32 %v1530_v5, %v1529_v7  ;;  %v5009_v29 = vsel %vm1309_vm1, %v4748_v16, 0.0  ;;  %v1737_v43 = vadd.f32 %v1736_v8, %v1735_v25  ;;  %v1601_v52 = vmul.f32 %v6293_v53, %v6293_v53  ;;  %v6296_v5 = vld [vmem:[#allocation125_spill] sm:$0xff] }
 0x166   : > { %v1602_v30 = vmul.f32 %v6294_v36, %v6294_v36  ;;  %v1652_v24 = vmul.f32 %v6295_v11, %v6295_v11  ;;  %v1740_v13 = vsel %vm1309_vm1, %v1599_v54, 0.0  ;;  %v1418_v63 = vadd.f32 %v4846_v60, %v1416_v9 }
 0x167   : > { %v1533_v33 = vadd.f32 %v1532_v21, %v1531_v57  ;;  %v1653_v56 = vmul.f32 %v6296_v5, %v6296_v5  ;;  %v1739_v7 = vadd.f32 %v1738_v12, %v1737_v43  ;;  %v1742_v8 = vsel %vm1309_vm1, %v1600_v0, 0.0  ;;  %v6298_v57 = vld [vmem:[#allocation41_spill] sm:$0xff]  ;;  %v6299_v43 = vld [vmem:[#allocation122_spill] sm:$0xff] }
 0x168   : > { %v1846_v25 = vsel %vm1309_vm1, %v1649_v45, 0.0  ;;  %v1847_v17 = vsel %vm1309_vm1, %v1650_v22, 0.0  ;;  %v1849_v53 = vsel %vm1309_vm1, %v1651_v32, 0.0  ;;  %v1420_v36 = vadd.f32 %v4850_v3, %v1418_v63 }
 0x169   : > { %v1535_v11 = vadd.f32 %v1534_v10, %v1533_v33  ;;  %v1741_v16 = vadd.f32 %v1740_v13, %v1739_v7  ;;  %v1848_v54 = vadd.f32 %v1847_v17, %v1846_v25  ;;  %v1603_v60 = vmul.f32 %v6297_v42, %v6297_v42  ;;  %v6300_v10 = vld [vmem:[#allocation20_spill] sm:$0xff] }
 0x16a   : > { %v1654_v21 = vmul.f32 %v6298_v57, %v6298_v57  ;;  %v1744_v12 = vsel %vm1309_vm1, %v1601_v52, 0.0  ;;  %v1851_v0 = vsel %vm1309_vm1, %v1652_v24, 0.0  ;;  %v1422_v45 = vadd.f32 %v4858_v31, %v1420_v36  ;;  %v6301_v31 = vld [vmem:[#allocation123_spill] sm:$0xff]  ;;  %v6304_v36 = vld [vmem:[#allocation45_spill] sm:$0xff] }
 0x16b   : > { %v1537_v22 = vadd.f32 %v1536_v6, %v1535_v11  ;;  %v1743_v9 = vadd.f32 %v1742_v8, %v1741_v16  ;;  %v1850_v32 = vadd.f32 %v1849_v53, %v1848_v54  ;;  %v1604_v3 = vmul.f32 %v6299_v43, %v6299_v43  ;;  %v6302_v6 = vld [vmem:[#allocation22_spill] sm:$0xff]  ;;  %v6303_v53 = vld [vmem:[#allocation124_spill] sm:$0xff] }
 0x16c   : > { %v1655_v13 = vmul.f32 %v6300_v10, %v6300_v10  ;;  %v1746_v42 = vsel %vm1309_vm1, %v1602_v30, 0.0  ;;  %v1853_v63 = vsel %vm1309_vm1, %v1653_v56, 0.0  ;;  %v1424_v33 = vadd.f32 %v4862_v18, %v1422_v45  ;;  %v6306_v45 = vld [vmem:[#allocation27_spill] sm:$0xff] }
 0x16d   : > { %v1539_v52 = vadd.f32 %v4943_v35, %v1537_v22  ;;  %v1745_v24 = vadd.f32 %v1744_v12, %v1743_v9  ;;  %v1852_v5 = vadd.f32 %v1851_v0, %v1850_v32  ;;  %v1605_v16 = vmul.f32 %v6301_v31, %v6301_v31  ;;  %v6305_v0 = vld [vmem:[#allocation15_spill] sm:$0xff] }
 0x16e   : > { %v1656_v7 = vmul.f32 %v6302_v6, %v6302_v6  ;;  %v1748_v8 = vsel %vm1309_vm1, %v1603_v60, 0.0  ;;  %v1855_v25 = vsel %vm1309_vm1, %v1654_v21, 0.0  ;;  %v1426_v30 = vadd.f32 %v4873_v47, %v1424_v33  ;;  %v6310_v6 = vld [vmem:[#allocation32_spill] sm:$0xff] }
 0x16f   : > { %v1541_v56 = vadd.f32 %v4951_v23, %v1539_v52  ;;  %v1747_v17 = vadd.f32 %v1746_v42, %v1745_v24  ;;  %v1854_v18 = vadd.f32 %v1853_v63, %v1852_v5  ;;  %v1606_v35 = vmul.f32 %v6303_v53, %v6303_v53  ;;  %v6308_v42 = vld [vmem:[#allocation47_spill] sm:$0xff]  ;;  %v6312_v53 = vld [vmem:[#allocation34_spill] sm:$0xff] }
 0x170   : > { %v1657_v11 = vmul.f32 %v6304_v36, %v6304_v36  ;;  %v1750_v54 = vsel %vm1309_vm1, %v1604_v3, 0.0  ;;  %v1857_v57 = vsel %vm1309_vm1, %v1655_v13, 0.0  ;;  %v1428_v60 = vadd.f32 %v4882_v44, %v1426_v30  ;;  %v6307_v13 = vld [vmem:[#allocation40_spill] sm:$0xff] }
 0x171   : > { %v1543_v21 = vadd.f32 %v4955_v15, %v1541_v56  ;;  %v1749_v12 = vadd.f32 %v1748_v8, %v1747_v17  ;;  %v1856_v47 = vadd.f32 %v1855_v25, %v1854_v18  ;;  %v1607_v23 = vmul.f32 %v6305_v0, %v6305_v0  ;;  %v6311_v18 = vld [vmem:[#allocation126_spill] sm:$0xff] }
 0x172   : > { %v1658_v22 = vmul.f32 %v6306_v45, %v6306_v45  ;;  %v1752_v9 = vsel %vm1309_vm1, %v1605_v16, 0.0  ;;  %v1859_v32 = vsel %vm1309_vm1, %v1656_v7, 0.0  ;;  %v1430_v43 = vadd.f32 %v4886_v19, %v1428_v60  ;;  %v6309_v16 = vld [vmem:[#allocation16_spill] sm:$0xff] }
 0x173   : > { %v1545_v3 = vadd.f32 %v4959_v26, %v1543_v21  ;;  %v1751_v10 = vadd.f32 %v1750_v54, %v1749_v12  ;;  %v1858_v44 = vadd.f32 %v1857_v57, %v1856_v47  ;;  %v1608_v15 = vmul.f32 %v6307_v13, %v6307_v13  ;;  %v6313_v21 = vld [vmem:[#allocation42_spill] sm:$0xff]  ;;  %v6314_v12 = vld [vmem:[#allocation51_spill] sm:$0xff] }
 0x174   : > { %v1659_v63 = vmul.f32 %v6308_v42, %v6308_v42  ;;  %v1754_v33 = vsel %vm1309_vm1, %v1606_v35, 0.0  ;;  %v1861_v52 = vsel %vm1309_vm1, %v1657_v11, 0.0  ;;  %v1432_v24 = vadd.f32 %v4895_v40, %v1430_v43  ;;  %v6316_v43 = vld [vmem:[#allocation39_spill] sm:$0xff] }
 0x175   : > { %v1547_v5 = vadd.f32 %v4967_v62, %v1545_v3  ;;  %v1753_v31 = vadd.f32 %v1752_v9, %v1751_v10  ;;  %v1860_v19 = vadd.f32 %v1859_v32, %v1858_v44  ;;  %v1609_v26 = vmul.f32 %v6309_v16, %v6309_v16  ;;  %v6319_v16 = vld [vmem:[#allocation81_spill] sm:$0xff] }
 0x176   : > { %v1660_v7 = vmul.f32 %v6310_v6, %v6310_v6  ;;  %v1756_v8 = vsel %vm1309_vm1, %v1607_v23, 0.0  ;;  %v1863_v25 = vsel %vm1309_vm1, %v1658_v22, 0.0  ;;  %v1434_v30 = vadd.f32 %v4899_v28, %v1432_v24 }
 0x177   : > { %v1549_v56 = vadd.f32 %v4971_v46, %v1547_v5  ;;  %v1755_v17 = vadd.f32 %v1754_v33, %v1753_v31  ;;  %v1862_v40 = vadd.f32 %v1861_v52, %v1860_v19  ;;  %v1610_v62 = vmul.f32 %v6311_v18, %v6311_v18  ;;  %v6318_v52 = vld [vmem:[#allocation65_spill] sm:$0xff] }
 0x178   : > { %v1661_v35 = vmul.f32 %v6312_v53, %v6312_v53  ;;  %v1758_v36 = vsel %vm1309_vm1, %v1608_v15, 0.0  ;;  %v1865_v11 = vsel %vm1309_vm1, %v1659_v63, 0.0  ;;  %v1436_v54 = vadd.f32 %v4908_v59, %v1434_v30  ;;  %v6317_v63 = vld [vmem:[#allocation61_spill] sm:$0xff]  ;;  %v6322_v53 = vld [vmem:[#allocation43_spill] sm:$0xff] }
 0x179   : > { %v1551_v57 = vadd.f32 %v4975_v51, %v1549_v56  ;;  %v1757_v60 = vadd.f32 %v1756_v8, %v1755_v17  ;;  %v1864_v28 = vadd.f32 %v1863_v25, %v1862_v40  ;;  %v1611_v46 = vmul.f32 %v6313_v21, %v6313_v21  ;;  %v6315_v51 = vld [vmem:[#allocation19_spill] sm:$0xff]  ;;  %v6321_v25 = vld [vmem:[#allocation66_spill] sm:$0xff] }
 0x17a   : > { %v1662_v47 = vmul.f32 %v6314_v12, %v6314_v12  ;;  %v1760_v0 = vsel %vm1309_vm1, %v1609_v26, 0.0  ;;  %v1867_v23 = vsel %vm1309_vm1, %v1660_v7, 0.0  ;;  %v1560_v22 = vsel %vm1309_vm1, %v4754_v50, 0.0  ;;  %v6320_v7 = vld [vmem:[#allocation21_spill] sm:$0xff]  ;;  %v6324_v21 = vld [vmem:[#allocation82_spill] sm:$0xff] }
 0x17b   : > { %v1553_v45 = vadd.f32 %v4983_v48, %v1551_v57  ;;  %v1759_v59 = vadd.f32 %v1758_v36, %v1757_v60  ;;  %v1866_v9 = vadd.f32 %v1865_v11, %v1864_v28  ;;  %v1612_v32 = vmul.f32 %v6315_v51, %v6315_v51  ;;  %v6323_v36 = vld [vmem:[#allocation128_spill] sm:$0xff] }
 0x17c   : > { %v1663_v3 = vmul.f32 %v6316_v43, %v6316_v43  ;;  %v1762_v10 = vsel %vm1309_vm1, %v1610_v62, 0.0  ;;  %v1869_v44 = vsel %vm1309_vm1, %v1661_v35, 0.0  ;;  %v1562_v48 = vsel %vm1309_vm1, %v4760_v20, 0.0 }
 0x17d   : > { %v1555_v13 = vadd.f32 %v4987_v14, %v1553_v45  ;;  %v1761_v15 = vadd.f32 %v1760_v0, %v1759_v59  ;;  %v1868_v42 = vadd.f32 %v1867_v23, %v1866_v9  ;;  %v1613_v33 = vmul.f32 %v6317_v63, %v6317_v63  ;;  %v6325_v0 = vld [vmem:[#allocation23_spill] sm:$0xff] }
 0x17e   : > { %v1664_v24 = vmul.f32 %v6318_v52, %v6318_v52  ;;  %v1764_v5 = vsel %vm1309_vm1, %v1611_v46, 0.0  ;;  %v1871_v31 = vsel %vm1309_vm1, %v1662_v47, 0.0  ;;  %v1564_v14 = vsel %vm1309_vm1, %v6319_v16, 0.0  ;;  %v6326_v23 = vld [vmem:[#allocation67_spill] sm:$0xff] }
 0x17f   : > { %v1557_v19 = vadd.f32 %v4991_v4, %v1555_v13  ;;  %v1763_v26 = vadd.f32 %v1762_v10, %v1761_v15  ;;  %v1870_v6 = vadd.f32 %v1869_v44, %v1868_v42  ;;  %v1614_v8 = vmul.f32 %v6320_v7, %v6320_v7  ;;  %v6328_v44 = vld [vmem:[#allocation131_spill] sm:$0xff] }
 0x180   : > { %v1665_v30 = vmul.f32 %v6321_v25, %v6321_v25  ;;  %v1766_v56 = vsel %vm1309_vm1, %v1612_v32, 0.0  ;;  %v1873_v17 = vsel %vm1309_vm1, %v1663_v3, 0.0  ;;  %v1437_v40 = vrot.slane %v1436_v54, 4 }
 0x181   : > { %v1559_v18 = vadd.f32 %v5009_v29, %v1557_v19  ;;  %v1765_v62 = vadd.f32 %v1764_v5, %v1763_v26  ;;  %v1872_v4 = vadd.f32 %v1871_v31, %v1870_v6  ;;  %v1615_v35 = vmul.f32 %v6322_v53, %v6322_v53  ;;  %v6331_v31 = vld [vmem:[#allocation68_spill] sm:$0xff] }
 0x182   : > { %v1666_v11 = vmul.f32 %v6323_v36, %v6323_v36  ;;  %v1768_v57 = vsel %vm1309_vm1, %v1613_v33, 0.0  ;;  %v1875_v60 = vsel %vm1309_vm1, %v1664_v24, 0.0  ;;  %v1566_v46 = vsel %vm1309_vm1, %v6324_v21, 0.0  ;;  %v6329_v33 = vld [vmem:[#allocation83_spill] sm:$0xff]  ;;  %v6334_v36 = vld [vmem:[#allocation26_spill] sm:$0xff] }
 0x183   : > { %v1561_v28 = vadd.f32 %v1560_v22, %v1559_v18  ;;  %v1767_v12 = vadd.f32 %v1766_v56, %v1765_v62  ;;  %v1874_v47 = vadd.f32 %v1873_v17, %v1872_v4  ;;  %v1616_v29 = vmul.f32 %v6325_v0, %v6325_v0  ;;  %v6327_v22 = vld [vmem:[#allocation44_spill] sm:$0xff] }
 0x184   : > { %v1667_v45 = vmul.f32 %v6326_v23, %v6326_v23  ;;  %v1770_v59 = vsel %vm1309_vm1, %v1614_v8, 0.0  ;;  %v1877_v9 = vsel %vm1309_vm1, %v1665_v30, 0.0  ;;  %v1438_v51 = vadd.f32 %v1437_v40, %v1436_v54  ;;  %v6330_v54 = vld [vmem:[#allocation24_spill] sm:$0xff]  ;;  %v6336_v23 = vld [vmem:[#allocation62_spill] sm:$0xff] }
 0x185   : > { %v1563_v32 = vadd.f32 %v1562_v48, %v1561_v28  ;;  %v1769_v43 = vadd.f32 %v1768_v57, %v1767_v12  ;;  %v1876_v3 = vadd.f32 %v1875_v60, %v1874_v47  ;;  %v1617_v10 = vmul.f32 %v6327_v22, %v6327_v22  ;;  %v6333_v17 = vld [vmem:[#allocation132_spill] sm:$0xff]  ;;  %v6335_v57 = vld [vmem:[#allocation69_spill] sm:$0xff] }
 0x186   : > { %v1668_v13 = vmul.f32 %v6328_v44, %v6328_v44  ;;  %v1772_v15 = vsel %vm1309_vm1, %v1615_v35, 0.0  ;;  %v1879_v42 = vsel %vm1309_vm1, %v1666_v11, 0.0  ;;  %v1568_v52 = vsel %vm1309_vm1, %v6329_v33, 0.0  ;;  %v6338_v44 = vld [vmem:[#allocation46_spill] sm:$0xff] }
 0x187   : > { %v1565_v63 = vadd.f32 %v1564_v14, %v1563_v32  ;;  %v1771_v24 = vadd.f32 %v1770_v59, %v1769_v43  ;;  %v1878_v5 = vadd.f32 %v1877_v9, %v1876_v3  ;;  %v1618_v48 = vmul.f32 %v6330_v54, %v6330_v54  ;;  %v6332_v14 = vld [vmem:[#allocation25_spill] sm:$0xff] }
 0x188   : > { %v1669_v19 = vmul.f32 %v6331_v31, %v6331_v31  ;;  %v1774_v26 = vsel %vm1309_vm1, %v1616_v29, 0.0  ;;  %v1881_v6 = vsel %vm1309_vm1, %v1667_v45, 0.0  ;;  %v1439_v7 = vrot.slane %v1438_v51, 2  ;;  %v6337_v59 = vld [vmem:[#allocation93_spill] sm:$0xff] }
 0x189   : > { %v1567_v8 = vadd.f32 %v1566_v46, %v1565_v63  ;;  %v1773_v25 = vadd.f32 %v1772_v15, %v1771_v24  ;;  %v1880_v30 = vadd.f32 %v1879_v42, %v1878_v5  ;;  %v1619_v56 = vmul.f32 %v6332_v14, %v6332_v14  ;;  %v6342_v14 = vld [vmem:[#allocation29_spill] sm:$0xff] }
 0x18a   : > { %v1670_v40 = vmul.f32 %v6333_v17, %v6333_v17  ;;  %v1776_v18 = vsel %vm1309_vm1, %v1617_v10, 0.0  ;;  %v1883_v62 = vsel %vm1309_vm1, %v1668_v13, 0.0  ;;  %v1620_v11 = vmul.f32 %v6334_v36, %v6334_v36  ;;  %v6343_v17 = vld [vmem:[#allocation95_spill] sm:$0xff] }
 0x18b   : > { %v1569_v4 = vadd.f32 %v1568_v52, %v1567_v8  ;;  %v1775_v53 = vadd.f32 %v1774_v26, %v1773_v25  ;;  %v1882_v35 = vadd.f32 %v1881_v6, %v1880_v30  ;;  %v1671_v60 = vmul.f32 %v6335_v57, %v6335_v57 }
 0x18c   : > { %v1778_v28 = vsel %vm1309_vm1, %v1618_v48, 0.0  ;;  %v1885_v46 = vsel %vm1309_vm1, %v1669_v19, 0.0  ;;  %v1440_v12 = vadd.f32 %v1439_v7, %v1438_v51  ;;  %v1621_v45 = vmul.f32 %v6336_v23, %v6336_v23  ;;  %v6339_v51 = vld [vmem:[#allocation94_spill] sm:$0xff]  ;;  %v6340_v48 = vld [vmem:[#allocation28_spill] sm:$0xff] }
 0x18d   : > { %v1570_v47 = vrot.slane %v1569_v4, 4  ;;  %v1777_v0 = vadd.f32 %v1776_v18, %v1775_v53  ;;  %v1884_v29 = vadd.f32 %v1883_v62, %v1882_v35  ;;  %v1672_v9 = vmul.f32 %v6337_v59, %v6337_v59  ;;  %v6341_v19 = vld [vmem:[#allocation70_spill] sm:$0xff]  ;;  %v6346_v59 = vld [vmem:[#allocation48_spill] sm:$0xff] }
 0x18e   : > { %v1780_v32 = vsel %vm1309_vm1, %v1619_v56, 0.0  ;;  %v1887_v43 = vsel %vm1309_vm1, %v1670_v40, 0.0  ;;  %v1622_v13 = vmul.f32 %v6338_v44, %v6338_v44  ;;  %v1673_v15 = vmul.f32 %v6339_v51, %v6339_v51 }
 0x18f   : > { %v1571_v3 = vadd.f32 %v1570_v47, %v1569_v4  ;;  %v1779_v22 = vadd.f32 %v1778_v28, %v1777_v0  ;;  %v1886_v10 = vadd.f32 %v1885_v46, %v1884_v29  ;;  %v1782_v42 = vsel %vm1309_vm1, %v1620_v11, 0.0  ;;  %v6344_v11 = vld [vmem:[#allocation30_spill] sm:$0xff]  ;;  %v1308_v0 = vld [vmem:[#allocation2] sm:$0x3] }
 0x190   : > { %v1889_v63 = vsel %vm1309_vm1, %v1671_v60, 0.0  ;;  %v1441_v52 = vrot.slane %v1440_v12, 1  ;;  %v1623_v31 = vmul.f32 %v6340_v48, %v6340_v48  ;;  %v1674_v26 = vmul.f32 %v6341_v19, %v6341_v19  ;;  %v6345_v60 = vld [vmem:[#allocation97_spill] sm:$0xff]  ;;  %v6350_v48 = vld [vmem:[#allocation63_spill] sm:$0xff] }
 0x191   : > { %v1572_v24 = vrot.slane %v1571_v3, 2  ;;  %v1781_v5 = vadd.f32 %v1780_v32, %v1779_v22  ;;  %v1888_v54 = vadd.f32 %v1887_v43, %v1886_v10  ;;  %v1784_v6 = vsel %vm1309_vm1, %v1621_v45, 0.0  ;;  %v6348_v10 = vld [vmem:[#allocation31_spill] sm:$0xff] }
 0x192   : > { %v1891_v7 = vsel %vm1309_vm1, %v1672_v9, 0.0  ;;  %vm1578_vm6 = vcmask 1041409   ;;  %v1624_v56 = vmul.f32 %v6342_v14, %v6342_v14  ;;  %v1675_v40 = vmul.f32 %v6343_v17, %v6343_v17  ;;  %v6347_v9 = vld [vmem:[#allocation71_spill] sm:$0xff] }
 0x193   : > { %v1573_v8 = vadd.f32 %v1572_v24, %v1571_v3  ;;  %v1783_v25 = vadd.f32 %v1782_v42, %v1781_v5  ;;  %v1890_v30 = vadd.f32 %v1889_v63, %v1888_v54  ;;  %v1786_v18 = vsel %vm1309_vm1, %v1622_v13, 0.0  ;;  %v6349_v42 = vld [vmem:[#allocation98_spill] sm:$0xff]  ;;  %v6351_v19 = vld [vmem:[#allocation99_spill] sm:$0xff] }
 0x194   : > { %v1893_v62 = vsel %vm1309_vm1, %v1673_v15, 0.0  ;;  %v1442_v4 = vadd.f32 %v1441_v52, %v1440_v12  ;;  %v1625_v57 = vmul.f32 %v6344_v11, %v6344_v11  ;;  %v1676_v28 = vmul.f32 %v6345_v60, %v6345_v60 }
 0x195   : > { %v1574_v53 = vrot.slane %v1573_v8, 1  ;;  %v1785_v35 = vadd.f32 %v1784_v6, %v1783_v25  ;;  %v1892_v36 = vadd.f32 %v1891_v7, %v1890_v30  ;;  %v1788_v46 = vsel %vm1309_vm1, %v1623_v31, 0.0  ;;  %v6352_v30 = vld [vmem:[#allocation33_spill] sm:$0xff] }
 0x196   : > { %v1895_v47 = vsel %vm1309_vm1, %v1674_v26, 0.0  ;;  %vm1582_vm12 = vcmask 648192   ;;  %v1626_v12 = vmul.f32 %v6346_v59, %v6346_v59  ;;  %v1677_v32 = vmul.f32 %v6347_v9, %v6347_v9 }
 0x197   : > { %v1575_v29 = vadd.f32 %v1574_v53, %v1573_v8  ;;  %v1787_v23 = vadd.f32 %v1786_v18, %v1785_v35  ;;  %v1894_v45 = vadd.f32 %v1893_v62, %v1892_v36  ;;  %v1790_v43 = vsel %vm1309_vm1, %v1624_v56, 0.0  ;;  %v6353_v56 = vld [vmem:[#allocation72_spill] sm:$0xff]  ;;  %v6354_v53 = vld [vmem:[#allocation49_spill] sm:$0xff] }
 0x198   : > { %v1897_v3 = vsel %vm1309_vm1, %v1675_v40, 0.0  ;;  %v1627_v44 = vmul.f32 %v6348_v10, %v6348_v10  ;;  %v1678_v63 = vmul.f32 %v6349_v42, %v6349_v42  ;;  %v1792_v52 = vsel %vm1309_vm1, %v1625_v57, 0.0  ;;  %v6355_v36 = vld [vmem:[#allocation100_spill] sm:$0xff] }
 0x199   : > { %v1579_v22 = vsel %vm1578_vm6, %v1575_v29, %v1442_v4  ;;  %v1789_v13 = vadd.f32 %v1788_v46, %v1787_v23  ;;  %v1896_v51 = vadd.f32 %v1895_v47, %v1894_v45  ;;  %v1899_v24 = vsel %vm1309_vm1, %v1676_v28, 0.0  ;;  %v6356_v47 = vld [vmem:[#allocation35_spill] sm:$0xff]  ;;  %v6357_v29 = vld [vmem:[#allocation102_spill] sm:$0xff] }
 0x19a   : > { %v1581_v15 = vadd.f32 %v1579_v22, %v1308_v0  ;;  %v1628_v31 = vmul.f32 %v6350_v48, %v6350_v48  ;;  %v1679_v26 = vmul.f32 %v6351_v19, %v6351_v19  ;;  %v1794_v6 = vsel %vm1309_vm1, %v1626_v12, 0.0  ;;  %v6361_v48 = vld [vmem:[#allocation37_spill] sm:$0xff] }
 0x19b   : > { %v1791_v5 = vadd.f32 %v1790_v43, %v1789_v13  ;;  %v1898_v54 = vadd.f32 %v1897_v3, %v1896_v51  ;;  %v1901_v7 = vsel %vm1309_vm1, %v1677_v32, 0.0  ;;  %v1629_v14 = vmul.f32 %v6352_v30, %v6352_v30  ;;  %v6358_v32 = vld [vmem:[#allocation50_spill] sm:$0xff]  ;;  %v6359_v3 = vld [vmem:[#allocation73_spill] sm:$0xff]  ;;  %v6363_v30 = vld [vmem:[#allocation103_spill] sm:$0xff] }
 0x19c   : > { %1583 = vst.msk [vmem:[#allocation2] sm:$0x3] %vm1582_vm12, %v1581_v15  ;;  %v1680_v17 = vmul.f32 %v6353_v56, %v6353_v56  ;;  %v1796_v40 = vsel %vm1309_vm1, %v1627_v44, 0.0  ;;  %v1903_v18 = vsel %vm1309_vm1, %v1678_v63, 0.0  ;;  %v1630_v35 = vmul.f32 %v6354_v53, %v6354_v53  ;;  %v6360_v15 = vld [vmem:[#allocation36_spill] sm:$0xff] }
 0x19d   : > { %v1793_v8 = vadd.f32 %v1792_v52, %v1791_v5  ;;  %v1900_v25 = vadd.f32 %v1899_v24, %v1898_v54  ;;  %v1681_v11 = vmul.f32 %v6355_v36, %v6355_v36  ;;  %v1798_v57 = vsel %vm1309_vm1, %v1628_v31, 0.0 }
 0x19e   : > { %v1905_v60 = vsel %vm1309_vm1, %v1679_v26, 0.0  ;;  %v1631_v0 = vmul.f32 %v6356_v47, %v6356_v47  ;;  %v1682_v23 = vmul.f32 %v6357_v29, %v6357_v29  ;;  %v1800_v45 = vsel %vm1309_vm1, %v1629_v14, 0.0 }
 0x19f   : > { %v1795_v62 = vadd.f32 %v1794_v6, %v1793_v8  ;;  %v1902_v4 = vadd.f32 %v1901_v7, %v1900_v25  ;;  %v1907_v59 = vsel %vm1309_vm1, %v1680_v17, 0.0  ;;  %v1632_v43 = vmul.f32 %v6358_v32, %v6358_v32  ;;  %v6362_v25 = vld [vmem:[#allocation38_spill] sm:$0xff] }
 0x1a0   : > { %v1683_v22 = vmul.f32 %v6359_v3, %v6359_v3  ;;  %v1802_v10 = vsel %vm1309_vm1, %v1630_v35, 0.0  ;;  %v1909_v44 = vsel %vm1309_vm1, %v1681_v11, 0.0  ;;  %v1633_v42 = vmul.f32 %v6360_v15, %v6360_v15  ;;  %v6369_v15 = vld [vmem:[#allocation74_spill] sm:$0xff] }
 0x1a1   : > { %v1797_v28 = vadd.f32 %v1796_v40, %v1795_v62  ;;  %v1904_v46 = vadd.f32 %v1903_v18, %v1902_v4  ;;  %v1684_v63 = vmul.f32 %v4586_v49, %v4586_v49  ;;  %v1804_v52 = vsel %vm1309_vm1, %v1631_v0, 0.0  ;;  %v6364_v62 = vld [vmem:[#allocation64_spill] sm:$0xff] }
 0x1a2   : > { %v1911_v24 = vsel %vm1309_vm1, %v1682_v23, 0.0  ;;  %v1634_v31 = vmul.f32 %v6361_v48, %v6361_v48  ;;  %v1685_v19 = vmul.f32 %v4592_v37, %v4592_v37  ;;  %v1806_v26 = vsel %vm1309_vm1, %v1632_v43, 0.0  ;;  %v6366_v23 = vld [vmem:[#allocation53_spill] sm:$0xff]  ;;  %v6367_v43 = vld [vmem:[#allocation54_spill] sm:$0xff] }
 0x1a3   : > { %v1799_v12 = vadd.f32 %v1798_v57, %v1797_v28  ;;  %v1906_v9 = vadd.f32 %v1905_v60, %v1904_v46  ;;  %v1913_v6 = vsel %vm1309_vm1, %v1683_v22, 0.0  ;;  %v1635_v49 = vmul.f32 %v6362_v25, %v6362_v25  ;;  %v6365_v57 = vld [vmem:[#allocation52_spill] sm:$0xff] }
 0x1a4   : > { %v1686_v14 = vmul.f32 %v6363_v30, %v6363_v30  ;;  %v1808_v56 = vsel %vm1309_vm1, %v1633_v42, 0.0  ;;  %v1915_v17 = vsel %vm1309_vm1, %v1684_v63, 0.0  ;;  %v1636_v37 = vmul.f32 %v6364_v62, %v6364_v62 }
 0x1a5   : > { %v1801_v13 = vadd.f32 %v1800_v45, %v1799_v12  ;;  %v1908_v51 = vadd.f32 %v1907_v59, %v1906_v9  ;;  %v1687_v4 = vmul.f32 %v4608_v34, %v4608_v34  ;;  %v1810_v53 = vsel %vm1309_vm1, %v1634_v31, 0.0 }
 0x1a6   : > { %v1917_v35 = vsel %vm1309_vm1, %v1685_v19, 0.0  ;;  %v1637_v60 = vmul.f32 %v6365_v57, %v6365_v57  ;;  %v1688_v28 = vmul.f32 %v4614_v39, %v4614_v39  ;;  %v1812_v46 = vsel %vm1309_vm1, %v1635_v49, 0.0 }
 0x1a7   : > { %v1803_v5 = vadd.f32 %v1802_v10, %v1801_v13  ;;  %v1910_v54 = vadd.f32 %v1909_v44, %v1908_v51  ;;  %v1919_v47 = vsel %vm1309_vm1, %v1686_v14, 0.0  ;;  %v1638_v34 = vmul.f32 %v6366_v23, %v6366_v23  ;;  %v6368_v51 = vld [vmem:[#allocation55_spill] sm:$0xff] }
 0x1a8   : > { %v1689_v45 = vmul.f32 %v4620_v41, %v4620_v41  ;;  %v1814_v59 = vsel %vm1309_vm1, %v1636_v37, 0.0  ;;  %v1921_v12 = vsel %vm1309_vm1, %v1687_v4, 0.0  ;;  %v1639_v39 = vmul.f32 %v6367_v43, %v6367_v43  ;;  %v6376_v43 = vld [vmem:[#allocation60_spill] sm:$0xff] }
 0x1a9   : > { %v1805_v7 = vadd.f32 %v1804_v52, %v1803_v5  ;;  %v1912_v8 = vadd.f32 %v1911_v24, %v1910_v54  ;;  %v1690_v3 = vmul.f32 %v4630_v55, %v4630_v55  ;;  %v1816_v22 = vsel %vm1309_vm1, %v1637_v60, 0.0  ;;  %v6370_v54 = vld [vmem:[#allocation56_spill] sm:$0xff] }
 0x1aa   : > { %v1923_v10 = vsel %vm1309_vm1, %v1688_v28, 0.0  ;;  %v1640_v41 = vmul.f32 %v6368_v51, %v6368_v51  ;;  %v1691_v42 = vmul.f32 %v6369_v15, %v6369_v15  ;;  %v1818_v63 = vsel %vm1309_vm1, %v1638_v34, 0.0  ;;  %v6374_v28 = vld [vmem:[#allocation59_spill] sm:$0xff]  ;;  %v6375_v34 = vld [vmem:[#allocation129_spill] sm:$0xff]  ;;  %v6378_v51 = vld [vmem:[#allocation130_spill] sm:$0xff] }
 0x1ab   : > { %v1807_v40 = vadd.f32 %v1806_v26, %v1805_v7  ;;  %v1914_v18 = vadd.f32 %v1913_v6, %v1912_v8  ;;  %v1925_v52 = vsel %vm1309_vm1, %v1689_v45, 0.0  ;;  %v1641_v55 = vmul.f32 %v6370_v54, %v6370_v54  ;;  %v6371_v7 = vld [vmem:[#allocation57_spill] sm:$0xff] }
 0x1ac   : > { %v1692_v48 = vmul.f32 %v4642_v27, %v4642_v27  ;;  %v1820_v31 = vsel %vm1309_vm1, %v1639_v39, 0.0  ;;  %v1927_v19 = vsel %vm1309_vm1, %v1690_v3, 0.0  ;;  %v1642_v8 = vmul.f32 %v6371_v7, %v6371_v7  ;;  %v6377_v39 = vld [vmem:[#allocation75_spill] sm:$0xff] }
 0x1ad   : > { %v1809_v36 = vadd.f32 %v1808_v56, %v1807_v40  ;;  %v1916_v11 = vadd.f32 %v1915_v17, %v1914_v18  ;;  %v1693_v25 = vmul.f32 %v4648_v61, %v4648_v61  ;;  %v1822_v49 = vsel %vm1309_vm1, %v1640_v41, 0.0  ;;  %v6372_v17 = vld [vmem:[#allocation58_spill] sm:$0xff]  ;;  %v6379_v41 = vld [vmem:[#allocation13_spill] sm:$0xff] }
 0x1ae   : > { %v1929_v30 = vsel %vm1309_vm1, %v1691_v42, 0.0  ;;  %v1643_v27 = vmul.f32 %v6372_v17, %v6372_v17  ;;  %v1694_v40 = vmul.f32 %v4658_v38, %v4658_v38  ;;  %v1824_v18 = vsel %vm1309_vm1, %v1641_v55, 0.0 }
 0x1af   : > { %v1811_v0 = vadd.f32 %v1810_v53, %v1809_v36  ;;  %v1918_v29 = vadd.f32 %v1917_v35, %v1916_v11  ;;  %v1931_v62 = vsel %vm1309_vm1, %v1692_v48, 0.0  ;;  %v6373_v53 = vld [vmem:[#allocation127_spill] sm:$0xff]  ;;  %v1695_v35 = vmul.f32 %v4664_v2, %v4664_v2 }
 0x1b0   : > { %v1644_v61 = vmul.f32 %v6373_v53, %v6373_v53  ;;  %v1826_v36 = vsel %vm1309_vm1, %v1642_v8, 0.0  ;;  %v1933_v11 = vsel %vm1309_vm1, %v1693_v25, 0.0  ;;  %v1645_v38 = vmul.f32 %v6374_v28, %v6374_v28  ;;  %v6386_v28 = vld [vmem:[#allocation18_spill] sm:$0xff] }
 0x1b1   : > { %v1813_v9 = vadd.f32 %v1812_v46, %v1811_v0  ;;  %v1920_v32 = vadd.f32 %v1919_v47, %v1918_v29  ;;  %v1696_v46 = vmul.f32 %v4670_v1, %v4670_v1  ;;  %v1828_v47 = vsel %vm1309_vm1, %v1643_v27, 0.0 }
 0x1b2   : > { %v1935_v0 = vsel %vm1309_vm1, %v1694_v40, 0.0  ;;  %v1646_v2 = vmul.f32 %v6375_v34, %v6375_v34  ;;  %v1697_v45 = vmul.f32 %v4676_v58, %v4676_v58  ;;  %v1647_v1 = vmul.f32 %v6376_v43, %v6376_v43  ;;  %v6383_v40 = vld [vmem:[#allocation78_spill] sm:$0xff] }
 0x1b3   : > { %v1815_v44 = vadd.f32 %v1814_v59, %v1813_v9  ;;  %v1922_v13 = vadd.f32 %v1921_v12, %v1920_v32  ;;  %v1830_v59 = vsel %vm1309_vm1, %v1644_v61, 0.0  ;;  %v1937_v12 = vsel %vm1309_vm1, %v1695_v35, 0.0 }
 0x1b4   : > { %v1698_v3 = vmul.f32 %v6377_v39, %v6377_v39  ;;  %v1648_v58 = vmul.f32 %v6378_v51, %v6378_v51  ;;  %v1699_v15 = vmul.f32 %v6379_v41, %v6379_v41  ;;  %v1834_v42 = vsel %vm1309_vm1, %v1646_v2, 0.0 }
 0x1b5   : > { %v1817_v24 = vadd.f32 %v1816_v22, %v1815_v44  ;;  %v1924_v5 = vadd.f32 %v1923_v10, %v1922_v13  ;;  %v1832_v22 = vsel %vm1309_vm1, %v1645_v38, 0.0  ;;  %v1939_v10 = vsel %vm1309_vm1, %v1696_v46, 0.0 }
 0x1b6   : > { %v1836_v55 = vsel %vm1309_vm1, %v1647_v1, 0.0  ;;  %v1943_v48 = vsel %vm1309_vm1, %v1698_v3, 0.0  ;;  %v1838_v7 = vsel %vm1309_vm1, %v1648_v58, 0.0  ;;  %v1945_v8 = vsel %vm1309_vm1, %v1699_v15, 0.0 }
 0x1b7   : > { %v1819_v26 = vadd.f32 %v1818_v63, %v1817_v24  ;;  %v1926_v6 = vadd.f32 %v1925_v52, %v1924_v5  ;;  %v1941_v63 = vsel %vm1309_vm1, %v1697_v45, 0.0  ;;  %v6380_v5 = vld [vmem:[#allocation76_spill] sm:$0xff]  ;;  %v1706_v38 = vmul.f32 %v6386_v28, %v6386_v28 }
 0x1b8   : > { %v1700_v54 = vmul.f32 %v6380_v5, %v6380_v5  ;;  %v1708_v2 = vmul.f32 %v4754_v50, %v4754_v50  ;;  %v1710_v43 = vmul.f32 %v6319_v16, %v6319_v16 }
 0x1b9   : > { %v1821_v14 = vadd.f32 %v1820_v31, %v1819_v26  ;;  %v1928_v56 = vadd.f32 %v1927_v19, %v1926_v6  ;;  %v6381_v26 = vld [vmem:[#allocation14_spill] sm:$0xff]  ;;  %v1959_v45 = vsel %vm1309_vm1, %v1706_v38, 0.0 }
 0x1ba   : > { %v1701_v6 = vmul.f32 %v6381_v26, %v6381_v26  ;;  %v1963_v1 = vsel %vm1309_vm1, %v1708_v2, 0.0 }
 0x1bb   : > { %v1823_v37 = vadd.f32 %v1822_v49, %v1821_v14  ;;  %v1930_v4 = vadd.f32 %v1929_v30, %v1928_v56  ;;  %v6382_v30 = vld [vmem:[#allocation77_spill] sm:$0xff]  ;;  %v1947_v56 = vsel %vm1309_vm1, %v1700_v54, 0.0 }
 0x1bc   : > { %v1702_v14 = vmul.f32 %v6382_v30, %v6382_v30 }
 0x1bd   : > { %v1825_v57 = vadd.f32 %v1824_v18, %v1823_v37  ;;  %v1932_v60 = vadd.f32 %v1931_v62, %v1930_v4  ;;  %v1703_v18 = vmul.f32 %v6383_v40, %v6383_v40  ;;  %v1949_v62 = vsel %vm1309_vm1, %v1701_v6, 0.0  ;;  %v6384_v4 = vld [vmem:[#allocation17_spill] sm:$0xff] }
 0x1be   : > { %v1704_v53 = vmul.f32 %v6384_v4, %v6384_v4  ;;  %v1951_v61 = vsel %vm1309_vm1, %v1702_v14, 0.0 }
 0x1bf   : > { %v1827_v29 = vadd.f32 %v1826_v36, %v1825_v57  ;;  %v1934_v23 = vadd.f32 %v1933_v11, %v1932_v60  ;;  %v6385_v36 = vld [vmem:[#allocation79_spill] sm:$0xff]  ;;  %v1953_v57 = vsel %vm1309_vm1, %v1703_v18, 0.0 }
 0x1c0   : > { %v1705_v11 = vmul.f32 %v6385_v36, %v6385_v36  ;;  %v1955_v46 = vsel %vm1309_vm1, %v1704_v53, 0.0 }
 0x1c1   : > { %v1829_v9 = vadd.f32 %v1828_v47, %v1827_v29  ;;  %v1936_v32 = vadd.f32 %v1935_v0, %v1934_v23  ;;  %v6387_v0 = vld [vmem:[#allocation80_spill] sm:$0xff] }
 0x1c2   : > { %v1707_v29 = vmul.f32 %v6387_v0, %v6387_v0  ;;  %v1957_v23 = vsel %vm1309_vm1, %v1705_v11, 0.0 }
 0x1c3   : > { %v1831_v44 = vadd.f32 %v1830_v59, %v1829_v9  ;;  %v1938_v13 = vadd.f32 %v1937_v12, %v1936_v32  ;;  %v1709_v12 = vmul.f32 %v4760_v20, %v4760_v20  ;;  %v1967_v20 = vsel %vm1309_vm1, %v1710_v43, 0.0 }
 0x1c4   : > { %v1961_v9 = vsel %vm1309_vm1, %v1707_v29, 0.0 }
 0x1c5   : > { %v1833_v52 = vadd.f32 %v1832_v22, %v1831_v44  ;;  %v1940_v24 = vadd.f32 %v1939_v10, %v1938_v13  ;;  %v1711_v22 = vmul.f32 %v6324_v21, %v6324_v21  ;;  %v1965_v50 = vsel %vm1309_vm1, %v1709_v12, 0.0 }
 0x1c6   : > { %v1712_v44 = vmul.f32 %v6329_v33, %v6329_v33 }
 0x1c7   : > { %v1835_v31 = vadd.f32 %v1834_v42, %v1833_v52  ;;  %v1942_v19 = vadd.f32 %v1941_v63, %v1940_v24  ;;  %v1969_v58 = vsel %vm1309_vm1, %v1711_v22, 0.0 }
 0x1c8   : > { %v1971_v41 = vsel %vm1309_vm1, %v1712_v44, 0.0 }
 0x1c9   : > { %v1837_v25 = vadd.f32 %v1836_v55, %v1835_v31  ;;  %v1944_v49 = vadd.f32 %v1943_v48, %v1942_v19  ;;  %v1584_v31 = vld [vmem:[#allocation3] sm:$0x3] }
 0x1cb   : > { %v1839_v17 = vadd.f32 %v1838_v7, %v1837_v25  ;;  %v1946_v27 = vadd.f32 %v1945_v8, %v1944_v49 }
 0x1cd   : > { %v1948_v37 = vadd.f32 %v1947_v56, %v1946_v27  ;;  %v1840_v39 = vrot.slane %v1839_v17, 4 }
 0x1cf   : > { %v1950_v35 = vadd.f32 %v1949_v62, %v1948_v37  ;;  %v1841_v13 = vadd.f32 %v1840_v39, %v1839_v17 }
 0x1d1   : > { %v1952_v60 = vadd.f32 %v1951_v61, %v1950_v35  ;;  %v1842_v15 = vrot.slane %v1841_v13, 2 }
 0x1d3   : > { %v1954_v47 = vadd.f32 %v1953_v57, %v1952_v60  ;;  %v1843_v52 = vadd.f32 %v1842_v15, %v1841_v13 }
 0x1d5   : > { %v1956_v34 = vadd.f32 %v1955_v46, %v1954_v47  ;;  %v1844_v5 = vrot.slane %v1843_v52, 1 }
 0x1d7   : > { %v1958_v59 = vadd.f32 %v1957_v23, %v1956_v34  ;;  %v1845_v48 = vadd.f32 %v1844_v5, %v1843_v52 }
 0x1d9   : > { %v1960_v32 = vadd.f32 %v1959_v45, %v1958_v59 }
 0x1db   : > { %v1962_v3 = vadd.f32 %v1961_v9, %v1960_v32 }
 0x1dd   : > { %v1964_v10 = vadd.f32 %v1963_v1, %v1962_v3 }
 0x1df   : > { %v1966_v51 = vadd.f32 %v1965_v50, %v1964_v10 }
 0x1e1   : > { %v1968_v16 = vadd.f32 %v1967_v20, %v1966_v51 }
 0x1e3   : > { %v1970_v42 = vadd.f32 %v1969_v58, %v1968_v16 }
 0x1e5   : > { %v1972_v63 = vadd.f32 %v1971_v41, %v1970_v42 }
 0x1e7   : > { %v1973_v21 = vrot.slane %v1972_v63, 4 }
 0x1e9   : > { %v1974_v24 = vadd.f32 %v1973_v21, %v1972_v63 }
 0x1eb   : > { %v1975_v54 = vrot.slane %v1974_v24, 2 }
 0x1ed   : > { %v1976_v55 = vadd.f32 %v1975_v54, %v1974_v24 }
 0x1ef   : > { %v1977_v33 = vrot.slane %v1976_v55, 1 }
 0x1f1   : > { %v1978_v19 = vadd.f32 %v1977_v33, %v1976_v55 }
 0x1f2   : > { %1988 = sbr.rel (%p2222_p2) target bundleno = 511 (0x1ff), region = 94 }
 0x1f3   : > { %v1981_v26 = vsel %vm1578_vm6, %v1978_v19, %v1845_v48 }
 0x1f4   : > { %v1983_v6 = vadd.f32 %v1981_v26, %v1584_v31 }
 0x1f6   : > { %1984 = vst.msk [vmem:[#allocation3] sm:$0x3] %vm1582_vm12, %v1983_v6 }
 0x1f7   : > { %v1989_v7 = vld [vmem:[#allocation2] sm:$0x3] }
 0x1f8   : > { %1990 = vst.msk [vmem:[%s3231_s0] sm:$0x3] %vm1582_vm12, %v1989_v7 }
 0x1fd   : > { %v1991_v8 = vld [vmem:[#allocation3] sm:$0x3] }
 0x1fe   : > { %1992 = vst.msk [vmem:[%s3233_s8] sm:$0x3] %vm1582_vm12, %v1991_v8 }
 0x1ff PF: > { %s2225_s30 = sshll.u32 %s2866_s15, 5  ;;  %s2012_s27 = sshll.u32 %s3231_s0, 4  ;;  %s2013_s27 = int_to_ptr.vmem [resolvable:$true] %s2012_s27 }
 0x200   : > { %s2010_s14 = scalar_lea.hbm %s5457_s1, %s2225_s30  ;;  %s1994_s23 = scalar_lea.sflag [#allocation6], %s3226_s26 }
 0x201   : > { %s2708_s29 = scalar_lea.vmem %s2013_s27, 32  ;;  %s2913_s21 = smov [#allocation5]  }
 0x202   : > { %p2709_p3 = scmp.ne.s32.totalorder %s2013_s27, %s2708_s29  ;;  %s2712_s22 = sshll.u32 %s2913_s21, 4  ;;  %s2713_s22 = int_to_ptr.vmem [resolvable:$false] %s2712_s22 }
 0x203   : > { %s2714_s4 = scalar_lea.vmem %s2713_s22, 64  ;;  %p2715_p6 = scmp.lt.s32.totalorder %s2013_s27, %s2713_s22 }
 0x204   : > { %p2710_p4 = pnand %p2709_p3, %p3014_p13  ;;  %p2716_p7 = scmp.lt.s32.totalorder %s2714_s4, %s2708_s29 }
 0x206   : > { %p2711_p5 = pneg %p2710_p4  ;;  %p2717_p8 = por %p2716_p7, %p2715_p6 }
 0x208   : > { %p2718_p9 = pnand %p2717_p8, %p2711_p5 }
 0x20a   : > { %2721 = shalt.err (!%p2718_p9)
}
 0x20b   : > { %s2722_s24 = scalar_lea.hbm %s2010_s14, 32  ;;  %s2726_s19 = scalar_lea.hbm %s5457_s1, 64 }
 0x20c   : > { %p2723_p10 = scmp.ne.s32.totalorder %s2010_s14, %s2722_s24  ;;  %p2727_p1 = scmp.lt.s32.totalorder %s2010_s14, %s5457_s1 }
 0x20d   : > { %p2728_p2 = scmp.lt.s32.totalorder %s2726_s19, %s2722_s24 }
 0x20e   : > { %p2724_p11 = pnand %p2723_p10, %p3014_p13 }
 0x20f   : > { %p2729_p3 = por %p2728_p2, %p2727_p1 }
 0x210   : > { %p2725_p12 = pneg %p2724_p11 }
 0x212   : > { %p2730_p4 = pnand %p2729_p3, %p2725_p12 }
 0x214   : > { %2733 = shalt.err (!%p2730_p4)
}
 0x215   : > { %2551 = dma.vmem_to_hbm [thread:$0]  (%p3014_p13), %s2013_s27, 32, %s2010_s14, %s1994_s23  }
 0x216   : > { %s2023_s21 = scalar_lea.hbm %s5458_s2, %s2225_s30  ;;  %s2025_s22 = sshll.u32 %s3233_s8, 4  ;;  %s2026_s22 = int_to_ptr.vmem [resolvable:$true] %s2025_s22 }
 0x217   : > { %s1999_s4 = scalar_lea.sflag [#allocation8], %s3226_s26  ;;  %s2734_s0 = scalar_lea.vmem %s2026_s22, 32 }
 0x218   : > { %p2735_p5 = scmp.ne.s32.totalorder %s2026_s22, %s2734_s0  ;;  %s2914_s24 = smov [#allocation7]  }
 0x219   : > { %s2738_s12 = sshll.u32 %s2914_s24, 4  ;;  %s2739_s12 = int_to_ptr.vmem [resolvable:$false] %s2738_s12 }
 0x21a   : > { %p2736_p6 = pnand %p2735_p5, %p3014_p13  ;;  %s2740_s19 = scalar_lea.vmem %s2739_s12, 64 }
 0x21b   : > { %p2741_p8 = scmp.lt.s32.totalorder %s2026_s22, %s2739_s12  ;;  %p2742_p9 = scmp.lt.s32.totalorder %s2740_s19, %s2734_s0 }
 0x21c   : > { %p2737_p7 = pneg %p2736_p6 }
 0x21d   : > { %p2743_p10 = por %p2742_p9, %p2741_p8 }
 0x21f   : > { %p2744_p11 = pnand %p2743_p10, %p2737_p7 }
 0x221   : > { %2747 = shalt.err (!%p2744_p11)
}
 0x222   : > { %s2748_s15 = scalar_lea.hbm %s2023_s21, 32  ;;  %s2752_s30 = scalar_lea.hbm %s5458_s2, 64 }
 0x223   : > { %p2749_p12 = scmp.ne.s32.totalorder %s2023_s21, %s2748_s15  ;;  %p2753_p3 = scmp.lt.s32.totalorder %s2023_s21, %s5458_s2 }
 0x224   : > { %p2754_p4 = scmp.lt.s32.totalorder %s2752_s30, %s2748_s15 }
 0x225   : > { %p2750_p1 = pnand %p2749_p12, %p3014_p13 }
 0x226   : > { %p2755_p5 = por %p2754_p4, %p2753_p3 }
 0x227   : > { %p2751_p2 = pneg %p2750_p1 }
 0x229   : > { %p2756_p6 = pnand %p2755_p5, %p2751_p2 }
 0x22b   : > { %2759 = shalt.err (!%p2756_p6)
}
 0x22c   : > { %2552 = dma.vmem_to_hbm [thread:$0]  (%p3014_p13), %s2026_s22, 32, %s2023_s21, %s1999_s4  }
 0x22d PF: > { %p2562_p7 = scmp.ge.s32.totalorder %s2878_s18, 2  ;;  %s2037_s23 = sand.u32 1, %s2842_s9  }
 0x22e   : > { %s2038_s25 = scalar_lea.sflag [#allocation6], %s2037_s23 }
 0x22f   : > { %p2556_p8 = pnand %p2562_p7, %p3018_p0 }
 0x231   : > { %p2557_p9 = pneg %p2556_p8 }
 0x233   : > { %2833 = dma.done.wait (%p2557_p9), %s2038_s25, 32  }
 0x234   : > { %2835 = vsyncadd (%p2557_p9), %s2038_s25, 4294967264  ;;  %s2047_s28 = scalar_lea.sflag [#allocation8], %s2037_s23 }
 0x235   : > { %2837 = dma.done.wait (%p2557_p9), %s2047_s28, 32  }
 0x236   : > { %2839 = vsyncadd (%p2557_p9), %s2047_s28, 4294967264  ;;  %s19_s18 = sadd.s32 1, %s2878_s18   ;;  %s6388_s5 = sld [smem:[#allocation11_spill]] }
 0x237   : > { %p16_p10 = scmp.ge.s32.totalorder %s19_s18, 6   ;;  %s6389_s6 = sld [smem:[#allocation12_spill]] }
 0x238   : > { %s6390_s9 = smov %s2846_s10  ;;  %s6391_s10 = smov %s2850_s11 }
 0x239   : > { %s6392_s11 = smov %s3009_s3  ;;  %s6393_s12 = smov %s2858_s13 }
 0x23a   : > { %s6394_s13 = smov %s3023_s7  ;;  %s6395_s14 = smov %s2870_s16 }
 0x23b   : > { %s6396_s15 = smov %s2874_s17  ;;  %18 = sbr.rel (!%p16_p10) target bundleno = 10 (0xa), region = 187 }
 0x23c   : > { %s6397_s16 = smov %s6388_s5 }
 0x23d   : > { %s6398_s17 = smov %s6389_s6 }
 0x240   :  { %2052 = vsyncpa [#allocation6], 1 }
 0x241   :  { %2054 = vsyncpa [#allocation6 + $0x1], 1 }
 0x242   :  { %2055 = vsyncpa [#allocation8], 1 }
 0x243   :  { %2057 = vsyncpa [#allocation8 + $0x1], 1 }

</bundles_post_ra>
